<compile_context>
chip_gen: v7x
topology: tpu7x:2x2x1
jax: 0.10.0
libtpu: 0.0.40
codegen_flags: <defaults>
</compile_context>

<pallas_src>
import functools
import math

import jax
import jax.numpy as jnp
from jax.experimental import pallas as pl
from jax.experimental.pallas import tpu as pltpu

PRIOR_SIGMA1 = 1.0
PRIOR_SIGMA2 = 0.0025
PRIOR_PI = 0.5

LAYER_ORDER = ("layer1", "layer2", "layer2a", "layer2b", "layer2c", "layer3")

_LOG_2PI = math.log(2.0 * math.pi)
_LOG_PI1 = math.log(PRIOR_PI)
_LOG_PI2 = math.log(1.0 - PRIOR_PI)
_C1 = -0.5 * math.log(2.0 * math.pi * PRIOR_SIGMA1 * PRIOR_SIGMA1)
_C2 = -0.5 * math.log(2.0 * math.pi * PRIOR_SIGMA2 * PRIOR_SIGMA2)
_INV_2S1 = 1.0 / (2.0 * PRIOR_SIGMA1 * PRIOR_SIGMA1)
_INV_2S2 = 1.0 / (2.0 * PRIOR_SIGMA2 * PRIOR_SIGMA2)


def _sample_and_kl(mu, rho, eps):
    """w = mu + eps*softplus(rho) and its KL contribution (all f32 VPU/EUP work)."""
    sigma = jax.nn.softplus(rho)
    w = mu + eps * sigma
    # log posterior, simplified: (w - mu)^2 / (2 sigma^2) == 0.5 * eps^2
    log_post = jnp.sum(-0.5 * _LOG_2PI - jnp.log(sigma) - 0.5 * (eps * eps))
    # scale-mixture prior at w, via logaddexp for fp32 robustness
    w2 = w * w
    lg1 = _C1 - w2 * _INV_2S1
    lg2 = _C2 - w2 * _INV_2S2
    log_prior = jnp.sum(jnp.logaddexp(_LOG_PI1 + lg1, _LOG_PI2 + lg2))
    return w, log_post - log_prior


# ---------------------------------------------------------------------------
# Kernel 1: reparameterized sampling + KL reduction.  Runs ONCE (grid=(1,)),
# emits the sampled weights pre-transposed to (in, out) in `matmul_dtype`.
# ---------------------------------------------------------------------------
def _sample_kl_kernel(n_layers, matmul_dtype, *refs):
    in_refs = refs[: 6 * n_layers]          # per layer: w_mu, w_rho, w_eps, b_mu, b_rho, b_eps
    out_refs = refs[6 * n_layers: 8 * n_layers]  # per layer: w_t, b
    kl_ref = refs[8 * n_layers]             # (1,1) SMEM scalar

    kl = jnp.float32(0.0)
    for li in range(n_layers):
        (w_mu_ref, w_rho_ref, w_eps_ref,
         b_mu_ref, b_rho_ref, b_eps_ref) = in_refs[6 * li: 6 * li + 6]

        w, kl_w = _sample_and_kl(w_mu_ref[...], w_rho_ref[...], w_eps_ref[...])
        b, kl_b = _sample_and_kl(b_mu_ref[...], b_rho_ref[...], b_eps_ref[...])
        kl = kl + kl_w + kl_b

        # Store once in (in, out) layout: MLP kernel feeds the MXU with plain h @ w_t.
        out_refs[2 * li][...] = w.T.astype(matmul_dtype)
        out_refs[2 * li + 1][...] = b          # bias stays f32

    kl_ref[0, 0] = kl


# ---------------------------------------------------------------------------
# Kernel 2: batch-gridded 6-layer MLP (5x Linear+ReLU, Linear) + softmax.
# Parameter blocks have a constant index map -> DMA'd once, VMEM-resident.
# ---------------------------------------------------------------------------
def _mlp_softmax_kernel(n_layers, matmul_dtype, x_ref, *refs):
    param_refs = refs[: 2 * n_layers]       # per layer: w_t (in,out), b (1,out)
    out_ref = refs[2 * n_layers]             # (tile, 2*E): [probs | logits]

    h = x_ref[...].astype(matmul_dtype)
    for li in range(n_layers):
        w_t = param_refs[2 * li][...]
        b = param_refs[2 * li + 1][...]
        h = jnp.dot(h, w_t, preferred_element_type=jnp.float32) + b   # f32 accumulate
        if li < n_layers - 1:
            h = jnp.maximum(h, 0.0).astype(matmul_dtype)

    logits = h                                # f32
    m = jnp.max(logits, axis=-1, keepdims=True)
    e = jnp.exp(logits - m)
    probs = e / jnp.sum(e, axis=-1, keepdims=True)   # exact divide: probs sum to 1
    # Single lane-contiguous output slab (one store stream / one output DMA).
    out_ref[...] = jnp.concatenate([probs, logits], axis=-1)


# ---------------------------------------------------------------------------
# Wrapper
# ---------------------------------------------------------------------------
def _bytes(shape, dtype):
    return math.prod(shape) * jnp.dtype(dtype).itemsize


def _vmem_limit(resident_bytes):
    # double-buffered blocks + headroom; clamp to a budget valid on v5e/v6e/v7x.
    need = 2 * resident_bytes + (4 << 20)
    return int(min(max(need, 32 << 20), 64 << 20))


def bayesian_moe_forward(x, params, eps, *, batch_tile=None, matmul_dtype=jnp.float32):
    """Equivalent of BayesianMoEGatingNetwork.forward(x, sample=True).

    Returns (expert_probs, kl, logits)."""
    batch, input_dim = x.shape
    num_experts = params[LAYER_ORDER[-1]][0].shape[0]
    n_layers = len(LAYER_ORDER)

    # ---- kernel 1: sampling + KL, runs once (not per batch tile) ----
    sample_inputs, sample_in_specs = [], []
    wb_shapes, wb_specs = [], []
    resident1 = 0
    for name in LAYER_ORDER:
        w_mu, w_rho, b_mu, b_rho = params[name]
        w_eps, b_eps = eps[name]
        dout, din = w_mu.shape
        for a in (w_mu, w_rho, w_eps,
                  b_mu.reshape(1, -1), b_rho.reshape(1, -1), b_eps.reshape(1, -1)):
            sample_inputs.append(a)
            sample_in_specs.append(pl.BlockSpec(a.shape, lambda i: (0, 0)))
            resident1 += _bytes(a.shape, a.dtype)
        wb_shapes.append(jax.ShapeDtypeStruct((din, dout), matmul_dtype))   # w^T
        wb_specs.append(pl.BlockSpec((din, dout), lambda i: (0, 0)))
        wb_shapes.append(jax.ShapeDtypeStruct((1, dout), jnp.float32))      # bias
        wb_specs.append(pl.BlockSpec((1, dout), lambda i: (0, 0)))
        resident1 += _bytes((din, dout), matmul_dtype) + _bytes((1, dout), jnp.float32)

    out_shape1 = tuple(wb_shapes) + (jax.ShapeDtypeStruct((1, 1), jnp.float32),)
    out_specs1 = tuple(wb_specs) + (
        pl.BlockSpec((1, 1), lambda i: (0, 0), memory_space=pltpu.MemorySpace.SMEM),)

    sampled = pl.pallas_call(
        functools.partial(_sample_kl_kernel, n_layers, matmul_dtype),
        grid=(1,),
        in_specs=sample_in_specs,
        out_specs=out_specs1,
        out_shape=out_shape1,
        compiler_params=pltpu.CompilerParams(
            dimension_semantics=("arbitrary",),
            vmem_limit_bytes=_vmem_limit(resident1)),
    )(*sample_inputs)
    kl = sampled[-1][0, 0]
    wb = sampled[:-1]

    # ---- kernel 2: batch-gridded MLP + softmax over experts ----
    if batch_tile is None:
        batch_tile = batch if batch <= 1024 else 1024
    if batch_tile != batch:
        assert batch_tile % 8 == 0, "batch tile must be sublane aligned"
    grid = (pl.cdiv(batch, batch_tile),)

    mlp_inputs = [x]
    mlp_in_specs = [pl.BlockSpec((batch_tile, input_dim), lambda i: (i, 0))]
    resident2 = _bytes((batch_tile, input_dim), x.dtype)
    for a in wb:
        mlp_inputs.append(a)
        # Constant block index: DMA'd once, stays VMEM-resident across all batch tiles.
        # TODO(synk): v7x — pipeline_mode=pl.Buffered(1) here to skip double-buffering.
        mlp_in_specs.append(pl.BlockSpec(a.shape, lambda i: (0, 0)))
        resident2 += _bytes(a.shape, a.dtype)
    resident2 += _bytes((batch_tile, 2 * num_experts), jnp.float32)

    fused = pl.pallas_call(
        functools.partial(_mlp_softmax_kernel, n_layers, matmul_dtype),
        grid=grid,
        in_specs=mlp_in_specs,
        out_specs=pl.BlockSpec((batch_tile, 2 * num_experts), lambda i: (i, 0)),
        out_shape=jax.ShapeDtypeStruct((batch, 2 * num_experts), jnp.float32),
        compiler_params=pltpu.CompilerParams(
            dimension_semantics=("parallel",),          # megacore-shardable on v7x
            vmem_limit_bytes=_vmem_limit(resident2)),
    )(*mlp_inputs)

    probs = fused[:, :num_experts]
    logits = fused[:, num_experts:]
    return probs, kl, logits


# ---------------------------------------------------------------------------
# Pure-JAX reference (naive PyTorch-style math, for correctness check only)
# ---------------------------------------------------------------------------
def reference_forward(x, params, eps):
    def log_gauss(v, mu, sigma):
        return (-0.5 * jnp.log(2.0 * jnp.pi * sigma * sigma)
                - (v - mu) ** 2 / (2.0 * sigma * sigma))

    def log_mix(v):
        return jnp.log(PRIOR_PI * jnp.exp(log_gauss(v, 0.0, PRIOR_SIGMA1))
                       + (1.0 - PRIOR_PI) * jnp.exp(log_gauss(v, 0.0, PRIOR_SIGMA2)))

    kl = jnp.float32(0.0)
    h = x
    for name in LAYER_ORDER:
        w_mu, w_rho, b_mu, b_rho = params[name]
        w_eps, b_eps = eps[name]
        w_sigma = jax.nn.softplus(w_rho)
        b_sigma = jax.nn.softplus(b_rho)
        w = w_mu + w_eps * w_sigma
        b = b_mu + b_eps * b_sigma
        log_post = (jnp.sum(log_gauss(w, w_mu, w_sigma))
                    + jnp.sum(log_gauss(b, b_mu, b_sigma)))
        log_prior = jnp.sum(log_mix(w)) + jnp.sum(log_mix(b))
        kl = kl + (log_post - log_prior)
        h = h @ w.T + b
        if name != LAYER_ORDER[-1]:
            h = jnp.maximum(h, 0.0)
    logits = h
    probs = jax.nn.softmax(logits, axis=1)
    return probs, kl, logits


if __name__ == "__main__":
    key = jax.random.PRNGKey(0)

    # small shapes consistent with the module's forward (CLIP-embedding-like input)
    batch, input_dim, hidden_dim, num_experts = 4, 32, 32, 4

    layer_dims = {
        "layer1": (input_dim, hidden_dim),
        "layer2": (hidden_dim, hidden_dim),
        "layer2a": (hidden_dim, hidden_dim),
        "layer2b": (hidden_dim, hidden_dim),
        "layer2c": (hidden_dim, hidden_dim),
        "layer3": (hidden_dim, num_experts),
    }

    params = {}
    eps = {}
    k = key
    for name, (din, dout) in layer_dims.items():
        k, k1, k2, k3, k4, k5, k6 = jax.random.split(k, 7)
        # matches nn.Parameter(...).normal_(mean, std) init
        w_mu = 0.1 * jax.random.normal(k1, (dout, din), jnp.float32)
        w_rho = -3.0 + 0.1 * jax.random.normal(k2, (dout, din), jnp.float32)
        b_mu = 0.1 * jax.random.normal(k3, (dout,), jnp.float32)
        b_rho = -3.0 + 0.1 * jax.random.normal(k4, (dout,), jnp.float32)
        # reparameterization noise (torch.randn_like) made deterministic
        w_eps = jax.random.normal(k5, (dout, din), jnp.float32)
        b_eps = jax.random.normal(k6, (dout,), jnp.float32)
        params[name] = (w_mu, w_rho, b_mu, b_rho)
        eps[name] = (w_eps, b_eps)

    k, kx = jax.random.split(k)
    x = jax.random.normal(kx, (batch, input_dim), jnp.float32)

    ref_probs, ref_kl, ref_logits = reference_forward(x, params, eps)

    # --- f32 MXU path (strict check against the PyTorch-style reference) ---
    forward_f32 = jax.jit(functools.partial(bayesian_moe_forward,
                                            matmul_dtype=jnp.float32))
    probs, kl, logits = forward_f32(x, params, eps)
    jax.block_until_ready((probs, kl, logits))

    assert probs.shape == (batch, num_experts)
    assert logits.shape == (batch, num_experts)
    assert jnp.allclose(logits, ref_logits, atol=1e-3, rtol=1e-3)
    assert jnp.allclose(probs, ref_probs, atol=1e-3, rtol=1e-3)
    assert jnp.allclose(jnp.sum(probs, axis=1), 1.0, atol=1e-5)   # exact-divide softmax
    assert jnp.allclose(kl, ref_kl, rtol=1e-3, atol=1.0)

    # --- bf16 MXU path (production configuration for v6e/v7x), looser tolerance ---
    forward_bf16 = jax.jit(functools.partial(bayesian_moe_forward,
                                             matmul_dtype=jnp.bfloat16))
    probs_b, kl_b, logits_b = forward_bf16(x, params, eps)
    jax.block_until_ready((probs_b, kl_b, logits_b))

    assert jnp.allclose(jnp.sum(probs_b, axis=1), 1.0, atol=1e-5)
    assert jnp.allclose(logits_b, ref_logits, atol=1e-1, rtol=1e-1)
    assert jnp.allclose(probs_b, ref_probs, atol=1e-1, rtol=1e-1)
    assert jnp.allclose(kl_b, ref_kl, rtol=1e-3, atol=1.0)        # KL stays f32

    # TODO(synk): hamiltonian_monte_carlo / monte_carlo_sample / predict_expert need
    # autograd through the network plus accept/reject control flow; not part of
    # forward(sample=True, calculate_log_probs=False) so not kernelized here.
    # TODO(synk): optional text_projection path (text_dim is not None) is not exercised
    # by this forward (text_embedding=None) and is left un-kernelized.

    print("KERNEL_OK")
</pallas_src>

<mosaic_0001>
module attributes {stable_mosaic.version = 11 : i64} {
  func.func @_mlp_softmax_kernel(%arg0: i32, %arg1: memref<4x32xf32, #tpu.memory_space<vmem>>, %arg2: memref<32x32xf32, #tpu.memory_space<vmem>>, %arg3: memref<1x32xf32, #tpu.memory_space<vmem>>, %arg4: memref<32x32xf32, #tpu.memory_space<vmem>>, %arg5: memref<1x32xf32, #tpu.memory_space<vmem>>, %arg6: memref<32x32xf32, #tpu.memory_space<vmem>>, %arg7: memref<1x32xf32, #tpu.memory_space<vmem>>, %arg8: memref<32x32xf32, #tpu.memory_space<vmem>>, %arg9: memref<1x32xf32, #tpu.memory_space<vmem>>, %arg10: memref<32x32xf32, #tpu.memory_space<vmem>>, %arg11: memref<1x32xf32, #tpu.memory_space<vmem>>, %arg12: memref<32x4xf32, #tpu.memory_space<vmem>>, %arg13: memref<1x4xf32, #tpu.memory_space<vmem>>, %arg14: memref<4x8xf32, #tpu.memory_space<vmem>>) attributes {dimension_semantics = [#tpu.dimension_semantics<parallel>], iteration_bounds = array<i64: 1>, scalar_prefetch = 0 : i64, scratch_operands = 0 : i64, tpu.core_type = #tpu.core_type<tc>, window_params = [{transform_indices = @transform_0, window_bounds = array<i64: 4, 32>}, {pipeline_mode = #tpu.pipeline_mode<synchronous>, transform_indices = @transform_1, window_bounds = array<i64: 32, 32>}, {pipeline_mode = #tpu.pipeline_mode<synchronous>, transform_indices = @transform_2, window_bounds = array<i64: 1, 32>}, {pipeline_mode = #tpu.pipeline_mode<synchronous>, transform_indices = @transform_3, window_bounds = array<i64: 32, 32>}, {pipeline_mode = #tpu.pipeline_mode<synchronous>, transform_indices = @transform_4, window_bounds = array<i64: 1, 32>}, {pipeline_mode = #tpu.pipeline_mode<synchronous>, transform_indices = @transform_5, window_bounds = array<i64: 32, 32>}, {pipeline_mode = #tpu.pipeline_mode<synchronous>, transform_indices = @transform_6, window_bounds = array<i64: 1, 32>}, {pipeline_mode = #tpu.pipeline_mode<synchronous>, transform_indices = @transform_7, window_bounds = array<i64: 32, 32>}, {pipeline_mode = #tpu.pipeline_mode<synchronous>, transform_indices = @transform_8, window_bounds = array<i64: 1, 32>}, {pipeline_mode = #tpu.pipeline_mode<synchronous>, transform_indices = @transform_9, window_bounds = array<i64: 32, 32>}, {pipeline_mode = #tpu.pipeline_mode<synchronous>, transform_indices = @transform_10, window_bounds = array<i64: 1, 32>}, {pipeline_mode = #tpu.pipeline_mode<synchronous>, transform_indices = @transform_11, window_bounds = array<i64: 32, 4>}, {pipeline_mode = #tpu.pipeline_mode<synchronous>, transform_indices = @transform_12, window_bounds = array<i64: 1, 4>}, {transform_indices = @transform_13, window_bounds = array<i64: 4, 8>}]} {
    %c0 = arith.constant 0 : index
    %c0_0 = arith.constant 0 : index
    %0 = vector.load %arg1[%c0, %c0_0] : memref<4x32xf32, #tpu.memory_space<vmem>>, vector<4x32xf32>
    %c0_1 = arith.constant 0 : index
    %c0_2 = arith.constant 0 : index
    %1 = vector.load %arg2[%c0_1, %c0_2] : memref<32x32xf32, #tpu.memory_space<vmem>>, vector<32x32xf32>
    %c0_3 = arith.constant 0 : index
    %c0_4 = arith.constant 0 : index
    %2 = vector.load %arg3[%c0_3, %c0_4] : memref<1x32xf32, #tpu.memory_space<vmem>>, vector<1x32xf32>
    %cst = arith.constant dense<0.000000e+00> : vector<4x32xf32>
    %3 = tpu.matmul %0, %1, %cst {dimension_numbers = #tpu.dot_dimension_numbers<[1], [0], [0], [1], [0, 0, 1, 1], [], []>} : vector<4x32xf32>, vector<32x32xf32>, vector<4x32xf32> -> vector<4x32xf32>
    %4 = vector.broadcast %2 : vector<1x32xf32> to vector<4x32xf32>
    %5 = arith.addf %3, %4 : vector<4x32xf32>
    %cst_5 = arith.constant 0.000000e+00 : f32
    %6 = vector.broadcast %cst_5 : f32 to vector<4x32xf32>
    %7 = arith.maximumf %5, %6 : vector<4x32xf32>
    %c0_6 = arith.constant 0 : index
    %c0_7 = arith.constant 0 : index
    %8 = vector.load %arg4[%c0_6, %c0_7] : memref<32x32xf32, #tpu.memory_space<vmem>>, vector<32x32xf32>
    %c0_8 = arith.constant 0 : index
    %c0_9 = arith.constant 0 : index
    %9 = vector.load %arg5[%c0_8, %c0_9] : memref<1x32xf32, #tpu.memory_space<vmem>>, vector<1x32xf32>
    %cst_10 = arith.constant dense<0.000000e+00> : vector<4x32xf32>
    %10 = tpu.matmul %7, %8, %cst_10 {dimension_numbers = #tpu.dot_dimension_numbers<[1], [0], [0], [1], [0, 0, 1, 1], [], []>} : vector<4x32xf32>, vector<32x32xf32>, vector<4x32xf32> -> vector<4x32xf32>
    %11 = vector.broadcast %9 : vector<1x32xf32> to vector<4x32xf32>
    %12 = arith.addf %10, %11 : vector<4x32xf32>
    %cst_11 = arith.constant 0.000000e+00 : f32
    %13 = vector.broadcast %cst_11 : f32 to vector<4x32xf32>
    %14 = arith.maximumf %12, %13 : vector<4x32xf32>
    %c0_12 = arith.constant 0 : index
    %c0_13 = arith.constant 0 : index
    %15 = vector.load %arg6[%c0_12, %c0_13] : memref<32x32xf32, #tpu.memory_space<vmem>>, vector<32x32xf32>
    %c0_14 = arith.constant 0 : index
    %c0_15 = arith.constant 0 : index
    %16 = vector.load %arg7[%c0_14, %c0_15] : memref<1x32xf32, #tpu.memory_space<vmem>>, vector<1x32xf32>
    %cst_16 = arith.constant dense<0.000000e+00> : vector<4x32xf32>
    %17 = tpu.matmul %14, %15, %cst_16 {dimension_numbers = #tpu.dot_dimension_numbers<[1], [0], [0], [1], [0, 0, 1, 1], [], []>} : vector<4x32xf32>, vector<32x32xf32>, vector<4x32xf32> -> vector<4x32xf32>
    %18 = vector.broadcast %16 : vector<1x32xf32> to vector<4x32xf32>
    %19 = arith.addf %17, %18 : vector<4x32xf32>
    %cst_17 = arith.constant 0.000000e+00 : f32
    %20 = vector.broadcast %cst_17 : f32 to vector<4x32xf32>
    %21 = arith.maximumf %19, %20 : vector<4x32xf32>
    %c0_18 = arith.constant 0 : index
    %c0_19 = arith.constant 0 : index
    %22 = vector.load %arg8[%c0_18, %c0_19] : memref<32x32xf32, #tpu.memory_space<vmem>>, vector<32x32xf32>
    %c0_20 = arith.constant 0 : index
    %c0_21 = arith.constant 0 : index
    %23 = vector.load %arg9[%c0_20, %c0_21] : memref<1x32xf32, #tpu.memory_space<vmem>>, vector<1x32xf32>
    %cst_22 = arith.constant dense<0.000000e+00> : vector<4x32xf32>
    %24 = tpu.matmul %21, %22, %cst_22 {dimension_numbers = #tpu.dot_dimension_numbers<[1], [0], [0], [1], [0, 0, 1, 1], [], []>} : vector<4x32xf32>, vector<32x32xf32>, vector<4x32xf32> -> vector<4x32xf32>
    %25 = vector.broadcast %23 : vector<1x32xf32> to vector<4x32xf32>
    %26 = arith.addf %24, %25 : vector<4x32xf32>
    %cst_23 = arith.constant 0.000000e+00 : f32
    %27 = vector.broadcast %cst_23 : f32 to vector<4x32xf32>
    %28 = arith.maximumf %26, %27 : vector<4x32xf32>
    %c0_24 = arith.constant 0 : index
    %c0_25 = arith.constant 0 : index
    %29 = vector.load %arg10[%c0_24, %c0_25] : memref<32x32xf32, #tpu.memory_space<vmem>>, vector<32x32xf32>
    %c0_26 = arith.constant 0 : index
    %c0_27 = arith.constant 0 : index
    %30 = vector.load %arg11[%c0_26, %c0_27] : memref<1x32xf32, #tpu.memory_space<vmem>>, vector<1x32xf32>
    %cst_28 = arith.constant dense<0.000000e+00> : vector<4x32xf32>
    %31 = tpu.matmul %28, %29, %cst_28 {dimension_numbers = #tpu.dot_dimension_numbers<[1], [0], [0], [1], [0, 0, 1, 1], [], []>} : vector<4x32xf32>, vector<32x32xf32>, vector<4x32xf32> -> vector<4x32xf32>
    %32 = vector.broadcast %30 : vector<1x32xf32> to vector<4x32xf32>
    %33 = arith.addf %31, %32 : vector<4x32xf32>
    %cst_29 = arith.constant 0.000000e+00 : f32
    %34 = vector.broadcast %cst_29 : f32 to vector<4x32xf32>
    %35 = arith.maximumf %33, %34 : vector<4x32xf32>
    %c0_30 = arith.constant 0 : index
    %c0_31 = arith.constant 0 : index
    %36 = vector.load %arg12[%c0_30, %c0_31] : memref<32x4xf32, #tpu.memory_space<vmem>>, vector<32x4xf32>
    %c0_32 = arith.constant 0 : index
    %c0_33 = arith.constant 0 : index
    %37 = vector.load %arg13[%c0_32, %c0_33] : memref<1x4xf32, #tpu.memory_space<vmem>>, vector<1x4xf32>
    %cst_34 = arith.constant dense<0.000000e+00> : vector<4x4xf32>
    %38 = tpu.matmul %35, %36, %cst_34 {dimension_numbers = #tpu.dot_dimension_numbers<[1], [0], [0], [1], [0, 0, 1, 1], [], []>} : vector<4x32xf32>, vector<32x4xf32>, vector<4x4xf32> -> vector<4x4xf32>
    %39 = vector.broadcast %37 : vector<1x4xf32> to vector<4x4xf32>
    %40 = arith.addf %38, %39 : vector<4x4xf32>
    %cst_35 = arith.constant dense<0xFF800000> : vector<4xf32>
    %41 = vector.multi_reduction <maximumf>, %40, %cst_35 [1] : vector<4x4xf32> to vector<4xf32>
    %42 = vector.shape_cast %41 : vector<4xf32> to vector<4x1xf32>
    %43 = vector.broadcast %42 : vector<4x1xf32> to vector<4x4xf32>
    %44 = arith.subf %40, %43 : vector<4x4xf32>
    %45 = math.exp %44 : vector<4x4xf32>
    %cst_36 = arith.constant dense<0.000000e+00> : vector<4xf32>
    %46 = vector.multi_reduction <add>, %45, %cst_36 [1] : vector<4x4xf32> to vector<4xf32>
    %47 = vector.shape_cast %46 : vector<4xf32> to vector<4x1xf32>
    %48 = vector.broadcast %47 : vector<4x1xf32> to vector<4x4xf32>
    %49 = arith.divf %45, %48 : vector<4x4xf32>
    %50 = tpu.concatenate %49, %40 in 1 : vector<4x4xf32>, vector<4x4xf32> -> vector<4x8xf32>
    %c0_37 = arith.constant 0 : index
    %c0_38 = arith.constant 0 : index
    %51 = vector.load %arg14[%c0_37, %c0_38] : memref<4x8xf32, #tpu.memory_space<vmem>>, vector<4x8xf32>
    tpu.vector_store %arg14[%c0_37, %c0_38], %50 {strides = array<i32>} : memref<4x8xf32, #tpu.memory_space<vmem>>, vector<4x8xf32>,
    return
  }
  func.func @transform_0(%arg0: i32) -> (i32, i32) {
    %c0_i32 = arith.constant 0 : i32
    %c0_i32_0 = arith.constant 0 : i32
    return %arg0, %c0_i32 : i32, i32
  }
  func.func @transform_1(%arg0: i32) -> (i32, i32) {
    %c0_i32 = arith.constant 0 : i32
    %c0_i32_0 = arith.constant 0 : i32
    %c0_i32_1 = arith.constant 0 : i32
    return %c0_i32, %c0_i32_0 : i32, i32
  }
  func.func @transform_2(%arg0: i32) -> (i32, i32) {
    %c0_i32 = arith.constant 0 : i32
    %c0_i32_0 = arith.constant 0 : i32
    %c0_i32_1 = arith.constant 0 : i32
    return %c0_i32, %c0_i32_0 : i32, i32
  }
  func.func @transform_3(%arg0: i32) -> (i32, i32) {
    %c0_i32 = arith.constant 0 : i32
    %c0_i32_0 = arith.constant 0 : i32
    %c0_i32_1 = arith.constant 0 : i32
    return %c0_i32, %c0_i32_0 : i32, i32
  }
  func.func @transform_4(%arg0: i32) -> (i32, i32) {
    %c0_i32 = arith.constant 0 : i32
    %c0_i32_0 = arith.constant 0 : i32
    %c0_i32_1 = arith.constant 0 : i32
    return %c0_i32, %c0_i32_0 : i32, i32
  }
  func.func @transform_5(%arg0: i32) -> (i32, i32) {
    %c0_i32 = arith.constant 0 : i32
    %c0_i32_0 = arith.constant 0 : i32
    %c0_i32_1 = arith.constant 0 : i32
    return %c0_i32, %c0_i32_0 : i32, i32
  }
  func.func @transform_6(%arg0: i32) -> (i32, i32) {
    %c0_i32 = arith.constant 0 : i32
    %c0_i32_0 = arith.constant 0 : i32
    %c0_i32_1 = arith.constant 0 : i32
    return %c0_i32, %c0_i32_0 : i32, i32
  }
  func.func @transform_7(%arg0: i32) -> (i32, i32) {
    %c0_i32 = arith.constant 0 : i32
    %c0_i32_0 = arith.constant 0 : i32
    %c0_i32_1 = arith.constant 0 : i32
    return %c0_i32, %c0_i32_0 : i32, i32
  }
  func.func @transform_8(%arg0: i32) -> (i32, i32) {
    %c0_i32 = arith.constant 0 : i32
    %c0_i32_0 = arith.constant 0 : i32
    %c0_i32_1 = arith.constant 0 : i32
    return %c0_i32, %c0_i32_0 : i32, i32
  }
  func.func @transform_9(%arg0: i32) -> (i32, i32) {
    %c0_i32 = arith.constant 0 : i32
    %c0_i32_0 = arith.constant 0 : i32
    %c0_i32_1 = arith.constant 0 : i32
    return %c0_i32, %c0_i32_0 : i32, i32
  }
  func.func @transform_10(%arg0: i32) -> (i32, i32) {
    %c0_i32 = arith.constant 0 : i32
    %c0_i32_0 = arith.constant 0 : i32
    %c0_i32_1 = arith.constant 0 : i32
    return %c0_i32, %c0_i32_0 : i32, i32
  }
  func.func @transform_11(%arg0: i32) -> (i32, i32) {
    %c0_i32 = arith.constant 0 : i32
    %c0_i32_0 = arith.constant 0 : i32
    %c0_i32_1 = arith.constant 0 : i32
    return %c0_i32, %c0_i32_0 : i32, i32
  }
  func.func @transform_12(%arg0: i32) -> (i32, i32) {
    %c0_i32 = arith.constant 0 : i32
    %c0_i32_0 = arith.constant 0 : i32
    %c0_i32_1 = arith.constant 0 : i32
    return %c0_i32, %c0_i32_0 : i32, i32
  }
  func.func @transform_13(%arg0: i32) -> (i32, i32) {
    %c0_i32 = arith.constant 0 : i32
    %c0_i32_0 = arith.constant 0 : i32
    return %arg0, %c0_i32 : i32, i32
  }
}

module attributes {stable_mosaic.version = 11 : i64} {
  func.func @_sample_kl_kernel(%arg0: i32, %arg1: memref<32x32xf32, #tpu.memory_space<vmem>>, %arg2: memref<32x32xf32, #tpu.memory_space<vmem>>, %arg3: memref<32x32xf32, #tpu.memory_space<vmem>>, %arg4: memref<1x32xf32, #tpu.memory_space<vmem>>, %arg5: memref<1x32xf32, #tpu.memory_space<vmem>>, %arg6: memref<1x32xf32, #tpu.memory_space<vmem>>, %arg7: memref<32x32xf32, #tpu.memory_space<vmem>>, %arg8: memref<32x32xf32, #tpu.memory_space<vmem>>, %arg9: memref<32x32xf32, #tpu.memory_space<vmem>>, %arg10: memref<1x32xf32, #tpu.memory_space<vmem>>, %arg11: memref<1x32xf32, #tpu.memory_space<vmem>>, %arg12: memref<1x32xf32, #tpu.memory_space<vmem>>, %arg13: memref<32x32xf32, #tpu.memory_space<vmem>>, %arg14: memref<32x32xf32, #tpu.memory_space<vmem>>, %arg15: memref<32x32xf32, #tpu.memory_space<vmem>>, %arg16: memref<1x32xf32, #tpu.memory_space<vmem>>, %arg17: memref<1x32xf32, #tpu.memory_space<vmem>>, %arg18: memref<1x32xf32, #tpu.memory_space<vmem>>, %arg19: memref<32x32xf32, #tpu.memory_space<vmem>>, %arg20: memref<32x32xf32, #tpu.memory_space<vmem>>, %arg21: memref<32x32xf32, #tpu.memory_space<vmem>>, %arg22: memref<1x32xf32, #tpu.memory_space<vmem>>, %arg23: memref<1x32xf32, #tpu.memory_space<vmem>>, %arg24: memref<1x32xf32, #tpu.memory_space<vmem>>, %arg25: memref<32x32xf32, #tpu.memory_space<vmem>>, %arg26: memref<32x32xf32, #tpu.memory_space<vmem>>, %arg27: memref<32x32xf32, #tpu.memory_space<vmem>>, %arg28: memref<1x32xf32, #tpu.memory_space<vmem>>, %arg29: memref<1x32xf32, #tpu.memory_space<vmem>>, %arg30: memref<1x32xf32, #tpu.memory_space<vmem>>, %arg31: memref<4x32xf32, #tpu.memory_space<vmem>>, %arg32: memref<4x32xf32, #tpu.memory_space<vmem>>, %arg33: memref<4x32xf32, #tpu.memory_space<vmem>>, %arg34: memref<1x4xf32, #tpu.memory_space<vmem>>, %arg35: memref<1x4xf32, #tpu.memory_space<vmem>>, %arg36: memref<1x4xf32, #tpu.memory_space<vmem>>, %arg37: memref<32x32xf32, #tpu.memory_space<vmem>>, %arg38: memref<1x32xf32, #tpu.memory_space<vmem>>, %arg39: memref<32x32xf32, #tpu.memory_space<vmem>>, %arg40: memref<1x32xf32, #tpu.memory_space<vmem>>, %arg41: memref<32x32xf32, #tpu.memory_space<vmem>>, %arg42: memref<1x32xf32, #tpu.memory_space<vmem>>, %arg43: memref<32x32xf32, #tpu.memory_space<vmem>>, %arg44: memref<1x32xf32, #tpu.memory_space<vmem>>, %arg45: memref<32x32xf32, #tpu.memory_space<vmem>>, %arg46: memref<1x32xf32, #tpu.memory_space<vmem>>, %arg47: memref<32x4xf32, #tpu.memory_space<vmem>>, %arg48: memref<1x4xf32, #tpu.memory_space<vmem>>, %arg49: memref<1x1xf32, #tpu.memory_space<smem>>) attributes {dimension_semantics = [#tpu.dimension_semantics<arbitrary>], iteration_bounds = array<i64: 1>, scalar_prefetch = 0 : i64, scratch_operands = 0 : i64, tpu.core_type = #tpu.core_type<tc>, window_params = [{pipeline_mode = #tpu.pipeline_mode<synchronous>, transform_indices = @transform_0, window_bounds = array<i64: 32, 32>}, {pipeline_mode = #tpu.pipeline_mode<synchronous>, transform_indices = @transform_1, window_bounds = array<i64: 32, 32>}, {pipeline_mode = #tpu.pipeline_mode<synchronous>, transform_indices = @transform_2, window_bounds = array<i64: 32, 32>}, {pipeline_mode = #tpu.pipeline_mode<synchronous>, transform_indices = @transform_3, window_bounds = array<i64: 1, 32>}, {pipeline_mode = #tpu.pipeline_mode<synchronous>, transform_indices = @transform_4, window_bounds = array<i64: 1, 32>}, {pipeline_mode = #tpu.pipeline_mode<synchronous>, transform_indices = @transform_5, window_bounds = array<i64: 1, 32>}, {pipeline_mode = #tpu.pipeline_mode<synchronous>, transform_indices = @transform_6, window_bounds = array<i64: 32, 32>}, {pipeline_mode = #tpu.pipeline_mode<synchronous>, transform_indices = @transform_7, window_bounds = array<i64: 32, 32>}, {pipeline_mode = #tpu.pipeline_mode<synchronous>, transform_indices = @transform_8, window_bounds = array<i64: 32, 32>}, {pipeline_mode = #tpu.pipeline_mode<synchronous>, transform_indices = @transform_9, window_bounds = array<i64: 1, 32>}, {pipeline_mode = #tpu.pipeline_mode<synchronous>, transform_indices = @transform_10, window_bounds = array<i64: 1, 32>}, {pipeline_mode = #tpu.pipeline_mode<synchronous>, transform_indices = @transform_11, window_bounds = array<i64: 1, 32>}, {pipeline_mode = #tpu.pipeline_mode<synchronous>, transform_indices = @transform_12, window_bounds = array<i64: 32, 32>}, {pipeline_mode = #tpu.pipeline_mode<synchronous>, transform_indices = @transform_13, window_bounds = array<i64: 32, 32>}, {pipeline_mode = #tpu.pipeline_mode<synchronous>, transform_indices = @transform_14, window_bounds = array<i64: 32, 32>}, {pipeline_mode = #tpu.pipeline_mode<synchronous>, transform_indices = @transform_15, window_bounds = array<i64: 1, 32>}, {pipeline_mode = #tpu.pipeline_mode<synchronous>, transform_indices = @transform_16, window_bounds = array<i64: 1, 32>}, {pipeline_mode = #tpu.pipeline_mode<synchronous>, transform_indices = @transform_17, window_bounds = array<i64: 1, 32>}, {pipeline_mode = #tpu.pipeline_mode<synchronous>, transform_indices = @transform_18, window_bounds = array<i64: 32, 32>}, {pipeline_mode = #tpu.pipeline_mode<synchronous>, transform_indices = @transform_19, window_bounds = array<i64: 32, 32>}, {pipeline_mode = #tpu.pipeline_mode<synchronous>, transform_indices = @transform_20, window_bounds = array<i64: 32, 32>}, {pipeline_mode = #tpu.pipeline_mode<synchronous>, transform_indices = @transform_21, window_bounds = array<i64: 1, 32>}, {pipeline_mode = #tpu.pipeline_mode<synchronous>, transform_indices = @transform_22, window_bounds = array<i64: 1, 32>}, {pipeline_mode = #tpu.pipeline_mode<synchronous>, transform_indices = @transform_23, window_bounds = array<i64: 1, 32>}, {pipeline_mode = #tpu.pipeline_mode<synchronous>, transform_indices = @transform_24, window_bounds = array<i64: 32, 32>}, {pipeline_mode = #tpu.pipeline_mode<synchronous>, transform_indices = @transform_25, window_bounds = array<i64: 32, 32>}, {pipeline_mode = #tpu.pipeline_mode<synchronous>, transform_indices = @transform_26, window_bounds = array<i64: 32, 32>}, {pipeline_mode = #tpu.pipeline_mode<synchronous>, transform_indices = @transform_27, window_bounds = array<i64: 1, 32>}, {pipeline_mode = #tpu.pipeline_mode<synchronous>, transform_indices = @transform_28, window_bounds = array<i64: 1, 32>}, {pipeline_mode = #tpu.pipeline_mode<synchronous>, transform_indices = @transform_29, window_bounds = array<i64: 1, 32>}, {pipeline_mode = #tpu.pipeline_mode<synchronous>, transform_indices = @transform_30, window_bounds = array<i64: 4, 32>}, {pipeline_mode = #tpu.pipeline_mode<synchronous>, transform_indices = @transform_31, window_bounds = array<i64: 4, 32>}, {pipeline_mode = #tpu.pipeline_mode<synchronous>, transform_indices = @transform_32, window_bounds = array<i64: 4, 32>}, {pipeline_mode = #tpu.pipeline_mode<synchronous>, transform_indices = @transform_33, window_bounds = array<i64: 1, 4>}, {pipeline_mode = #tpu.pipeline_mode<synchronous>, transform_indices = @transform_34, window_bounds = array<i64: 1, 4>}, {pipeline_mode = #tpu.pipeline_mode<synchronous>, transform_indices = @transform_35, window_bounds = array<i64: 1, 4>}, {pipeline_mode = #tpu.pipeline_mode<synchronous>, transform_indices = @transform_36, window_bounds = array<i64: 32, 32>}, {pipeline_mode = #tpu.pipeline_mode<synchronous>, transform_indices = @transform_37, window_bounds = array<i64: 1, 32>}, {pipeline_mode = #tpu.pipeline_mode<synchronous>, transform_indices = @transform_38, window_bounds = array<i64: 32, 32>}, {pipeline_mode = #tpu.pipeline_mode<synchronous>, transform_indices = @transform_39, window_bounds = array<i64: 1, 32>}, {pipeline_mode = #tpu.pipeline_mode<synchronous>, transform_indices = @transform_40, window_bounds = array<i64: 32, 32>}, {pipeline_mode = #tpu.pipeline_mode<synchronous>, transform_indices = @transform_41, window_bounds = array<i64: 1, 32>}, {pipeline_mode = #tpu.pipeline_mode<synchronous>, transform_indices = @transform_42, window_bounds = array<i64: 32, 32>}, {pipeline_mode = #tpu.pipeline_mode<synchronous>, transform_indices = @transform_43, window_bounds = array<i64: 1, 32>}, {pipeline_mode = #tpu.pipeline_mode<synchronous>, transform_indices = @transform_44, window_bounds = array<i64: 32, 32>}, {pipeline_mode = #tpu.pipeline_mode<synchronous>, transform_indices = @transform_45, window_bounds = array<i64: 1, 32>}, {pipeline_mode = #tpu.pipeline_mode<synchronous>, transform_indices = @transform_46, window_bounds = array<i64: 32, 4>}, {pipeline_mode = #tpu.pipeline_mode<synchronous>, transform_indices = @transform_47, window_bounds = array<i64: 1, 4>}, {transform_indices = @transform_48, window_bounds = array<i64: 1, 1>}]} {
    %c0 = arith.constant 0 : index
    %c0_0 = arith.constant 0 : index
    %0 = vector.load %arg1[%c0, %c0_0] : memref<32x32xf32, #tpu.memory_space<vmem>>, vector<32x32xf32>
    %c0_1 = arith.constant 0 : index
    %c0_2 = arith.constant 0 : index
    %1 = vector.load %arg2[%c0_1, %c0_2] : memref<32x32xf32, #tpu.memory_space<vmem>>, vector<32x32xf32>
    %c0_3 = arith.constant 0 : index
    %c0_4 = arith.constant 0 : index
    %2 = vector.load %arg3[%c0_3, %c0_4] : memref<32x32xf32, #tpu.memory_space<vmem>>, vector<32x32xf32>
    %cst = arith.constant 0.000000e+00 : f32
    %3 = vector.broadcast %cst : f32 to vector<32x32xf32>
    %4 = arith.maximumf %1, %3 : vector<32x32xf32>
    %5 = vector.broadcast %cst : f32 to vector<32x32xf32>
    %6 = arith.subf %1, %5 : vector<32x32xf32>
    %7 = arith.cmpf one, %6, %6 : vector<32x32xf32>
    %8 = vector.broadcast %cst : f32 to vector<32x32xf32>
    %9 = arith.addf %1, %8 : vector<32x32xf32>
    %10 = math.absf %6 : vector<32x32xf32>
    %cst_5 = arith.constant 0.000000e+00 : f32
    %11 = vector.broadcast %cst_5 : f32 to vector<32x32xf32>
    %12 = arith.subf %11, %10 : vector<32x32xf32>
    %13 = math.exp %12 : vector<32x32xf32>
    %14 = math.log1p %13 : vector<32x32xf32>
    %15 = arith.addf %4, %14 : vector<32x32xf32>
    %16 = arith.select %7, %9, %15 : vector<32x32xi1>, vector<32x32xf32>
    %17 = arith.mulf %2, %16 : vector<32x32xf32>
    %18 = arith.addf %0, %17 : vector<32x32xf32>
    %19 = math.log %16 : vector<32x32xf32>
    %cst_6 = arith.constant -0.918938517 : f32
    %20 = vector.broadcast %cst_6 : f32 to vector<32x32xf32>
    %21 = arith.subf %20, %19 : vector<32x32xf32>
    %22 = arith.mulf %2, %2 : vector<32x32xf32>
    %cst_7 = arith.constant 5.000000e-01 : f32
    %23 = vector.broadcast %cst_7 : f32 to vector<32x32xf32>
    %24 = arith.mulf %23, %22 : vector<32x32xf32>
    %25 = arith.subf %21, %24 : vector<32x32xf32>
    %26 = vector.shape_cast %25 : vector<32x32xf32> to vector<1x32x32xf32>
    %cst_8 = arith.constant dense<0.000000e+00> : vector<1xf32>
    %27 = vector.multi_reduction <add>, %26, %cst_8 [1, 2] : vector<1x32x32xf32> to vector<1xf32>
    %28 = vector.shape_cast %27 : vector<1xf32> to vector<1x1x1xf32>
    %29 = vector.extract %28[0, 0, 0] : f32 from vector<1x1x1xf32>
    %30 = arith.mulf %18, %18 : vector<32x32xf32>
    %cst_9 = arith.constant 5.000000e-01 : f32
    %31 = vector.broadcast %cst_9 : f32 to vector<32x32xf32>
    %32 = arith.mulf %30, %31 : vector<32x32xf32>
    %cst_10 = arith.constant -0.918938517 : f32
    %33 = vector.broadcast %cst_10 : f32 to vector<32x32xf32>
    %34 = arith.subf %33, %32 : vector<32x32xf32>
    %cst_11 = arith.constant 8.000000e+04 : f32
    %35 = vector.broadcast %cst_11 : f32 to vector<32x32xf32>
    %36 = arith.mulf %30, %35 : vector<32x32xf32>
    %cst_12 = arith.constant 5.07252598 : f32
    %37 = vector.broadcast %cst_12 : f32 to vector<32x32xf32>
    %38 = arith.subf %37, %36 : vector<32x32xf32>
    %cst_13 = arith.constant -0.693147182 : f32
    %39 = vector.broadcast %cst_13 : f32 to vector<32x32xf32>
    %40 = arith.addf %39, %34 : vector<32x32xf32>
    %cst_14 = arith.constant -0.693147182 : f32
    %41 = vector.broadcast %cst_14 : f32 to vector<32x32xf32>
    %42 = arith.addf %41, %38 : vector<32x32xf32>
    %43 = arith.maximumf %40, %42 : vector<32x32xf32>
    %44 = arith.subf %40, %42 : vector<32x32xf32>
    %45 = arith.cmpf one, %44, %44 : vector<32x32xf32>
    %46 = arith.addf %40, %42 : vector<32x32xf32>
    %47 = math.absf %44 : vector<32x32xf32>
    %cst_15 = arith.constant 0.000000e+00 : f32
    %48 = vector.broadcast %cst_15 : f32 to vector<32x32xf32>
    %49 = arith.subf %48, %47 : vector<32x32xf32>
    %50 = math.exp %49 : vector<32x32xf32>
    %51 = math.log1p %50 : vector<32x32xf32>
    %52 = arith.addf %43, %51 : vector<32x32xf32>
    %53 = arith.select %45, %46, %52 : vector<32x32xi1>, vector<32x32xf32>
    %54 = vector.shape_cast %53 : vector<32x32xf32> to vector<1x32x32xf32>
    %cst_16 = arith.constant dense<0.000000e+00> : vector<1xf32>
    %55 = vector.multi_reduction <add>, %54, %cst_16 [1, 2] : vector<1x32x32xf32> to vector<1xf32>
    %56 = vector.shape_cast %55 : vector<1xf32> to vector<1x1x1xf32>
    %57 = vector.extract %56[0, 0, 0] : f32 from vector<1x1x1xf32>
    %58 = arith.subf %29, %57 : f32
    %c0_17 = arith.constant 0 : index
    %c0_18 = arith.constant 0 : index
    %59 = vector.load %arg4[%c0_17, %c0_18] : memref<1x32xf32, #tpu.memory_space<vmem>>, vector<1x32xf32>
    %c0_19 = arith.constant 0 : index
    %c0_20 = arith.constant 0 : index
    %60 = vector.load %arg5[%c0_19, %c0_20] : memref<1x32xf32, #tpu.memory_space<vmem>>, vector<1x32xf32>
    %c0_21 = arith.constant 0 : index
    %c0_22 = arith.constant 0 : index
    %61 = vector.load %arg6[%c0_21, %c0_22] : memref<1x32xf32, #tpu.memory_space<vmem>>, vector<1x32xf32>
    %cst_23 = arith.constant 0.000000e+00 : f32
    %62 = vector.broadcast %cst_23 : f32 to vector<1x32xf32>
    %63 = arith.maximumf %60, %62 : vector<1x32xf32>
    %64 = vector.broadcast %cst_23 : f32 to vector<1x32xf32>
    %65 = arith.subf %60, %64 : vector<1x32xf32>
    %66 = arith.cmpf one, %65, %65 : vector<1x32xf32>
    %67 = vector.broadcast %cst_23 : f32 to vector<1x32xf32>
    %68 = arith.addf %60, %67 : vector<1x32xf32>
    %69 = math.absf %65 : vector<1x32xf32>
    %cst_24 = arith.constant 0.000000e+00 : f32
    %70 = vector.broadcast %cst_24 : f32 to vector<1x32xf32>
    %71 = arith.subf %70, %69 : vector<1x32xf32>
    %72 = math.exp %71 : vector<1x32xf32>
    %73 = math.log1p %72 : vector<1x32xf32>
    %74 = arith.addf %63, %73 : vector<1x32xf32>
    %75 = arith.select %66, %68, %74 : vector<1x32xi1>, vector<1x32xf32>
    %76 = arith.mulf %61, %75 : vector<1x32xf32>
    %77 = arith.addf %59, %76 : vector<1x32xf32>
    %78 = math.log %75 : vector<1x32xf32>
    %cst_25 = arith.constant -0.918938517 : f32
    %79 = vector.broadcast %cst_25 : f32 to vector<1x32xf32>
    %80 = arith.subf %79, %78 : vector<1x32xf32>
    %81 = arith.mulf %61, %61 : vector<1x32xf32>
    %cst_26 = arith.constant 5.000000e-01 : f32
    %82 = vector.broadcast %cst_26 : f32 to vector<1x32xf32>
    %83 = arith.mulf %82, %81 : vector<1x32xf32>
    %84 = arith.subf %80, %83 : vector<1x32xf32>
    %85 = vector.shape_cast %84 : vector<1x32xf32> to vector<1x1x32xf32>
    %cst_27 = arith.constant dense<0.000000e+00> : vector<1xf32>
    %86 = vector.multi_reduction <add>, %85, %cst_27 [1, 2] : vector<1x1x32xf32> to vector<1xf32>
    %87 = vector.shape_cast %86 : vector<1xf32> to vector<1x1x1xf32>
    %88 = vector.extract %87[0, 0, 0] : f32 from vector<1x1x1xf32>
    %89 = arith.mulf %77, %77 : vector<1x32xf32>
    %cst_28 = arith.constant 5.000000e-01 : f32
    %90 = vector.broadcast %cst_28 : f32 to vector<1x32xf32>
    %91 = arith.mulf %89, %90 : vector<1x32xf32>
    %cst_29 = arith.constant -0.918938517 : f32
    %92 = vector.broadcast %cst_29 : f32 to vector<1x32xf32>
    %93 = arith.subf %92, %91 : vector<1x32xf32>
    %cst_30 = arith.constant 8.000000e+04 : f32
    %94 = vector.broadcast %cst_30 : f32 to vector<1x32xf32>
    %95 = arith.mulf %89, %94 : vector<1x32xf32>
    %cst_31 = arith.constant 5.07252598 : f32
    %96 = vector.broadcast %cst_31 : f32 to vector<1x32xf32>
    %97 = arith.subf %96, %95 : vector<1x32xf32>
    %cst_32 = arith.constant -0.693147182 : f32
    %98 = vector.broadcast %cst_32 : f32 to vector<1x32xf32>
    %99 = arith.addf %98, %93 : vector<1x32xf32>
    %cst_33 = arith.constant -0.693147182 : f32
    %100 = vector.broadcast %cst_33 : f32 to vector<1x32xf32>
    %101 = arith.addf %100, %97 : vector<1x32xf32>
    %102 = arith.maximumf %99, %101 : vector<1x32xf32>
    %103 = arith.subf %99, %101 : vector<1x32xf32>
    %104 = arith.cmpf one, %103, %103 : vector<1x32xf32>
    %105 = arith.addf %99, %101 : vector<1x32xf32>
    %106 = math.absf %103 : vector<1x32xf32>
    %cst_34 = arith.constant 0.000000e+00 : f32
    %107 = vector.broadcast %cst_34 : f32 to vector<1x32xf32>
    %108 = arith.subf %107, %106 : vector<1x32xf32>
    %109 = math.exp %108 : vector<1x32xf32>
    %110 = math.log1p %109 : vector<1x32xf32>
    %111 = arith.addf %102, %110 : vector<1x32xf32>
    %112 = arith.select %104, %105, %111 : vector<1x32xi1>, vector<1x32xf32>
    %113 = vector.shape_cast %112 : vector<1x32xf32> to vector<1x1x32xf32>
    %cst_35 = arith.constant dense<0.000000e+00> : vector<1xf32>
    %114 = vector.multi_reduction <add>, %113, %cst_35 [1, 2] : vector<1x1x32xf32> to vector<1xf32>
    %115 = vector.shape_cast %114 : vector<1xf32> to vector<1x1x1xf32>
    %116 = vector.extract %115[0, 0, 0] : f32 from vector<1x1x1xf32>
    %117 = arith.subf %88, %116 : f32
    %cst_36 = arith.constant 0.000000e+00 : f32
    %118 = arith.addf %cst_36, %58 : f32
    %119 = arith.addf %118, %117 : f32
    %120 = tpu.transpose %18, [1, 0] : vector<32x32xf32> -> vector<32x32xf32>
    %c0_37 = arith.constant 0 : index
    %c0_38 = arith.constant 0 : index
    %121 = vector.load %arg37[%c0_37, %c0_38] : memref<32x32xf32, #tpu.memory_space<vmem>>, vector<32x32xf32>
    tpu.vector_store %arg37[%c0_37, %c0_38], %120 {strides = array<i32>} : memref<32x32xf32, #tpu.memory_space<vmem>>, vector<32x32xf32>,
    %c0_39 = arith.constant 0 : index
    %c0_40 = arith.constant 0 : index
    %122 = vector.load %arg38[%c0_39, %c0_40] : memref<1x32xf32, #tpu.memory_space<vmem>>, vector<1x32xf32>
    tpu.vector_store %arg38[%c0_39, %c0_40], %77 {strides = array<i32>} : memref<1x32xf32, #tpu.memory_space<vmem>>, vector<1x32xf32>,
    %c0_41 = arith.constant 0 : index
    %c0_42 = arith.constant 0 : index
    %123 = vector.load %arg7[%c0_41, %c0_42] : memref<32x32xf32, #tpu.memory_space<vmem>>, vector<32x32xf32>
    %c0_43 = arith.constant 0 : index
    %c0_44 = arith.constant 0 : index
    %124 = vector.load %arg8[%c0_43, %c0_44] : memref<32x32xf32, #tpu.memory_space<vmem>>, vector<32x32xf32>
    %c0_45 = arith.constant 0 : index
    %c0_46 = arith.constant 0 : index
    %125 = vector.load %arg9[%c0_45, %c0_46] : memref<32x32xf32, #tpu.memory_space<vmem>>, vector<32x32xf32>
    %cst_47 = arith.constant 0.000000e+00 : f32
    %126 = vector.broadcast %cst_47 : f32 to vector<32x32xf32>
    %127 = arith.maximumf %124, %126 : vector<32x32xf32>
    %128 = vector.broadcast %cst_47 : f32 to vector<32x32xf32>
    %129 = arith.subf %124, %128 : vector<32x32xf32>
    %130 = arith.cmpf one, %129, %129 : vector<32x32xf32>
    %131 = vector.broadcast %cst_47 : f32 to vector<32x32xf32>
    %132 = arith.addf %124, %131 : vector<32x32xf32>
    %133 = math.absf %129 : vector<32x32xf32>
    %cst_48 = arith.constant 0.000000e+00 : f32
    %134 = vector.broadcast %cst_48 : f32 to vector<32x32xf32>
    %135 = arith.subf %134, %133 : vector<32x32xf32>
    %136 = math.exp %135 : vector<32x32xf32>
    %137 = math.log1p %136 : vector<32x32xf32>
    %138 = arith.addf %127, %137 : vector<32x32xf32>
    %139 = arith.select %130, %132, %138 : vector<32x32xi1>, vector<32x32xf32>
    %140 = arith.mulf %125, %139 : vector<32x32xf32>
    %141 = arith.addf %123, %140 : vector<32x32xf32>
    %142 = math.log %139 : vector<32x32xf32>
    %cst_49 = arith.constant -0.918938517 : f32
    %143 = vector.broadcast %cst_49 : f32 to vector<32x32xf32>
    %144 = arith.subf %143, %142 : vector<32x32xf32>
    %145 = arith.mulf %125, %125 : vector<32x32xf32>
    %cst_50 = arith.constant 5.000000e-01 : f32
    %146 = vector.broadcast %cst_50 : f32 to vector<32x32xf32>
    %147 = arith.mulf %146, %145 : vector<32x32xf32>
    %148 = arith.subf %144, %147 : vector<32x32xf32>
    %149 = vector.shape_cast %148 : vector<32x32xf32> to vector<1x32x32xf32>
    %cst_51 = arith.constant dense<0.000000e+00> : vector<1xf32>
    %150 = vector.multi_reduction <add>, %149, %cst_51 [1, 2] : vector<1x32x32xf32> to vector<1xf32>
    %151 = vector.shape_cast %150 : vector<1xf32> to vector<1x1x1xf32>
    %152 = vector.extract %151[0, 0, 0] : f32 from vector<1x1x1xf32>
    %153 = arith.mulf %141, %141 : vector<32x32xf32>
    %cst_52 = arith.constant 5.000000e-01 : f32
    %154 = vector.broadcast %cst_52 : f32 to vector<32x32xf32>
    %155 = arith.mulf %153, %154 : vector<32x32xf32>
    %cst_53 = arith.constant -0.918938517 : f32
    %156 = vector.broadcast %cst_53 : f32 to vector<32x32xf32>
    %157 = arith.subf %156, %155 : vector<32x32xf32>
    %cst_54 = arith.constant 8.000000e+04 : f32
    %158 = vector.broadcast %cst_54 : f32 to vector<32x32xf32>
    %159 = arith.mulf %153, %158 : vector<32x32xf32>
    %cst_55 = arith.constant 5.07252598 : f32
    %160 = vector.broadcast %cst_55 : f32 to vector<32x32xf32>
    %161 = arith.subf %160, %159 : vector<32x32xf32>
    %cst_56 = arith.constant -0.693147182 : f32
    %162 = vector.broadcast %cst_56 : f32 to vector<32x32xf32>
    %163 = arith.addf %162, %157 : vector<32x32xf32>
    %cst_57 = arith.constant -0.693147182 : f32
    %164 = vector.broadcast %cst_57 : f32 to vector<32x32xf32>
    %165 = arith.addf %164, %161 : vector<32x32xf32>
    %166 = arith.maximumf %163, %165 : vector<32x32xf32>
    %167 = arith.subf %163, %165 : vector<32x32xf32>
    %168 = arith.cmpf one, %167, %167 : vector<32x32xf32>
    %169 = arith.addf %163, %165 : vector<32x32xf32>
    %170 = math.absf %167 : vector<32x32xf32>
    %cst_58 = arith.constant 0.000000e+00 : f32
    %171 = vector.broadcast %cst_58 : f32 to vector<32x32xf32>
    %172 = arith.subf %171, %170 : vector<32x32xf32>
    %173 = math.exp %172 : vector<32x32xf32>
    %174 = math.log1p %173 : vector<32x32xf32>
    %175 = arith.addf %166, %174 : vector<32x32xf32>
    %176 = arith.select %168, %169, %175 : vector<32x32xi1>, vector<32x32xf32>
    %177 = vector.shape_cast %176 : vector<32x32xf32> to vector<1x32x32xf32>
    %cst_59 = arith.constant dense<0.000000e+00> : vector<1xf32>
    %178 = vector.multi_reduction <add>, %177, %cst_59 [1, 2] : vector<1x32x32xf32> to vector<1xf32>
    %179 = vector.shape_cast %178 : vector<1xf32> to vector<1x1x1xf32>
    %180 = vector.extract %179[0, 0, 0] : f32 from vector<1x1x1xf32>
    %181 = arith.subf %152, %180 : f32
    %c0_60 = arith.constant 0 : index
    %c0_61 = arith.constant 0 : index
    %182 = vector.load %arg10[%c0_60, %c0_61] : memref<1x32xf32, #tpu.memory_space<vmem>>, vector<1x32xf32>
    %c0_62 = arith.constant 0 : index
    %c0_63 = arith.constant 0 : index
    %183 = vector.load %arg11[%c0_62, %c0_63] : memref<1x32xf32, #tpu.memory_space<vmem>>, vector<1x32xf32>
    %c0_64 = arith.constant 0 : index
    %c0_65 = arith.constant 0 : index
    %184 = vector.load %arg12[%c0_64, %c0_65] : memref<1x32xf32, #tpu.memory_space<vmem>>, vector<1x32xf32>
    %cst_66 = arith.constant 0.000000e+00 : f32
    %185 = vector.broadcast %cst_66 : f32 to vector<1x32xf32>
    %186 = arith.maximumf %183, %185 : vector<1x32xf32>
    %187 = vector.broadcast %cst_66 : f32 to vector<1x32xf32>
    %188 = arith.subf %183, %187 : vector<1x32xf32>
    %189 = arith.cmpf one, %188, %188 : vector<1x32xf32>
    %190 = vector.broadcast %cst_66 : f32 to vector<1x32xf32>
    %191 = arith.addf %183, %190 : vector<1x32xf32>
    %192 = math.absf %188 : vector<1x32xf32>
    %cst_67 = arith.constant 0.000000e+00 : f32
    %193 = vector.broadcast %cst_67 : f32 to vector<1x32xf32>
    %194 = arith.subf %193, %192 : vector<1x32xf32>
    %195 = math.exp %194 : vector<1x32xf32>
    %196 = math.log1p %195 : vector<1x32xf32>
    %197 = arith.addf %186, %196 : vector<1x32xf32>
    %198 = arith.select %189, %191, %197 : vector<1x32xi1>, vector<1x32xf32>
    %199 = arith.mulf %184, %198 : vector<1x32xf32>
    %200 = arith.addf %182, %199 : vector<1x32xf32>
    %201 = math.log %198 : vector<1x32xf32>
    %cst_68 = arith.constant -0.918938517 : f32
    %202 = vector.broadcast %cst_68 : f32 to vector<1x32xf32>
    %203 = arith.subf %202, %201 : vector<1x32xf32>
    %204 = arith.mulf %184, %184 : vector<1x32xf32>
    %cst_69 = arith.constant 5.000000e-01 : f32
    %205 = vector.broadcast %cst_69 : f32 to vector<1x32xf32>
    %206 = arith.mulf %205, %204 : vector<1x32xf32>
    %207 = arith.subf %203, %206 : vector<1x32xf32>
    %208 = vector.shape_cast %207 : vector<1x32xf32> to vector<1x1x32xf32>
    %cst_70 = arith.constant dense<0.000000e+00> : vector<1xf32>
    %209 = vector.multi_reduction <add>, %208, %cst_70 [1, 2] : vector<1x1x32xf32> to vector<1xf32>
    %210 = vector.shape_cast %209 : vector<1xf32> to vector<1x1x1xf32>
    %211 = vector.extract %210[0, 0, 0] : f32 from vector<1x1x1xf32>
    %212 = arith.mulf %200, %200 : vector<1x32xf32>
    %cst_71 = arith.constant 5.000000e-01 : f32
    %213 = vector.broadcast %cst_71 : f32 to vector<1x32xf32>
    %214 = arith.mulf %212, %213 : vector<1x32xf32>
    %cst_72 = arith.constant -0.918938517 : f32
    %215 = vector.broadcast %cst_72 : f32 to vector<1x32xf32>
    %216 = arith.subf %215, %214 : vector<1x32xf32>
    %cst_73 = arith.constant 8.000000e+04 : f32
    %217 = vector.broadcast %cst_73 : f32 to vector<1x32xf32>
    %218 = arith.mulf %212, %217 : vector<1x32xf32>
    %cst_74 = arith.constant 5.07252598 : f32
    %219 = vector.broadcast %cst_74 : f32 to vector<1x32xf32>
    %220 = arith.subf %219, %218 : vector<1x32xf32>
    %cst_75 = arith.constant -0.693147182 : f32
    %221 = vector.broadcast %cst_75 : f32 to vector<1x32xf32>
    %222 = arith.addf %221, %216 : vector<1x32xf32>
    %cst_76 = arith.constant -0.693147182 : f32
    %223 = vector.broadcast %cst_76 : f32 to vector<1x32xf32>
    %224 = arith.addf %223, %220 : vector<1x32xf32>
    %225 = arith.maximumf %222, %224 : vector<1x32xf32>
    %226 = arith.subf %222, %224 : vector<1x32xf32>
    %227 = arith.cmpf one, %226, %226 : vector<1x32xf32>
    %228 = arith.addf %222, %224 : vector<1x32xf32>
    %229 = math.absf %226 : vector<1x32xf32>
    %cst_77 = arith.constant 0.000000e+00 : f32
    %230 = vector.broadcast %cst_77 : f32 to vector<1x32xf32>
    %231 = arith.subf %230, %229 : vector<1x32xf32>
    %232 = math.exp %231 : vector<1x32xf32>
    %233 = math.log1p %232 : vector<1x32xf32>
    %234 = arith.addf %225, %233 : vector<1x32xf32>
    %235 = arith.select %227, %228, %234 : vector<1x32xi1>, vector<1x32xf32>
    %236 = vector.shape_cast %235 : vector<1x32xf32> to vector<1x1x32xf32>
    %cst_78 = arith.constant dense<0.000000e+00> : vector<1xf32>
    %237 = vector.multi_reduction <add>, %236, %cst_78 [1, 2] : vector<1x1x32xf32> to vector<1xf32>
    %238 = vector.shape_cast %237 : vector<1xf32> to vector<1x1x1xf32>
    %239 = vector.extract %238[0, 0, 0] : f32 from vector<1x1x1xf32>
    %240 = arith.subf %211, %239 : f32
    %241 = arith.addf %119, %181 : f32
    %242 = arith.addf %241, %240 : f32
    %243 = tpu.transpose %141, [1, 0] : vector<32x32xf32> -> vector<32x32xf32>
    %c0_79 = arith.constant 0 : index
    %c0_80 = arith.constant 0 : index
    %244 = vector.load %arg39[%c0_79, %c0_80] : memref<32x32xf32, #tpu.memory_space<vmem>>, vector<32x32xf32>
    tpu.vector_store %arg39[%c0_79, %c0_80], %243 {strides = array<i32>} : memref<32x32xf32, #tpu.memory_space<vmem>>, vector<32x32xf32>,
    %c0_81 = arith.constant 0 : index
    %c0_82 = arith.constant 0 : index
    %245 = vector.load %arg40[%c0_81, %c0_82] : memref<1x32xf32, #tpu.memory_space<vmem>>, vector<1x32xf32>
    tpu.vector_store %arg40[%c0_81, %c0_82], %200 {strides = array<i32>} : memref<1x32xf32, #tpu.memory_space<vmem>>, vector<1x32xf32>,
    %c0_83 = arith.constant 0 : index
    %c0_84 = arith.constant 0 : index
    %246 = vector.load %arg13[%c0_83, %c0_84] : memref<32x32xf32, #tpu.memory_space<vmem>>, vector<32x32xf32>
    %c0_85 = arith.constant 0 : index
    %c0_86 = arith.constant 0 : index
    %247 = vector.load %arg14[%c0_85, %c0_86] : memref<32x32xf32, #tpu.memory_space<vmem>>, vector<32x32xf32>
    %c0_87 = arith.constant 0 : index
    %c0_88 = arith.constant 0 : index
    %248 = vector.load %arg15[%c0_87, %c0_88] : memref<32x32xf32, #tpu.memory_space<vmem>>, vector<32x32xf32>
    %cst_89 = arith.constant 0.000000e+00 : f32
    %249 = vector.broadcast %cst_89 : f32 to vector<32x32xf32>
    %250 = arith.maximumf %247, %249 : vector<32x32xf32>
    %251 = vector.broadcast %cst_89 : f32 to vector<32x32xf32>
    %252 = arith.subf %247, %251 : vector<32x32xf32>
    %253 = arith.cmpf one, %252, %252 : vector<32x32xf32>
    %254 = vector.broadcast %cst_89 : f32 to vector<32x32xf32>
    %255 = arith.addf %247, %254 : vector<32x32xf32>
    %256 = math.absf %252 : vector<32x32xf32>
    %cst_90 = arith.constant 0.000000e+00 : f32
    %257 = vector.broadcast %cst_90 : f32 to vector<32x32xf32>
    %258 = arith.subf %257, %256 : vector<32x32xf32>
    %259 = math.exp %258 : vector<32x32xf32>
    %260 = math.log1p %259 : vector<32x32xf32>
    %261 = arith.addf %250, %260 : vector<32x32xf32>
    %262 = arith.select %253, %255, %261 : vector<32x32xi1>, vector<32x32xf32>
    %263 = arith.mulf %248, %262 : vector<32x32xf32>
    %264 = arith.addf %246, %263 : vector<32x32xf32>
    %265 = math.log %262 : vector<32x32xf32>
    %cst_91 = arith.constant -0.918938517 : f32
    %266 = vector.broadcast %cst_91 : f32 to vector<32x32xf32>
    %267 = arith.subf %266, %265 : vector<32x32xf32>
    %268 = arith.mulf %248, %248 : vector<32x32xf32>
    %cst_92 = arith.constant 5.000000e-01 : f32
    %269 = vector.broadcast %cst_92 : f32 to vector<32x32xf32>
    %270 = arith.mulf %269, %268 : vector<32x32xf32>
    %271 = arith.subf %267, %270 : vector<32x32xf32>
    %272 = vector.shape_cast %271 : vector<32x32xf32> to vector<1x32x32xf32>
    %cst_93 = arith.constant dense<0.000000e+00> : vector<1xf32>
    %273 = vector.multi_reduction <add>, %272, %cst_93 [1, 2] : vector<1x32x32xf32> to vector<1xf32>
    %274 = vector.shape_cast %273 : vector<1xf32> to vector<1x1x1xf32>
    %275 = vector.extract %274[0, 0, 0] : f32 from vector<1x1x1xf32>
    %276 = arith.mulf %264, %264 : vector<32x32xf32>
    %cst_94 = arith.constant 5.000000e-01 : f32
    %277 = vector.broadcast %cst_94 : f32 to vector<32x32xf32>
    %278 = arith.mulf %276, %277 : vector<32x32xf32>
    %cst_95 = arith.constant -0.918938517 : f32
    %279 = vector.broadcast %cst_95 : f32 to vector<32x32xf32>
    %280 = arith.subf %279, %278 : vector<32x32xf32>
    %cst_96 = arith.constant 8.000000e+04 : f32
    %281 = vector.broadcast %cst_96 : f32 to vector<32x32xf32>
    %282 = arith.mulf %276, %281 : vector<32x32xf32>
    %cst_97 = arith.constant 5.07252598 : f32
    %283 = vector.broadcast %cst_97 : f32 to vector<32x32xf32>
    %284 = arith.subf %283, %282 : vector<32x32xf32>
    %cst_98 = arith.constant -0.693147182 : f32
    %285 = vector.broadcast %cst_98 : f32 to vector<32x32xf32>
    %286 = arith.addf %285, %280 : vector<32x32xf32>
    %cst_99 = arith.constant -0.693147182 : f32
    %287 = vector.broadcast %cst_99 : f32 to vector<32x32xf32>
    %288 = arith.addf %287, %284 : vector<32x32xf32>
    %289 = arith.maximumf %286, %288 : vector<32x32xf32>
    %290 = arith.subf %286, %288 : vector<32x32xf32>
    %291 = arith.cmpf one, %290, %290 : vector<32x32xf32>
    %292 = arith.addf %286, %288 : vector<32x32xf32>
    %293 = math.absf %290 : vector<32x32xf32>
    %cst_100 = arith.constant 0.000000e+00 : f32
    %294 = vector.broadcast %cst_100 : f32 to vector<32x32xf32>
    %295 = arith.subf %294, %293 : vector<32x32xf32>
    %296 = math.exp %295 : vector<32x32xf32>
    %297 = math.log1p %296 : vector<32x32xf32>
    %298 = arith.addf %289, %297 : vector<32x32xf32>
    %299 = arith.select %291, %292, %298 : vector<32x32xi1>, vector<32x32xf32>
    %300 = vector.shape_cast %299 : vector<32x32xf32> to vector<1x32x32xf32>
    %cst_101 = arith.constant dense<0.000000e+00> : vector<1xf32>
    %301 = vector.multi_reduction <add>, %300, %cst_101 [1, 2] : vector<1x32x32xf32> to vector<1xf32>
    %302 = vector.shape_cast %301 : vector<1xf32> to vector<1x1x1xf32>
    %303 = vector.extract %302[0, 0, 0] : f32 from vector<1x1x1xf32>
    %304 = arith.subf %275, %303 : f32
    %c0_102 = arith.constant 0 : index
    %c0_103 = arith.constant 0 : index
    %305 = vector.load %arg16[%c0_102, %c0_103] : memref<1x32xf32, #tpu.memory_space<vmem>>, vector<1x32xf32>
    %c0_104 = arith.constant 0 : index
    %c0_105 = arith.constant 0 : index
    %306 = vector.load %arg17[%c0_104, %c0_105] : memref<1x32xf32, #tpu.memory_space<vmem>>, vector<1x32xf32>
    %c0_106 = arith.constant 0 : index
    %c0_107 = arith.constant 0 : index
    %307 = vector.load %arg18[%c0_106, %c0_107] : memref<1x32xf32, #tpu.memory_space<vmem>>, vector<1x32xf32>
    %cst_108 = arith.constant 0.000000e+00 : f32
    %308 = vector.broadcast %cst_108 : f32 to vector<1x32xf32>
    %309 = arith.maximumf %306, %308 : vector<1x32xf32>
    %310 = vector.broadcast %cst_108 : f32 to vector<1x32xf32>
    %311 = arith.subf %306, %310 : vector<1x32xf32>
    %312 = arith.cmpf one, %311, %311 : vector<1x32xf32>
    %313 = vector.broadcast %cst_108 : f32 to vector<1x32xf32>
    %314 = arith.addf %306, %313 : vector<1x32xf32>
    %315 = math.absf %311 : vector<1x32xf32>
    %cst_109 = arith.constant 0.000000e+00 : f32
    %316 = vector.broadcast %cst_109 : f32 to vector<1x32xf32>
    %317 = arith.subf %316, %315 : vector<1x32xf32>
    %318 = math.exp %317 : vector<1x32xf32>
    %319 = math.log1p %318 : vector<1x32xf32>
    %320 = arith.addf %309, %319 : vector<1x32xf32>
    %321 = arith.select %312, %314, %320 : vector<1x32xi1>, vector<1x32xf32>
    %322 = arith.mulf %307, %321 : vector<1x32xf32>
    %323 = arith.addf %305, %322 : vector<1x32xf32>
    %324 = math.log %321 : vector<1x32xf32>
    %cst_110 = arith.constant -0.918938517 : f32
    %325 = vector.broadcast %cst_110 : f32 to vector<1x32xf32>
    %326 = arith.subf %325, %324 : vector<1x32xf32>
    %327 = arith.mulf %307, %307 : vector<1x32xf32>
    %cst_111 = arith.constant 5.000000e-01 : f32
    %328 = vector.broadcast %cst_111 : f32 to vector<1x32xf32>
    %329 = arith.mulf %328, %327 : vector<1x32xf32>
    %330 = arith.subf %326, %329 : vector<1x32xf32>
    %331 = vector.shape_cast %330 : vector<1x32xf32> to vector<1x1x32xf32>
    %cst_112 = arith.constant dense<0.000000e+00> : vector<1xf32>
    %332 = vector.multi_reduction <add>, %331, %cst_112 [1, 2] : vector<1x1x32xf32> to vector<1xf32>
    %333 = vector.shape_cast %332 : vector<1xf32> to vector<1x1x1xf32>
    %334 = vector.extract %333[0, 0, 0] : f32 from vector<1x1x1xf32>
    %335 = arith.mulf %323, %323 : vector<1x32xf32>
    %cst_113 = arith.constant 5.000000e-01 : f32
    %336 = vector.broadcast %cst_113 : f32 to vector<1x32xf32>
    %337 = arith.mulf %335, %336 : vector<1x32xf32>
    %cst_114 = arith.constant -0.918938517 : f32
    %338 = vector.broadcast %cst_114 : f32 to vector<1x32xf32>
    %339 = arith.subf %338, %337 : vector<1x32xf32>
    %cst_115 = arith.constant 8.000000e+04 : f32
    %340 = vector.broadcast %cst_115 : f32 to vector<1x32xf32>
    %341 = arith.mulf %335, %340 : vector<1x32xf32>
    %cst_116 = arith.constant 5.07252598 : f32
    %342 = vector.broadcast %cst_116 : f32 to vector<1x32xf32>
    %343 = arith.subf %342, %341 : vector<1x32xf32>
    %cst_117 = arith.constant -0.693147182 : f32
    %344 = vector.broadcast %cst_117 : f32 to vector<1x32xf32>
    %345 = arith.addf %344, %339 : vector<1x32xf32>
    %cst_118 = arith.constant -0.693147182 : f32
    %346 = vector.broadcast %cst_118 : f32 to vector<1x32xf32>
    %347 = arith.addf %346, %343 : vector<1x32xf32>
    %348 = arith.maximumf %345, %347 : vector<1x32xf32>
    %349 = arith.subf %345, %347 : vector<1x32xf32>
    %350 = arith.cmpf one, %349, %349 : vector<1x32xf32>
    %351 = arith.addf %345, %347 : vector<1x32xf32>
    %352 = math.absf %349 : vector<1x32xf32>
    %cst_119 = arith.constant 0.000000e+00 : f32
    %353 = vector.broadcast %cst_119 : f32 to vector<1x32xf32>
    %354 = arith.subf %353, %352 : vector<1x32xf32>
    %355 = math.exp %354 : vector<1x32xf32>
    %356 = math.log1p %355 : vector<1x32xf32>
    %357 = arith.addf %348, %356 : vector<1x32xf32>
    %358 = arith.select %350, %351, %357 : vector<1x32xi1>, vector<1x32xf32>
    %359 = vector.shape_cast %358 : vector<1x32xf32> to vector<1x1x32xf32>
    %cst_120 = arith.constant dense<0.000000e+00> : vector<1xf32>
    %360 = vector.multi_reduction <add>, %359, %cst_120 [1, 2] : vector<1x1x32xf32> to vector<1xf32>
    %361 = vector.shape_cast %360 : vector<1xf32> to vector<1x1x1xf32>
    %362 = vector.extract %361[0, 0, 0] : f32 from vector<1x1x1xf32>
    %363 = arith.subf %334, %362 : f32
    %364 = arith.addf %242, %304 : f32
    %365 = arith.addf %364, %363 : f32
    %366 = tpu.transpose %264, [1, 0] : vector<32x32xf32> -> vector<32x32xf32>
    %c0_121 = arith.constant 0 : index
    %c0_122 = arith.constant 0 : index
    %367 = vector.load %arg41[%c0_121, %c0_122] : memref<32x32xf32, #tpu.memory_space<vmem>>, vector<32x32xf32>
    tpu.vector_store %arg41[%c0_121, %c0_122], %366 {strides = array<i32>} : memref<32x32xf32, #tpu.memory_space<vmem>>, vector<32x32xf32>,
    %c0_123 = arith.constant 0 : index
    %c0_124 = arith.constant 0 : index
    %368 = vector.load %arg42[%c0_123, %c0_124] : memref<1x32xf32, #tpu.memory_space<vmem>>, vector<1x32xf32>
    tpu.vector_store %arg42[%c0_123, %c0_124], %323 {strides = array<i32>} : memref<1x32xf32, #tpu.memory_space<vmem>>, vector<1x32xf32>,
    %c0_125 = arith.constant 0 : index
    %c0_126 = arith.constant 0 : index
    %369 = vector.load %arg19[%c0_125, %c0_126] : memref<32x32xf32, #tpu.memory_space<vmem>>, vector<32x32xf32>
    %c0_127 = arith.constant 0 : index
    %c0_128 = arith.constant 0 : index
    %370 = vector.load %arg20[%c0_127, %c0_128] : memref<32x32xf32, #tpu.memory_space<vmem>>, vector<32x32xf32>
    %c0_129 = arith.constant 0 : index
    %c0_130 = arith.constant 0 : index
    %371 = vector.load %arg21[%c0_129, %c0_130] : memref<32x32xf32, #tpu.memory_space<vmem>>, vector<32x32xf32>
    %cst_131 = arith.constant 0.000000e+00 : f32
    %372 = vector.broadcast %cst_131 : f32 to vector<32x32xf32>
    %373 = arith.maximumf %370, %372 : vector<32x32xf32>
    %374 = vector.broadcast %cst_131 : f32 to vector<32x32xf32>
    %375 = arith.subf %370, %374 : vector<32x32xf32>
    %376 = arith.cmpf one, %375, %375 : vector<32x32xf32>
    %377 = vector.broadcast %cst_131 : f32 to vector<32x32xf32>
    %378 = arith.addf %370, %377 : vector<32x32xf32>
    %379 = math.absf %375 : vector<32x32xf32>
    %cst_132 = arith.constant 0.000000e+00 : f32
    %380 = vector.broadcast %cst_132 : f32 to vector<32x32xf32>
    %381 = arith.subf %380, %379 : vector<32x32xf32>
    %382 = math.exp %381 : vector<32x32xf32>
    %383 = math.log1p %382 : vector<32x32xf32>
    %384 = arith.addf %373, %383 : vector<32x32xf32>
    %385 = arith.select %376, %378, %384 : vector<32x32xi1>, vector<32x32xf32>
    %386 = arith.mulf %371, %385 : vector<32x32xf32>
    %387 = arith.addf %369, %386 : vector<32x32xf32>
    %388 = math.log %385 : vector<32x32xf32>
    %cst_133 = arith.constant -0.918938517 : f32
    %389 = vector.broadcast %cst_133 : f32 to vector<32x32xf32>
    %390 = arith.subf %389, %388 : vector<32x32xf32>
    %391 = arith.mulf %371, %371 : vector<32x32xf32>
    %cst_134 = arith.constant 5.000000e-01 : f32
    %392 = vector.broadcast %cst_134 : f32 to vector<32x32xf32>
    %393 = arith.mulf %392, %391 : vector<32x32xf32>
    %394 = arith.subf %390, %393 : vector<32x32xf32>
    %395 = vector.shape_cast %394 : vector<32x32xf32> to vector<1x32x32xf32>
    %cst_135 = arith.constant dense<0.000000e+00> : vector<1xf32>
    %396 = vector.multi_reduction <add>, %395, %cst_135 [1, 2] : vector<1x32x32xf32> to vector<1xf32>
    %397 = vector.shape_cast %396 : vector<1xf32> to vector<1x1x1xf32>
    %398 = vector.extract %397[0, 0, 0] : f32 from vector<1x1x1xf32>
    %399 = arith.mulf %387, %387 : vector<32x32xf32>
    %cst_136 = arith.constant 5.000000e-01 : f32
    %400 = vector.broadcast %cst_136 : f32 to vector<32x32xf32>
    %401 = arith.mulf %399, %400 : vector<32x32xf32>
    %cst_137 = arith.constant -0.918938517 : f32
    %402 = vector.broadcast %cst_137 : f32 to vector<32x32xf32>
    %403 = arith.subf %402, %401 : vector<32x32xf32>
    %cst_138 = arith.constant 8.000000e+04 : f32
    %404 = vector.broadcast %cst_138 : f32 to vector<32x32xf32>
    %405 = arith.mulf %399, %404 : vector<32x32xf32>
    %cst_139 = arith.constant 5.07252598 : f32
    %406 = vector.broadcast %cst_139 : f32 to vector<32x32xf32>
    %407 = arith.subf %406, %405 : vector<32x32xf32>
    %cst_140 = arith.constant -0.693147182 : f32
    %408 = vector.broadcast %cst_140 : f32 to vector<32x32xf32>
    %409 = arith.addf %408, %403 : vector<32x32xf32>
    %cst_141 = arith.constant -0.693147182 : f32
    %410 = vector.broadcast %cst_141 : f32 to vector<32x32xf32>
    %411 = arith.addf %410, %407 : vector<32x32xf32>
    %412 = arith.maximumf %409, %411 : vector<32x32xf32>
    %413 = arith.subf %409, %411 : vector<32x32xf32>
    %414 = arith.cmpf one, %413, %413 : vector<32x32xf32>
    %415 = arith.addf %409, %411 : vector<32x32xf32>
    %416 = math.absf %413 : vector<32x32xf32>
    %cst_142 = arith.constant 0.000000e+00 : f32
    %417 = vector.broadcast %cst_142 : f32 to vector<32x32xf32>
    %418 = arith.subf %417, %416 : vector<32x32xf32>
    %419 = math.exp %418 : vector<32x32xf32>
    %420 = math.log1p %419 : vector<32x32xf32>
    %421 = arith.addf %412, %420 : vector<32x32xf32>
    %422 = arith.select %414, %415, %421 : vector<32x32xi1>, vector<32x32xf32>
    %423 = vector.shape_cast %422 : vector<32x32xf32> to vector<1x32x32xf32>
    %cst_143 = arith.constant dense<0.000000e+00> : vector<1xf32>
    %424 = vector.multi_reduction <add>, %423, %cst_143 [1, 2] : vector<1x32x32xf32> to vector<1xf32>
    %425 = vector.shape_cast %424 : vector<1xf32> to vector<1x1x1xf32>
    %426 = vector.extract %425[0, 0, 0] : f32 from vector<1x1x1xf32>
    %427 = arith.subf %398, %426 : f32
    %c0_144 = arith.constant 0 : index
    %c0_145 = arith.constant 0 : index
    %428 = vector.load %arg22[%c0_144, %c0_145] : memref<1x32xf32, #tpu.memory_space<vmem>>, vector<1x32xf32>
    %c0_146 = arith.constant 0 : index
    %c0_147 = arith.constant 0 : index
    %429 = vector.load %arg23[%c0_146, %c0_147] : memref<1x32xf32, #tpu.memory_space<vmem>>, vector<1x32xf32>
    %c0_148 = arith.constant 0 : index
    %c0_149 = arith.constant 0 : index
    %430 = vector.load %arg24[%c0_148, %c0_149] : memref<1x32xf32, #tpu.memory_space<vmem>>, vector<1x32xf32>
    %cst_150 = arith.constant 0.000000e+00 : f32
    %431 = vector.broadcast %cst_150 : f32 to vector<1x32xf32>
    %432 = arith.maximumf %429, %431 : vector<1x32xf32>
    %433 = vector.broadcast %cst_150 : f32 to vector<1x32xf32>
    %434 = arith.subf %429, %433 : vector<1x32xf32>
    %435 = arith.cmpf one, %434, %434 : vector<1x32xf32>
    %436 = vector.broadcast %cst_150 : f32 to vector<1x32xf32>
    %437 = arith.addf %429, %436 : vector<1x32xf32>
    %438 = math.absf %434 : vector<1x32xf32>
    %cst_151 = arith.constant 0.000000e+00 : f32
    %439 = vector.broadcast %cst_151 : f32 to vector<1x32xf32>
    %440 = arith.subf %439, %438 : vector<1x32xf32>
    %441 = math.exp %440 : vector<1x32xf32>
    %442 = math.log1p %441 : vector<1x32xf32>
    %443 = arith.addf %432, %442 : vector<1x32xf32>
    %444 = arith.select %435, %437, %443 : vector<1x32xi1>, vector<1x32xf32>
    %445 = arith.mulf %430, %444 : vector<1x32xf32>
    %446 = arith.addf %428, %445 : vector<1x32xf32>
    %447 = math.log %444 : vector<1x32xf32>
    %cst_152 = arith.constant -0.918938517 : f32
    %448 = vector.broadcast %cst_152 : f32 to vector<1x32xf32>
    %449 = arith.subf %448, %447 : vector<1x32xf32>
    %450 = arith.mulf %430, %430 : vector<1x32xf32>
    %cst_153 = arith.constant 5.000000e-01 : f32
    %451 = vector.broadcast %cst_153 : f32 to vector<1x32xf32>
    %452 = arith.mulf %451, %450 : vector<1x32xf32>
    %453 = arith.subf %449, %452 : vector<1x32xf32>
    %454 = vector.shape_cast %453 : vector<1x32xf32> to vector<1x1x32xf32>
    %cst_154 = arith.constant dense<0.000000e+00> : vector<1xf32>
    %455 = vector.multi_reduction <add>, %454, %cst_154 [1, 2] : vector<1x1x32xf32> to vector<1xf32>
    %456 = vector.shape_cast %455 : vector<1xf32> to vector<1x1x1xf32>
    %457 = vector.extract %456[0, 0, 0] : f32 from vector<1x1x1xf32>
    %458 = arith.mulf %446, %446 : vector<1x32xf32>
    %cst_155 = arith.constant 5.000000e-01 : f32
    %459 = vector.broadcast %cst_155 : f32 to vector<1x32xf32>
    %460 = arith.mulf %458, %459 : vector<1x32xf32>
    %cst_156 = arith.constant -0.918938517 : f32
    %461 = vector.broadcast %cst_156 : f32 to vector<1x32xf32>
    %462 = arith.subf %461, %460 : vector<1x32xf32>
    %cst_157 = arith.constant 8.000000e+04 : f32
    %463 = vector.broadcast %cst_157 : f32 to vector<1x32xf32>
    %464 = arith.mulf %458, %463 : vector<1x32xf32>
    %cst_158 = arith.constant 5.07252598 : f32
    %465 = vector.broadcast %cst_158 : f32 to vector<1x32xf32>
    %466 = arith.subf %465, %464 : vector<1x32xf32>
    %cst_159 = arith.constant -0.693147182 : f32
    %467 = vector.broadcast %cst_159 : f32 to vector<1x32xf32>
    %468 = arith.addf %467, %462 : vector<1x32xf32>
    %cst_160 = arith.constant -0.693147182 : f32
    %469 = vector.broadcast %cst_160 : f32 to vector<1x32xf32>
    %470 = arith.addf %469, %466 : vector<1x32xf32>
    %471 = arith.maximumf %468, %470 : vector<1x32xf32>
    %472 = arith.subf %468, %470 : vector<1x32xf32>
    %473 = arith.cmpf one, %472, %472 : vector<1x32xf32>
    %474 = arith.addf %468, %470 : vector<1x32xf32>
    %475 = math.absf %472 : vector<1x32xf32>
    %cst_161 = arith.constant 0.000000e+00 : f32
    %476 = vector.broadcast %cst_161 : f32 to vector<1x32xf32>
    %477 = arith.subf %476, %475 : vector<1x32xf32>
    %478 = math.exp %477 : vector<1x32xf32>
    %479 = math.log1p %478 : vector<1x32xf32>
    %480 = arith.addf %471, %479 : vector<1x32xf32>
    %481 = arith.select %473, %474, %480 : vector<1x32xi1>, vector<1x32xf32>
    %482 = vector.shape_cast %481 : vector<1x32xf32> to vector<1x1x32xf32>
    %cst_162 = arith.constant dense<0.000000e+00> : vector<1xf32>
    %483 = vector.multi_reduction <add>, %482, %cst_162 [1, 2] : vector<1x1x32xf32> to vector<1xf32>
    %484 = vector.shape_cast %483 : vector<1xf32> to vector<1x1x1xf32>
    %485 = vector.extract %484[0, 0, 0] : f32 from vector<1x1x1xf32>
    %486 = arith.subf %457, %485 : f32
    %487 = arith.addf %365, %427 : f32
    %488 = arith.addf %487, %486 : f32
    %489 = tpu.transpose %387, [1, 0] : vector<32x32xf32> -> vector<32x32xf32>
    %c0_163 = arith.constant 0 : index
    %c0_164 = arith.constant 0 : index
    %490 = vector.load %arg43[%c0_163, %c0_164] : memref<32x32xf32, #tpu.memory_space<vmem>>, vector<32x32xf32>
    tpu.vector_store %arg43[%c0_163, %c0_164], %489 {strides = array<i32>} : memref<32x32xf32, #tpu.memory_space<vmem>>, vector<32x32xf32>,
    %c0_165 = arith.constant 0 : index
    %c0_166 = arith.constant 0 : index
    %491 = vector.load %arg44[%c0_165, %c0_166] : memref<1x32xf32, #tpu.memory_space<vmem>>, vector<1x32xf32>
    tpu.vector_store %arg44[%c0_165, %c0_166], %446 {strides = array<i32>} : memref<1x32xf32, #tpu.memory_space<vmem>>, vector<1x32xf32>,
    %c0_167 = arith.constant 0 : index
    %c0_168 = arith.constant 0 : index
    %492 = vector.load %arg25[%c0_167, %c0_168] : memref<32x32xf32, #tpu.memory_space<vmem>>, vector<32x32xf32>
    %c0_169 = arith.constant 0 : index
    %c0_170 = arith.constant 0 : index
    %493 = vector.load %arg26[%c0_169, %c0_170] : memref<32x32xf32, #tpu.memory_space<vmem>>, vector<32x32xf32>
    %c0_171 = arith.constant 0 : index
    %c0_172 = arith.constant 0 : index
    %494 = vector.load %arg27[%c0_171, %c0_172] : memref<32x32xf32, #tpu.memory_space<vmem>>, vector<32x32xf32>
    %cst_173 = arith.constant 0.000000e+00 : f32
    %495 = vector.broadcast %cst_173 : f32 to vector<32x32xf32>
    %496 = arith.maximumf %493, %495 : vector<32x32xf32>
    %497 = vector.broadcast %cst_173 : f32 to vector<32x32xf32>
    %498 = arith.subf %493, %497 : vector<32x32xf32>
    %499 = arith.cmpf one, %498, %498 : vector<32x32xf32>
    %500 = vector.broadcast %cst_173 : f32 to vector<32x32xf32>
    %501 = arith.addf %493, %500 : vector<32x32xf32>
    %502 = math.absf %498 : vector<32x32xf32>
    %cst_174 = arith.constant 0.000000e+00 : f32
    %503 = vector.broadcast %cst_174 : f32 to vector<32x32xf32>
    %504 = arith.subf %503, %502 : vector<32x32xf32>
    %505 = math.exp %504 : vector<32x32xf32>
    %506 = math.log1p %505 : vector<32x32xf32>
    %507 = arith.addf %496, %506 : vector<32x32xf32>
    %508 = arith.select %499, %501, %507 : vector<32x32xi1>, vector<32x32xf32>
    %509 = arith.mulf %494, %508 : vector<32x32xf32>
    %510 = arith.addf %492, %509 : vector<32x32xf32>
    %511 = math.log %508 : vector<32x32xf32>
    %cst_175 = arith.constant -0.918938517 : f32
    %512 = vector.broadcast %cst_175 : f32 to vector<32x32xf32>
    %513 = arith.subf %512, %511 : vector<32x32xf32>
    %514 = arith.mulf %494, %494 : vector<32x32xf32>
    %cst_176 = arith.constant 5.000000e-01 : f32
    %515 = vector.broadcast %cst_176 : f32 to vector<32x32xf32>
    %516 = arith.mulf %515, %514 : vector<32x32xf32>
    %517 = arith.subf %513, %516 : vector<32x32xf32>
    %518 = vector.shape_cast %517 : vector<32x32xf32> to vector<1x32x32xf32>
    %cst_177 = arith.constant dense<0.000000e+00> : vector<1xf32>
    %519 = vector.multi_reduction <add>, %518, %cst_177 [1, 2] : vector<1x32x32xf32> to vector<1xf32>
    %520 = vector.shape_cast %519 : vector<1xf32> to vector<1x1x1xf32>
    %521 = vector.extract %520[0, 0, 0] : f32 from vector<1x1x1xf32>
    %522 = arith.mulf %510, %510 : vector<32x32xf32>
    %cst_178 = arith.constant 5.000000e-01 : f32
    %523 = vector.broadcast %cst_178 : f32 to vector<32x32xf32>
    %524 = arith.mulf %522, %523 : vector<32x32xf32>
    %cst_179 = arith.constant -0.918938517 : f32
    %525 = vector.broadcast %cst_179 : f32 to vector<32x32xf32>
    %526 = arith.subf %525, %524 : vector<32x32xf32>
    %cst_180 = arith.constant 8.000000e+04 : f32
    %527 = vector.broadcast %cst_180 : f32 to vector<32x32xf32>
    %528 = arith.mulf %522, %527 : vector<32x32xf32>
    %cst_181 = arith.constant 5.07252598 : f32
    %529 = vector.broadcast %cst_181 : f32 to vector<32x32xf32>
    %530 = arith.subf %529, %528 : vector<32x32xf32>
    %cst_182 = arith.constant -0.693147182 : f32
    %531 = vector.broadcast %cst_182 : f32 to vector<32x32xf32>
    %532 = arith.addf %531, %526 : vector<32x32xf32>
    %cst_183 = arith.constant -0.693147182 : f32
    %533 = vector.broadcast %cst_183 : f32 to vector<32x32xf32>
    %534 = arith.addf %533, %530 : vector<32x32xf32>
    %535 = arith.maximumf %532, %534 : vector<32x32xf32>
    %536 = arith.subf %532, %534 : vector<32x32xf32>
    %537 = arith.cmpf one, %536, %536 : vector<32x32xf32>
    %538 = arith.addf %532, %534 : vector<32x32xf32>
    %539 = math.absf %536 : vector<32x32xf32>
    %cst_184 = arith.constant 0.000000e+00 : f32
    %540 = vector.broadcast %cst_184 : f32 to vector<32x32xf32>
    %541 = arith.subf %540, %539 : vector<32x32xf32>
    %542 = math.exp %541 : vector<32x32xf32>
    %543 = math.log1p %542 : vector<32x32xf32>
    %544 = arith.addf %535, %543 : vector<32x32xf32>
    %545 = arith.select %537, %538, %544 : vector<32x32xi1>, vector<32x32xf32>
    %546 = vector.shape_cast %545 : vector<32x32xf32> to vector<1x32x32xf32>
    %cst_185 = arith.constant dense<0.000000e+00> : vector<1xf32>
    %547 = vector.multi_reduction <add>, %546, %cst_185 [1, 2] : vector<1x32x32xf32> to vector<1xf32>
    %548 = vector.shape_cast %547 : vector<1xf32> to vector<1x1x1xf32>
    %549 = vector.extract %548[0, 0, 0] : f32 from vector<1x1x1xf32>
    %550 = arith.subf %521, %549 : f32
    %c0_186 = arith.constant 0 : index
    %c0_187 = arith.constant 0 : index
    %551 = vector.load %arg28[%c0_186, %c0_187] : memref<1x32xf32, #tpu.memory_space<vmem>>, vector<1x32xf32>
    %c0_188 = arith.constant 0 : index
    %c0_189 = arith.constant 0 : index
    %552 = vector.load %arg29[%c0_188, %c0_189] : memref<1x32xf32, #tpu.memory_space<vmem>>, vector<1x32xf32>
    %c0_190 = arith.constant 0 : index
    %c0_191 = arith.constant 0 : index
    %553 = vector.load %arg30[%c0_190, %c0_191] : memref<1x32xf32, #tpu.memory_space<vmem>>, vector<1x32xf32>
    %cst_192 = arith.constant 0.000000e+00 : f32
    %554 = vector.broadcast %cst_192 : f32 to vector<1x32xf32>
    %555 = arith.maximumf %552, %554 : vector<1x32xf32>
    %556 = vector.broadcast %cst_192 : f32 to vector<1x32xf32>
    %557 = arith.subf %552, %556 : vector<1x32xf32>
    %558 = arith.cmpf one, %557, %557 : vector<1x32xf32>
    %559 = vector.broadcast %cst_192 : f32 to vector<1x32xf32>
    %560 = arith.addf %552, %559 : vector<1x32xf32>
    %561 = math.absf %557 : vector<1x32xf32>
    %cst_193 = arith.constant 0.000000e+00 : f32
    %562 = vector.broadcast %cst_193 : f32 to vector<1x32xf32>
    %563 = arith.subf %562, %561 : vector<1x32xf32>
    %564 = math.exp %563 : vector<1x32xf32>
    %565 = math.log1p %564 : vector<1x32xf32>
    %566 = arith.addf %555, %565 : vector<1x32xf32>
    %567 = arith.select %558, %560, %566 : vector<1x32xi1>, vector<1x32xf32>
    %568 = arith.mulf %553, %567 : vector<1x32xf32>
    %569 = arith.addf %551, %568 : vector<1x32xf32>
    %570 = math.log %567 : vector<1x32xf32>
    %cst_194 = arith.constant -0.918938517 : f32
    %571 = vector.broadcast %cst_194 : f32 to vector<1x32xf32>
    %572 = arith.subf %571, %570 : vector<1x32xf32>
    %573 = arith.mulf %553, %553 : vector<1x32xf32>
    %cst_195 = arith.constant 5.000000e-01 : f32
    %574 = vector.broadcast %cst_195 : f32 to vector<1x32xf32>
    %575 = arith.mulf %574, %573 : vector<1x32xf32>
    %576 = arith.subf %572, %575 : vector<1x32xf32>
    %577 = vector.shape_cast %576 : vector<1x32xf32> to vector<1x1x32xf32>
    %cst_196 = arith.constant dense<0.000000e+00> : vector<1xf32>
    %578 = vector.multi_reduction <add>, %577, %cst_196 [1, 2] : vector<1x1x32xf32> to vector<1xf32>
    %579 = vector.shape_cast %578 : vector<1xf32> to vector<1x1x1xf32>
    %580 = vector.extract %579[0, 0, 0] : f32 from vector<1x1x1xf32>
    %581 = arith.mulf %569, %569 : vector<1x32xf32>
    %cst_197 = arith.constant 5.000000e-01 : f32
    %582 = vector.broadcast %cst_197 : f32 to vector<1x32xf32>
    %583 = arith.mulf %581, %582 : vector<1x32xf32>
    %cst_198 = arith.constant -0.918938517 : f32
    %584 = vector.broadcast %cst_198 : f32 to vector<1x32xf32>
    %585 = arith.subf %584, %583 : vector<1x32xf32>
    %cst_199 = arith.constant 8.000000e+04 : f32
    %586 = vector.broadcast %cst_199 : f32 to vector<1x32xf32>
    %587 = arith.mulf %581, %586 : vector<1x32xf32>
    %cst_200 = arith.constant 5.07252598 : f32
    %588 = vector.broadcast %cst_200 : f32 to vector<1x32xf32>
    %589 = arith.subf %588, %587 : vector<1x32xf32>
    %cst_201 = arith.constant -0.693147182 : f32
    %590 = vector.broadcast %cst_201 : f32 to vector<1x32xf32>
    %591 = arith.addf %590, %585 : vector<1x32xf32>
    %cst_202 = arith.constant -0.693147182 : f32
    %592 = vector.broadcast %cst_202 : f32 to vector<1x32xf32>
    %593 = arith.addf %592, %589 : vector<1x32xf32>
    %594 = arith.maximumf %591, %593 : vector<1x32xf32>
    %595 = arith.subf %591, %593 : vector<1x32xf32>
    %596 = arith.cmpf one, %595, %595 : vector<1x32xf32>
    %597 = arith.addf %591, %593 : vector<1x32xf32>
    %598 = math.absf %595 : vector<1x32xf32>
    %cst_203 = arith.constant 0.000000e+00 : f32
    %599 = vector.broadcast %cst_203 : f32 to vector<1x32xf32>
    %600 = arith.subf %599, %598 : vector<1x32xf32>
    %601 = math.exp %600 : vector<1x32xf32>
    %602 = math.log1p %601 : vector<1x32xf32>
    %603 = arith.addf %594, %602 : vector<1x32xf32>
    %604 = arith.select %596, %597, %603 : vector<1x32xi1>, vector<1x32xf32>
    %605 = vector.shape_cast %604 : vector<1x32xf32> to vector<1x1x32xf32>
    %cst_204 = arith.constant dense<0.000000e+00> : vector<1xf32>
    %606 = vector.multi_reduction <add>, %605, %cst_204 [1, 2] : vector<1x1x32xf32> to vector<1xf32>
    %607 = vector.shape_cast %606 : vector<1xf32> to vector<1x1x1xf32>
    %608 = vector.extract %607[0, 0, 0] : f32 from vector<1x1x1xf32>
    %609 = arith.subf %580, %608 : f32
    %610 = arith.addf %488, %550 : f32
    %611 = arith.addf %610, %609 : f32
    %612 = tpu.transpose %510, [1, 0] : vector<32x32xf32> -> vector<32x32xf32>
    %c0_205 = arith.constant 0 : index
    %c0_206 = arith.constant 0 : index
    %613 = vector.load %arg45[%c0_205, %c0_206] : memref<32x32xf32, #tpu.memory_space<vmem>>, vector<32x32xf32>
    tpu.vector_store %arg45[%c0_205, %c0_206], %612 {strides = array<i32>} : memref<32x32xf32, #tpu.memory_space<vmem>>, vector<32x32xf32>,
    %c0_207 = arith.constant 0 : index
    %c0_208 = arith.constant 0 : index
    %614 = vector.load %arg46[%c0_207, %c0_208] : memref<1x32xf32, #tpu.memory_space<vmem>>, vector<1x32xf32>
    tpu.vector_store %arg46[%c0_207, %c0_208], %569 {strides = array<i32>} : memref<1x32xf32, #tpu.memory_space<vmem>>, vector<1x32xf32>,
    %c0_209 = arith.constant 0 : index
    %c0_210 = arith.constant 0 : index
    %615 = vector.load %arg31[%c0_209, %c0_210] : memref<4x32xf32, #tpu.memory_space<vmem>>, vector<4x32xf32>
    %c0_211 = arith.constant 0 : index
    %c0_212 = arith.constant 0 : index
    %616 = vector.load %arg32[%c0_211, %c0_212] : memref<4x32xf32, #tpu.memory_space<vmem>>, vector<4x32xf32>
    %c0_213 = arith.constant 0 : index
    %c0_214 = arith.constant 0 : index
    %617 = vector.load %arg33[%c0_213, %c0_214] : memref<4x32xf32, #tpu.memory_space<vmem>>, vector<4x32xf32>
    %cst_215 = arith.constant 0.000000e+00 : f32
    %618 = vector.broadcast %cst_215 : f32 to vector<4x32xf32>
    %619 = arith.maximumf %616, %618 : vector<4x32xf32>
    %620 = vector.broadcast %cst_215 : f32 to vector<4x32xf32>
    %621 = arith.subf %616, %620 : vector<4x32xf32>
    %622 = arith.cmpf one, %621, %621 : vector<4x32xf32>
    %623 = vector.broadcast %cst_215 : f32 to vector<4x32xf32>
    %624 = arith.addf %616, %623 : vector<4x32xf32>
    %625 = math.absf %621 : vector<4x32xf32>
    %cst_216 = arith.constant 0.000000e+00 : f32
    %626 = vector.broadcast %cst_216 : f32 to vector<4x32xf32>
    %627 = arith.subf %626, %625 : vector<4x32xf32>
    %628 = math.exp %627 : vector<4x32xf32>
    %629 = math.log1p %628 : vector<4x32xf32>
    %630 = arith.addf %619, %629 : vector<4x32xf32>
    %631 = arith.select %622, %624, %630 : vector<4x32xi1>, vector<4x32xf32>
    %632 = arith.mulf %617, %631 : vector<4x32xf32>
    %633 = arith.addf %615, %632 : vector<4x32xf32>
    %634 = math.log %631 : vector<4x32xf32>
    %cst_217 = arith.constant -0.918938517 : f32
    %635 = vector.broadcast %cst_217 : f32 to vector<4x32xf32>
    %636 = arith.subf %635, %634 : vector<4x32xf32>
    %637 = arith.mulf %617, %617 : vector<4x32xf32>
    %cst_218 = arith.constant 5.000000e-01 : f32
    %638 = vector.broadcast %cst_218 : f32 to vector<4x32xf32>
    %639 = arith.mulf %638, %637 : vector<4x32xf32>
    %640 = arith.subf %636, %639 : vector<4x32xf32>
    %641 = vector.shape_cast %640 : vector<4x32xf32> to vector<1x4x32xf32>
    %cst_219 = arith.constant dense<0.000000e+00> : vector<1xf32>
    %642 = vector.multi_reduction <add>, %641, %cst_219 [1, 2] : vector<1x4x32xf32> to vector<1xf32>
    %643 = vector.shape_cast %642 : vector<1xf32> to vector<1x1x1xf32>
    %644 = vector.extract %643[0, 0, 0] : f32 from vector<1x1x1xf32>
    %645 = arith.mulf %633, %633 : vector<4x32xf32>
    %cst_220 = arith.constant 5.000000e-01 : f32
    %646 = vector.broadcast %cst_220 : f32 to vector<4x32xf32>
    %647 = arith.mulf %645, %646 : vector<4x32xf32>
    %cst_221 = arith.constant -0.918938517 : f32
    %648 = vector.broadcast %cst_221 : f32 to vector<4x32xf32>
    %649 = arith.subf %648, %647 : vector<4x32xf32>
    %cst_222 = arith.constant 8.000000e+04 : f32
    %650 = vector.broadcast %cst_222 : f32 to vector<4x32xf32>
    %651 = arith.mulf %645, %650 : vector<4x32xf32>
    %cst_223 = arith.constant 5.07252598 : f32
    %652 = vector.broadcast %cst_223 : f32 to vector<4x32xf32>
    %653 = arith.subf %652, %651 : vector<4x32xf32>
    %cst_224 = arith.constant -0.693147182 : f32
    %654 = vector.broadcast %cst_224 : f32 to vector<4x32xf32>
    %655 = arith.addf %654, %649 : vector<4x32xf32>
    %cst_225 = arith.constant -0.693147182 : f32
    %656 = vector.broadcast %cst_225 : f32 to vector<4x32xf32>
    %657 = arith.addf %656, %653 : vector<4x32xf32>
    %658 = arith.maximumf %655, %657 : vector<4x32xf32>
    %659 = arith.subf %655, %657 : vector<4x32xf32>
    %660 = arith.cmpf one, %659, %659 : vector<4x32xf32>
    %661 = arith.addf %655, %657 : vector<4x32xf32>
    %662 = math.absf %659 : vector<4x32xf32>
    %cst_226 = arith.constant 0.000000e+00 : f32
    %663 = vector.broadcast %cst_226 : f32 to vector<4x32xf32>
    %664 = arith.subf %663, %662 : vector<4x32xf32>
    %665 = math.exp %664 : vector<4x32xf32>
    %666 = math.log1p %665 : vector<4x32xf32>
    %667 = arith.addf %658, %666 : vector<4x32xf32>
    %668 = arith.select %660, %661, %667 : vector<4x32xi1>, vector<4x32xf32>
    %669 = vector.shape_cast %668 : vector<4x32xf32> to vector<1x4x32xf32>
    %cst_227 = arith.constant dense<0.000000e+00> : vector<1xf32>
    %670 = vector.multi_reduction <add>, %669, %cst_227 [1, 2] : vector<1x4x32xf32> to vector<1xf32>
    %671 = vector.shape_cast %670 : vector<1xf32> to vector<1x1x1xf32>
    %672 = vector.extract %671[0, 0, 0] : f32 from vector<1x1x1xf32>
    %673 = arith.subf %644, %672 : f32
    %c0_228 = arith.constant 0 : index
    %c0_229 = arith.constant 0 : index
    %674 = vector.load %arg34[%c0_228, %c0_229] : memref<1x4xf32, #tpu.memory_space<vmem>>, vector<1x4xf32>
    %c0_230 = arith.constant 0 : index
    %c0_231 = arith.constant 0 : index
    %675 = vector.load %arg35[%c0_230, %c0_231] : memref<1x4xf32, #tpu.memory_space<vmem>>, vector<1x4xf32>
    %c0_232 = arith.constant 0 : index
    %c0_233 = arith.constant 0 : index
    %676 = vector.load %arg36[%c0_232, %c0_233] : memref<1x4xf32, #tpu.memory_space<vmem>>, vector<1x4xf32>
    %cst_234 = arith.constant 0.000000e+00 : f32
    %677 = vector.broadcast %cst_234 : f32 to vector<1x4xf32>
    %678 = arith.maximumf %675, %677 : vector<1x4xf32>
    %679 = vector.broadcast %cst_234 : f32 to vector<1x4xf32>
    %680 = arith.subf %675, %679 : vector<1x4xf32>
    %681 = arith.cmpf one, %680, %680 : vector<1x4xf32>
    %682 = vector.broadcast %cst_234 : f32 to vector<1x4xf32>
    %683 = arith.addf %675, %682 : vector<1x4xf32>
    %684 = math.absf %680 : vector<1x4xf32>
    %cst_235 = arith.constant 0.000000e+00 : f32
    %685 = vector.broadcast %cst_235 : f32 to vector<1x4xf32>
    %686 = arith.subf %685, %684 : vector<1x4xf32>
    %687 = math.exp %686 : vector<1x4xf32>
    %688 = math.log1p %687 : vector<1x4xf32>
    %689 = arith.addf %678, %688 : vector<1x4xf32>
    %690 = arith.select %681, %683, %689 : vector<1x4xi1>, vector<1x4xf32>
    %691 = arith.mulf %676, %690 : vector<1x4xf32>
    %692 = arith.addf %674, %691 : vector<1x4xf32>
    %693 = math.log %690 : vector<1x4xf32>
    %cst_236 = arith.constant -0.918938517 : f32
    %694 = vector.broadcast %cst_236 : f32 to vector<1x4xf32>
    %695 = arith.subf %694, %693 : vector<1x4xf32>
    %696 = arith.mulf %676, %676 : vector<1x4xf32>
    %cst_237 = arith.constant 5.000000e-01 : f32
    %697 = vector.broadcast %cst_237 : f32 to vector<1x4xf32>
    %698 = arith.mulf %697, %696 : vector<1x4xf32>
    %699 = arith.subf %695, %698 : vector<1x4xf32>
    %700 = vector.shape_cast %699 : vector<1x4xf32> to vector<1x1x4xf32>
    %cst_238 = arith.constant dense<0.000000e+00> : vector<1xf32>
    %701 = vector.multi_reduction <add>, %700, %cst_238 [1, 2] : vector<1x1x4xf32> to vector<1xf32>
    %702 = vector.shape_cast %701 : vector<1xf32> to vector<1x1x1xf32>
    %703 = vector.extract %702[0, 0, 0] : f32 from vector<1x1x1xf32>
    %704 = arith.mulf %692, %692 : vector<1x4xf32>
    %cst_239 = arith.constant 5.000000e-01 : f32
    %705 = vector.broadcast %cst_239 : f32 to vector<1x4xf32>
    %706 = arith.mulf %704, %705 : vector<1x4xf32>
    %cst_240 = arith.constant -0.918938517 : f32
    %707 = vector.broadcast %cst_240 : f32 to vector<1x4xf32>
    %708 = arith.subf %707, %706 : vector<1x4xf32>
    %cst_241 = arith.constant 8.000000e+04 : f32
    %709 = vector.broadcast %cst_241 : f32 to vector<1x4xf32>
    %710 = arith.mulf %704, %709 : vector<1x4xf32>
    %cst_242 = arith.constant 5.07252598 : f32
    %711 = vector.broadcast %cst_242 : f32 to vector<1x4xf32>
    %712 = arith.subf %711, %710 : vector<1x4xf32>
    %cst_243 = arith.constant -0.693147182 : f32
    %713 = vector.broadcast %cst_243 : f32 to vector<1x4xf32>
    %714 = arith.addf %713, %708 : vector<1x4xf32>
    %cst_244 = arith.constant -0.693147182 : f32
    %715 = vector.broadcast %cst_244 : f32 to vector<1x4xf32>
    %716 = arith.addf %715, %712 : vector<1x4xf32>
    %717 = arith.maximumf %714, %716 : vector<1x4xf32>
    %718 = arith.subf %714, %716 : vector<1x4xf32>
    %719 = arith.cmpf one, %718, %718 : vector<1x4xf32>
    %720 = arith.addf %714, %716 : vector<1x4xf32>
    %721 = math.absf %718 : vector<1x4xf32>
    %cst_245 = arith.constant 0.000000e+00 : f32
    %722 = vector.broadcast %cst_245 : f32 to vector<1x4xf32>
    %723 = arith.subf %722, %721 : vector<1x4xf32>
    %724 = math.exp %723 : vector<1x4xf32>
    %725 = math.log1p %724 : vector<1x4xf32>
    %726 = arith.addf %717, %725 : vector<1x4xf32>
    %727 = arith.select %719, %720, %726 : vector<1x4xi1>, vector<1x4xf32>
    %728 = vector.shape_cast %727 : vector<1x4xf32> to vector<1x1x4xf32>
    %cst_246 = arith.constant dense<0.000000e+00> : vector<1xf32>
    %729 = vector.multi_reduction <add>, %728, %cst_246 [1, 2] : vector<1x1x4xf32> to vector<1xf32>
    %730 = vector.shape_cast %729 : vector<1xf32> to vector<1x1x1xf32>
    %731 = vector.extract %730[0, 0, 0] : f32 from vector<1x1x1xf32>
    %732 = arith.subf %703, %731 : f32
    %733 = arith.addf %611, %673 : f32
    %734 = arith.addf %733, %732 : f32
    %735 = tpu.transpose %633, [1, 0] : vector<4x32xf32> -> vector<32x4xf32>
    %c0_247 = arith.constant 0 : index
    %c0_248 = arith.constant 0 : index
    %736 = vector.load %arg47[%c0_247, %c0_248] : memref<32x4xf32, #tpu.memory_space<vmem>>, vector<32x4xf32>
    tpu.vector_store %arg47[%c0_247, %c0_248], %735 {strides = array<i32>} : memref<32x4xf32, #tpu.memory_space<vmem>>, vector<32x4xf32>,
    %c0_249 = arith.constant 0 : index
    %c0_250 = arith.constant 0 : index
    %737 = vector.load %arg48[%c0_249, %c0_250] : memref<1x4xf32, #tpu.memory_space<vmem>>, vector<1x4xf32>
    tpu.vector_store %arg48[%c0_249, %c0_250], %692 {strides = array<i32>} : memref<1x4xf32, #tpu.memory_space<vmem>>, vector<1x4xf32>,
    %c0_251 = arith.constant 0 : index
    %c0_252 = arith.constant 0 : index
    %738 = memref.load %arg49[%c0_251, %c0_252] : memref<1x1xf32, #tpu.memory_space<smem>>
    memref.store %734, %arg49[%c0_251, %c0_252] : memref<1x1xf32, #tpu.memory_space<smem>>
    return
  }
  func.func @transform_0(%arg0: i32) -> (i32, i32) {
    %c0_i32 = arith.constant 0 : i32
    %c0_i32_0 = arith.constant 0 : i32
    %c0_i32_1 = arith.constant 0 : i32
    return %c0_i32, %c0_i32_0 : i32, i32
  }
  func.func @transform_1(%arg0: i32) -> (i32, i32) {
    %c0_i32 = arith.constant 0 : i32
    %c0_i32_0 = arith.constant 0 : i32
    %c0_i32_1 = arith.constant 0 : i32
    return %c0_i32, %c0_i32_0 : i32, i32
  }
  func.func @transform_2(%arg0: i32) -> (i32, i32) {
    %c0_i32 = arith.constant 0 : i32
    %c0_i32_0 = arith.constant 0 : i32
    %c0_i32_1 = arith.constant 0 : i32
    return %c0_i32, %c0_i32_0 : i32, i32
  }
  func.func @transform_3(%arg0: i32) -> (i32, i32) {
    %c0_i32 = arith.constant 0 : i32
    %c0_i32_0 = arith.constant 0 : i32
    %c0_i32_1 = arith.constant 0 : i32
    return %c0_i32, %c0_i32_0 : i32, i32
  }
  func.func @transform_4(%arg0: i32) -> (i32, i32) {
    %c0_i32 = arith.constant 0 : i32
    %c0_i32_0 = arith.constant 0 : i32
    %c0_i32_1 = arith.constant 0 : i32
    return %c0_i32, %c0_i32_0 : i32, i32
  }
  func.func @transform_5(%arg0: i32) -> (i32, i32) {
    %c0_i32 = arith.constant 0 : i32
    %c0_i32_0 = arith.constant 0 : i32
    %c0_i32_1 = arith.constant 0 : i32
    return %c0_i32, %c0_i32_0 : i32, i32
  }
  func.func @transform_6(%arg0: i32) -> (i32, i32) {
    %c0_i32 = arith.constant 0 : i32
    %c0_i32_0 = arith.constant 0 : i32
    %c0_i32_1 = arith.constant 0 : i32
    return %c0_i32, %c0_i32_0 : i32, i32
  }
  func.func @transform_7(%arg0: i32) -> (i32, i32) {
    %c0_i32 = arith.constant 0 : i32
    %c0_i32_0 = arith.constant 0 : i32
    %c0_i32_1 = arith.constant 0 : i32
    return %c0_i32, %c0_i32_0 : i32, i32
  }
  func.func @transform_8(%arg0: i32) -> (i32, i32) {
    %c0_i32 = arith.constant 0 : i32
    %c0_i32_0 = arith.constant 0 : i32
    %c0_i32_1 = arith.constant 0 : i32
    return %c0_i32, %c0_i32_0 : i32, i32
  }
  func.func @transform_9(%arg0: i32) -> (i32, i32) {
    %c0_i32 = arith.constant 0 : i32
    %c0_i32_0 = arith.constant 0 : i32
    %c0_i32_1 = arith.constant 0 : i32
    return %c0_i32, %c0_i32_0 : i32, i32
  }
  func.func @transform_10(%arg0: i32) -> (i32, i32) {
    %c0_i32 = arith.constant 0 : i32
    %c0_i32_0 = arith.constant 0 : i32
    %c0_i32_1 = arith.constant 0 : i32
    return %c0_i32, %c0_i32_0 : i32, i32
  }
  func.func @transform_11(%arg0: i32) -> (i32, i32) {
    %c0_i32 = arith.constant 0 : i32
    %c0_i32_0 = arith.constant 0 : i32
    %c0_i32_1 = arith.constant 0 : i32
    return %c0_i32, %c0_i32_0 : i32, i32
  }
  func.func @transform_12(%arg0: i32) -> (i32, i32) {
    %c0_i32 = arith.constant 0 : i32
    %c0_i32_0 = arith.constant 0 : i32
    %c0_i32_1 = arith.constant 0 : i32
    return %c0_i32, %c0_i32_0 : i32, i32
  }
  func.func @transform_13(%arg0: i32) -> (i32, i32) {
    %c0_i32 = arith.constant 0 : i32
    %c0_i32_0 = arith.constant 0 : i32
    %c0_i32_1 = arith.constant 0 : i32
    return %c0_i32, %c0_i32_0 : i32, i32
  }
  func.func @transform_14(%arg0: i32) -> (i32, i32) {
    %c0_i32 = arith.constant 0 : i32
    %c0_i32_0 = arith.constant 0 : i32
    %c0_i32_1 = arith.constant 0 : i32
    return %c0_i32, %c0_i32_0 : i32, i32
  }
  func.func @transform_15(%arg0: i32) -> (i32, i32) {
    %c0_i32 = arith.constant 0 : i32
    %c0_i32_0 = arith.constant 0 : i32
    %c0_i32_1 = arith.constant 0 : i32
    return %c0_i32, %c0_i32_0 : i32, i32
  }
  func.func @transform_16(%arg0: i32) -> (i32, i32) {
    %c0_i32 = arith.constant 0 : i32
    %c0_i32_0 = arith.constant 0 : i32
    %c0_i32_1 = arith.constant 0 : i32
    return %c0_i32, %c0_i32_0 : i32, i32
  }
  func.func @transform_17(%arg0: i32) -> (i32, i32) {
    %c0_i32 = arith.constant 0 : i32
    %c0_i32_0 = arith.constant 0 : i32
    %c0_i32_1 = arith.constant 0 : i32
    return %c0_i32, %c0_i32_0 : i32, i32
  }
  func.func @transform_18(%arg0: i32) -> (i32, i32) {
    %c0_i32 = arith.constant 0 : i32
    %c0_i32_0 = arith.constant 0 : i32
    %c0_i32_1 = arith.constant 0 : i32
    return %c0_i32, %c0_i32_0 : i32, i32
  }
  func.func @transform_19(%arg0: i32) -> (i32, i32) {
    %c0_i32 = arith.constant 0 : i32
    %c0_i32_0 = arith.constant 0 : i32
    %c0_i32_1 = arith.constant 0 : i32
    return %c0_i32, %c0_i32_0 : i32, i32
  }
  func.func @transform_20(%arg0: i32) -> (i32, i32) {
    %c0_i32 = arith.constant 0 : i32
    %c0_i32_0 = arith.constant 0 : i32
    %c0_i32_1 = arith.constant 0 : i32
    return %c0_i32, %c0_i32_0 : i32, i32
  }
  func.func @transform_21(%arg0: i32) -> (i32, i32) {
    %c0_i32 = arith.constant 0 : i32
    %c0_i32_0 = arith.constant 0 : i32
    %c0_i32_1 = arith.constant 0 : i32
    return %c0_i32, %c0_i32_0 : i32, i32
  }
  func.func @transform_22(%arg0: i32) -> (i32, i32) {
    %c0_i32 = arith.constant 0 : i32
    %c0_i32_0 = arith.constant 0 : i32
    %c0_i32_1 = arith.constant 0 : i32
    return %c0_i32, %c0_i32_0 : i32, i32
  }
  func.func @transform_23(%arg0: i32) -> (i32, i32) {
    %c0_i32 = arith.constant 0 : i32
    %c0_i32_0 = arith.constant 0 : i32
    %c0_i32_1 = arith.constant 0 : i32
    return %c0_i32, %c0_i32_0 : i32, i32
  }
  func.func @transform_24(%arg0: i32) -> (i32, i32) {
    %c0_i32 = arith.constant 0 : i32
    %c0_i32_0 = arith.constant 0 : i32
    %c0_i32_1 = arith.constant 0 : i32
    return %c0_i32, %c0_i32_0 : i32, i32
  }
  func.func @transform_25(%arg0: i32) -> (i32, i32) {
    %c0_i32 = arith.constant 0 : i32
    %c0_i32_0 = arith.constant 0 : i32
    %c0_i32_1 = arith.constant 0 : i32
    return %c0_i32, %c0_i32_0 : i32, i32
  }
  func.func @transform_26(%arg0: i32) -> (i32, i32) {
    %c0_i32 = arith.constant 0 : i32
    %c0_i32_0 = arith.constant 0 : i32
    %c0_i32_1 = arith.constant 0 : i32
    return %c0_i32, %c0_i32_0 : i32, i32
  }
  func.func @transform_27(%arg0: i32) -> (i32, i32) {
    %c0_i32 = arith.constant 0 : i32
    %c0_i32_0 = arith.constant 0 : i32
    %c0_i32_1 = arith.constant 0 : i32
    return %c0_i32, %c0_i32_0 : i32, i32
  }
  func.func @transform_28(%arg0: i32) -> (i32, i32) {
    %c0_i32 = arith.constant 0 : i32
    %c0_i32_0 = arith.constant 0 : i32
    %c0_i32_1 = arith.constant 0 : i32
    return %c0_i32, %c0_i32_0 : i32, i32
  }
  func.func @transform_29(%arg0: i32) -> (i32, i32) {
    %c0_i32 = arith.constant 0 : i32
    %c0_i32_0 = arith.constant 0 : i32
    %c0_i32_1 = arith.constant 0 : i32
    return %c0_i32, %c0_i32_0 : i32, i32
  }
  func.func @transform_30(%arg0: i32) -> (i32, i32) {
    %c0_i32 = arith.constant 0 : i32
    %c0_i32_0 = arith.constant 0 : i32
    %c0_i32_1 = arith.constant 0 : i32
    return %c0_i32, %c0_i32_0 : i32, i32
  }
  func.func @transform_31(%arg0: i32) -> (i32, i32) {
    %c0_i32 = arith.constant 0 : i32
    %c0_i32_0 = arith.constant 0 : i32
    %c0_i32_1 = arith.constant 0 : i32
    return %c0_i32, %c0_i32_0 : i32, i32
  }
  func.func @transform_32(%arg0: i32) -> (i32, i32) {
    %c0_i32 = arith.constant 0 : i32
    %c0_i32_0 = arith.constant 0 : i32
    %c0_i32_1 = arith.constant 0 : i32
    return %c0_i32, %c0_i32_0 : i32, i32
  }
  func.func @transform_33(%arg0: i32) -> (i32, i32) {
    %c0_i32 = arith.constant 0 : i32
    %c0_i32_0 = arith.constant 0 : i32
    %c0_i32_1 = arith.constant 0 : i32
    return %c0_i32, %c0_i32_0 : i32, i32
  }
  func.func @transform_34(%arg0: i32) -> (i32, i32) {
    %c0_i32 = arith.constant 0 : i32
    %c0_i32_0 = arith.constant 0 : i32
    %c0_i32_1 = arith.constant 0 : i32
    return %c0_i32, %c0_i32_0 : i32, i32
  }
  func.func @transform_35(%arg0: i32) -> (i32, i32) {
    %c0_i32 = arith.constant 0 : i32
    %c0_i32_0 = arith.constant 0 : i32
    %c0_i32_1 = arith.constant 0 : i32
    return %c0_i32, %c0_i32_0 : i32, i32
  }
  func.func @transform_36(%arg0: i32) -> (i32, i32) {
    %c0_i32 = arith.constant 0 : i32
    %c0_i32_0 = arith.constant 0 : i32
    %c0_i32_1 = arith.constant 0 : i32
    return %c0_i32, %c0_i32_0 : i32, i32
  }
  func.func @transform_37(%arg0: i32) -> (i32, i32) {
    %c0_i32 = arith.constant 0 : i32
    %c0_i32_0 = arith.constant 0 : i32
    %c0_i32_1 = arith.constant 0 : i32
    return %c0_i32, %c0_i32_0 : i32, i32
  }
  func.func @transform_38(%arg0: i32) -> (i32, i32) {
    %c0_i32 = arith.constant 0 : i32
    %c0_i32_0 = arith.constant 0 : i32
    %c0_i32_1 = arith.constant 0 : i32
    return %c0_i32, %c0_i32_0 : i32, i32
  }
  func.func @transform_39(%arg0: i32) -> (i32, i32) {
    %c0_i32 = arith.constant 0 : i32
    %c0_i32_0 = arith.constant 0 : i32
    %c0_i32_1 = arith.constant 0 : i32
    return %c0_i32, %c0_i32_0 : i32, i32
  }
  func.func @transform_40(%arg0: i32) -> (i32, i32) {
    %c0_i32 = arith.constant 0 : i32
    %c0_i32_0 = arith.constant 0 : i32
    %c0_i32_1 = arith.constant 0 : i32
    return %c0_i32, %c0_i32_0 : i32, i32
  }
  func.func @transform_41(%arg0: i32) -> (i32, i32) {
    %c0_i32 = arith.constant 0 : i32
    %c0_i32_0 = arith.constant 0 : i32
    %c0_i32_1 = arith.constant 0 : i32
    return %c0_i32, %c0_i32_0 : i32, i32
  }
  func.func @transform_42(%arg0: i32) -> (i32, i32) {
    %c0_i32 = arith.constant 0 : i32
    %c0_i32_0 = arith.constant 0 : i32
    %c0_i32_1 = arith.constant 0 : i32
    return %c0_i32, %c0_i32_0 : i32, i32
  }
  func.func @transform_43(%arg0: i32) -> (i32, i32) {
    %c0_i32 = arith.constant 0 : i32
    %c0_i32_0 = arith.constant 0 : i32
    %c0_i32_1 = arith.constant 0 : i32
    return %c0_i32, %c0_i32_0 : i32, i32
  }
  func.func @transform_44(%arg0: i32) -> (i32, i32) {
    %c0_i32 = arith.constant 0 : i32
    %c0_i32_0 = arith.constant 0 : i32
    %c0_i32_1 = arith.constant 0 : i32
    return %c0_i32, %c0_i32_0 : i32, i32
  }
  func.func @transform_45(%arg0: i32) -> (i32, i32) {
    %c0_i32 = arith.constant 0 : i32
    %c0_i32_0 = arith.constant 0 : i32
    %c0_i32_1 = arith.constant 0 : i32
    return %c0_i32, %c0_i32_0 : i32, i32
  }
  func.func @transform_46(%arg0: i32) -> (i32, i32) {
    %c0_i32 = arith.constant 0 : i32
    %c0_i32_0 = arith.constant 0 : i32
    %c0_i32_1 = arith.constant 0 : i32
    return %c0_i32, %c0_i32_0 : i32, i32
  }
  func.func @transform_47(%arg0: i32) -> (i32, i32) {
    %c0_i32 = arith.constant 0 : i32
    %c0_i32_0 = arith.constant 0 : i32
    %c0_i32_1 = arith.constant 0 : i32
    return %c0_i32, %c0_i32_0 : i32, i32
  }
  func.func @transform_48(%arg0: i32) -> (i32, i32) {
    %c0_i32 = arith.constant 0 : i32
    %c0_i32_0 = arith.constant 0 : i32
    %c0_i32_1 = arith.constant 0 : i32
    return %c0_i32, %c0_i32_0 : i32, i32
  }
}

</mosaic_0001>

<bundles_post_ra>
// kernel: bayesian_moe_forward.3
= control target key start
LH: loop header
LB: loop body
LE: loop exit
PB: predicated region body
PF: predicated region fallthrough
CT: control target
= control target key end

     0   :  { %v731_v0 = vmov 0.0|0.0   ;;  %vm732_vm0 = vmmov 0   ;;  %v733_v4 = vmov 0.0   ;;  %vm56_vm1 = vcmask 261120   ;;  %s931_s1 = inlined_call_operand.vmem [shape: f32[32,32], index: 1, kind: input, shape index: {}]   ;;  %s932_s3 = inlined_call_operand.vmem [shape: f32[32,32], index: 3, kind: input, shape index: {}]   ;;  %s933_s0 = inlined_call_operand.vmem [shape: f32[4,32], index: 0, kind: input, shape index: {}]   ;;  %s934_s5 = inlined_call_operand.vmem [shape: f32[32,32], index: 5, kind: input, shape index: {}]   ;;  %s935_s2 = inlined_call_operand.vmem [shape: f32[1,32], index: 2, kind: input, shape index: {}]   ;;  %s936_s7 = inlined_call_operand.vmem [shape: f32[32,32], index: 7, kind: input, shape index: {}]   ;;  %s937_s4 = inlined_call_operand.vmem [shape: f32[1,32], index: 4, kind: input, shape index: {}]   ;;  %s938_s9 = inlined_call_operand.vmem [shape: f32[32,32], index: 9, kind: input, shape index: {}]   ;;  %s939_s6 = inlined_call_operand.vmem [shape: f32[1,32], index: 6, kind: input, shape index: {}]   ;;  %s940_s11 = inlined_call_operand.vmem [shape: f32[32,4], index: 11, kind: input, shape index: {}]   ;;  %s941_s8 = inlined_call_operand.vmem [shape: f32[1,32], index: 8, kind: input, shape index: {}]   ;;  %s942_s10 = inlined_call_operand.vmem [shape: f32[1,32], index: 10, kind: input, shape index: {}]   ;;  %s943_s12 = inlined_call_operand.vmem [shape: f32[1,4], index: 12, kind: input, shape index: {}]   ;;  %s944_s13 = inlined_call_operand.vmem [shape: f32[4,8], index: 13, kind: output, shape index: {}]  }
   0x1   :  { %687 = vmatprep.subr.bf16.mxu0 %v731_v0  ;;  %v45_v1 = vld [vmem:[%s931_s1] sm:$0xff]  ;;  %v46_v2 = vld [vmem:[%s931_s1 + $0x8] sm:$0xff]  ;;  %v47_v3 = vld [vmem:[%s931_s1 + $0x10] sm:$0xff]  ;;  %629 = vmatprep.mubr.msk.f32.mxu0 %vm732_vm0, %v733_v4  ;;  %vm555_vm2 = vcmask 27648   ;;  %vm571_vm3 = vcmask 31744   ;;  %vm573_vm4 = vcmask 60416  }
   0x2   :  { %v688_v5 = vpack.c.bf16 %v46_v2, %v45_v1  ;;  %v48_v6 = vld [vmem:[%s931_s1 + $0x18] sm:$0xff]  ;;  %693 = vmatprep.subr.bf16.mxu1 %v731_v0  ;;  %v131_v7 = vld [vmem:[%s932_s3] sm:$0xff]  ;;  %640 = vmatprep.mubr.msk.f32.mxu1 %vm732_vm0, %v733_v4  ;;  %v132_v8 = vld [vmem:[%s932_s3 + $0x8] sm:$0xff] }
   0x3   :  { %v691_v9 = vpack.c.bf16 %v48_v6, %v47_v3  ;;  %v694_v10 = vpack.c.bf16 %v132_v8, %v131_v7  ;;  %v44_v11 = vld [vmem:[%s933_s0] sm:$0xf]  ;;  %v133_v12 = vld [vmem:[%s932_s3 + $0x10] sm:$0xff]  ;;  %v134_v13 = vld [vmem:[%s932_s3 + $0x18] sm:$0xff] }
   0x4   :  { %689 = vmatpush3.bf16.msra.mxu0 %v688_v5  ;;  %v697_v14 = vpack.c.bf16 %v134_v13, %v133_v12  ;;  %v216_v15 = vld [vmem:[%s934_s5] sm:$0xff]  ;;  %v217_v16 = vld [vmem:[%s934_s5 + $0x8] sm:$0xff]  ;;  %v218_v23 = vld [vmem:[%s934_s5 + $0x10] sm:$0xff] }
   0x5   :  { %690 = vmatprep.subr.bf16.mxu0 %v731_v0  ;;  %695 = vmatpush3.bf16.msra.mxu1 %v694_v10  ;;  %v700_v17 = vpack.c.bf16 %v217_v16, %v216_v15  ;;  %v579_v18 = vld [vmem:[%s935_s2] ss:$0 sm:$0xff]  ;;  %v219_v24 = vld [vmem:[%s934_s5 + $0x18] sm:$0xff]  ;;  %v302_v27 = vld [vmem:[%s936_s7 + $0x8] sm:$0xff] }
   0x6   :  { %696 = vmatprep.subr.bf16.mxu1 %v731_v0  ;;  %v703_v25 = vpack.c.bf16 %v219_v24, %v218_v23  ;;  %v301_v26 = vld [vmem:[%s936_s7] sm:$0xff]  ;;  %v303_v34 = vld [vmem:[%s936_s7 + $0x10] sm:$0xff]  ;;  %v304_v35 = vld [vmem:[%s936_s7 + $0x18] sm:$0xff] }
   0x7   :  { %v706_v28 = vpack.c.bf16 %v302_v27, %v301_v26  ;;  %v581_v29 = vld [vmem:[%s937_s4] ss:$0 sm:$0xff]  ;;  %v709_v36 = vpack.c.bf16 %v304_v35, %v303_v34  ;;  %v387_v38 = vld [vmem:[%s938_s9 + $0x8] sm:$0xff]  ;;  %v388_v45 = vld [vmem:[%s938_s9 + $0x10] sm:$0xff] }
   0x8   :  { %692 = vmatpush3.bf16.msra.mxu0 %v691_v9  ;;  %v386_v37 = vld [vmem:[%s938_s9] sm:$0xff]  ;;  %v389_v46 = vld [vmem:[%s938_s9 + $0x18] sm:$0xff]  ;;  %v472_v49 = vld [vmem:[%s940_s11 + $0x8] sm:$0xff] }
   0x9   :  { %699 = vmatprep.subr.bf16.mxu0 %v731_v0  ;;  %698 = vmatpush3.bf16.msra.mxu1 %v697_v14  ;;  %v712_v39 = vpack.c.bf16 %v387_v38, %v386_v37  ;;  %v583_v40 = vld [vmem:[%s939_s6] ss:$0 sm:$0xff]  ;;  %v715_v47 = vpack.c.bf16 %v389_v46, %v388_v45  ;;  %v473_v56 = vld [vmem:[%s940_s11 + $0x10] sm:$0xff]  ;;  %v474_v57 = vld [vmem:[%s940_s11 + $0x18] sm:$0xff] }
   0xa   :  { %705 = vmatprep.subr.bf16.mxu1 %v731_v0  ;;  %v471_v48 = vld [vmem:[%s940_s11] sm:$0xff]  ;;  %v721_v58 = vpack.c.bf16 %v474_v57, %v473_v56  ;;  %s734_s11 = smov 4  }
   0xb   :  { %630 = vmatmul.mubr.msk.f32.vlgmr.msra.gmra.mrb[0].mxu0 %vm56_vm1, %v44_v11  ;;  %v718_v50 = vpack.c.bf16 %v472_v49, %v471_v48  ;;  %v585_v51 = vld [vmem:[%s941_s8] ss:$0 sm:$0xff] }
   0xc   :  { %651 = vmatprep.mubr.msk.f32.mxu0 %vm732_vm0, %v733_v4  ;;  %701 = vmatpush3.bf16.msra.mxu0 %v700_v17  ;;  %v587_v59 = vld [vmem:[%s942_s10] ss:$0 sm:$0xff] }
   0xd   :  { %702 = vmatprep.subr.bf16.mxu0 %v731_v0 }
  0x10   :  { %704 = vmatpush3.bf16.msra.mxu0 %v703_v25 }
  0x11   :  { %711 = vmatprep.subr.bf16.mxu0 %v731_v0 }
  0xde   :  { %v126_v19 = vpop.f32.mrb[0].mxu0 }
  0xdf   :  { %v127_v20 = vadd.f32 %v579_v18, %v126_v19  ;;  %v631_v21 = vpop.f32.mrb[1].mxu0 }
  0xe1   :  { %v130_v22 = vmax.f32 %v127_v20, 0.0 }
  0xe3   :  { %641 = vmatmul.mubr.msk.f32.vlgmr.msra.gmra.mrb[0].mxu1 %vm56_vm1, %v130_v22 }
  0xe4   :  { %662 = vmatprep.mubr.msk.f32.mxu1 %vm732_vm0, %v733_v4  ;;  %707 = vmatpush3.bf16.msra.mxu1 %v706_v28 }
  0xe5   :  { %708 = vmatprep.subr.bf16.mxu1 %v731_v0 }
  0xe8   :  { %710 = vmatpush3.bf16.msra.mxu1 %v709_v36 }
  0xe9   :  { %717 = vmatprep.subr.bf16.mxu1 %v731_v0 }
 0x1b6   :  { %v211_v30 = vpop.f32.mrb[0].mxu1 }
 0x1b7   :  { %v212_v31 = vadd.f32 %v581_v29, %v211_v30  ;;  %v642_v32 = vpop.f32.mrb[1].mxu1 }
 0x1b9   :  { %v215_v33 = vmax.f32 %v212_v31, 0.0 }
 0x1bb   :  { %652 = vmatmul.mubr.msk.f32.vlgmr.msra.gmra.mrb[2].mxu0 %vm56_vm1, %v215_v33 }
 0x1bc   :  { %673 = vmatprep.mubr.msk.f32.mxu0 %vm732_vm0, %v733_v4  ;;  %713 = vmatpush3.bf16.msra.mxu0 %v712_v39 }
 0x1bd   :  { %714 = vmatprep.subr.bf16.mxu0 %v731_v0 }
 0x1c0   :  { %716 = vmatpush3.bf16.msra.mxu0 %v715_v47 }
 0x28e   :  { %v296_v41 = vpop.f32.mrb[2].mxu0 }
 0x28f   :  { %v297_v42 = vadd.f32 %v583_v40, %v296_v41  ;;  %v653_v43 = vpop.f32.mrb[3].mxu0 }
 0x291   :  { %v300_v44 = vmax.f32 %v297_v42, 0.0 }
 0x293   :  { %663 = vmatmul.mubr.msk.f32.vlgmr.msra.gmra.mrb[2].mxu1 %vm56_vm1, %v300_v44 }
 0x294   :  { %684 = vmatprep.mubr.msk.f32.mxu1 %vm732_vm0, %v733_v4  ;;  %719 = vmatpush3.bf16.msra.mxu1 %v718_v50 }
 0x295   :  { %720 = vmatprep.subr.bf16.mxu1 %v731_v0  ;;  %v589_v0 = vld [vmem:[%s943_s12] ss:$0 sm:$0xff] }
 0x298   :  { %722 = vmatpush3.bf16.msra.mxu1 %v721_v58 }
 0x366   :  { %v381_v52 = vpop.f32.mrb[2].mxu1 }
 0x367   :  { %v382_v53 = vadd.f32 %v585_v51, %v381_v52  ;;  %v664_v54 = vpop.f32.mrb[3].mxu1 }
 0x369   :  { %v385_v55 = vmax.f32 %v382_v53, 0.0 }
 0x36b   :  { %674 = vmatmul.mubr.msk.f32.vlgmr.msra.gmra.mrb[4].mxu0 %vm56_vm1, %v385_v55 }
 0x43e   :  { %v466_v60 = vpop.f32.mrb[4].mxu0 }
 0x43f   :  { %v467_v61 = vadd.f32 %v587_v59, %v466_v60  ;;  %v675_v62 = vpop.f32.mrb[5].mxu0 }
 0x441   :  { %v470_v63 = vmax.f32 %v467_v61, 0.0 }
 0x443   :  { %685 = vmatmul.mubr.msk.f32.vlgmr.msra.gmra.mrb[4].mxu1 %vm56_vm1, %v470_v63 }
 0x516   :  { %v551_v1 = vpop.f32.mrb[4].mxu1 }
 0x517   :  { %v552_v2 = vadd.f32 %v589_v0, %v551_v1  ;;  %v686_v3 = vpop.f32.mrb[5].mxu1 }
 0x519   :  { %568 = vrot.lane.b32.xlu1 %v552_v2, %s734_s11  ;;  %v556_v4 = vsel %vm555_vm2, %v552_v2, -inf }
 0x51a   :  { %557 = vmax.xlane.f32.xlu0 %v556_v4 }
 0x58b   :  { %v569_v13 = vpop.permute.xlu1 %568 }
 0x5a7   :  { %v558_v5 = vpop.xlane.xlu0 %557 }
 0x5a8   :  { %v559_v6 = vsub.f32 %v552_v2, %v558_v5 }
 0x5aa   :  { %v560_v7 = vmul.f32 1.442695, %v559_v6 }
 0x5ac   :  { %727 = vpow2.f32 %v560_v7 }
 0x5b6   :  { %v728_v8 = vpop.eup %727 }
 0x5b7   :  { %v562_v9 = vsel %vm555_vm2, %v728_v8, 0.0 }
 0x5b8   :  { %563 = vadd.xlane.f32.xlu0 %v562_v9 }
 0x645   :  { %v564_v10 = vpop.xlane.xlu0 %563 }
 0x646   :  { %729 = vrcp.f32 %v564_v10 }
 0x650   :  { %v730_v11 = vpop.eup %729 }
 0x651   :  { %v566_v12 = vmul.f32 %v730_v11, %v728_v8 }
 0x653   :  { %v572_v14 = vsel %vm571_vm3, %v566_v12, %v569_v13 }
 0x654   :  { %574 = vst.msk [vmem:[%s944_s13] sm:$0xf] %vm573_vm4, %v572_v14 }

// kernel: bayesian_moe_forward.2
= control target key start
LH: loop header
LB: loop body
LE: loop exit
PB: predicated region body
PF: predicated region fallthrough
CT: control target
= control target key end

     0   :  { %s3735_s6 = smov 1   ;;  %s3736_s10 = smov 2   ;;  %s6088_s0 = inlined_call_operand.smem [shape: u32[49], index: -1, kind: input, shape index: {}] }
   0x1   :  { %s3822_s5 = sld [smem:[%s6088_s0]]   ;;  %s3737_s14 = smov 3  }
   0x2   :  { %s3827_s9 = sld [smem:[%s6088_s0 + %s3735_s6]]   ;;  %s3738_s18 = smov 4  }
   0x3   :  { %s3832_s13 = sld [smem:[%s6088_s0 + %s3736_s10]]   ;;  %s3739_s22 = smov 5  }
   0x4   :  { %s3837_s17 = sld [smem:[%s6088_s0 + %s3737_s14]]   ;;  %s3740_s26 = smov 6  }
   0x5   :  { %s3842_s21 = sld [smem:[%s6088_s0 + %s3738_s18]]   ;;  %s3741_s30 = smov 7  }
   0x6   :  { %s3847_s25 = sld [smem:[%s6088_s0 + %s3739_s22]]   ;;  %s3742_s4 = smov 8  }
   0x7   :  { %6144 = sst [smem:[#allocation63_spill]] %s3822_s5  ;;  %s3743_s10 = smov 9  }
   0x8   :  { %6145 = sst [smem:[#allocation64_spill]] %s3827_s9  ;;  %s3744_s15 = smov 10  }
   0x9   :  { %6146 = sst [smem:[#allocation65_spill]] %s3832_s13  ;;  %s3745_s20 = smov 11  }
   0xa   :  { %s3852_s29 = sld [smem:[%s6088_s0 + %s3740_s26]]   ;;  %s3746_s26 = smov 12  }
   0xb   :  { %s3857_s3 = sld [smem:[%s6088_s0 + %s3741_s30]]   ;;  %s3747_s1 = smov 13  }
   0xc   :  { %6147 = sst [smem:[#allocation66_spill]] %s3847_s25  ;;  %s3748_s7 = smov 14  }
   0xd   :  { %s3862_s8 = sld [smem:[%s6088_s0 + %s3742_s4]]   ;;  %s3750_s22 = smov 16  }
   0xe   :  { %s3867_s14 = sld [smem:[%s6088_s0 + %s3743_s10]]   ;;  %s3751_s28 = smov 17  }
   0xf   :  { %s3872_s19 = sld [smem:[%s6088_s0 + %s3744_s15]]   ;;  %s3749_s15 = smov 15  }
  0x10   :  { %s3877_s24 = sld [smem:[%s6088_s0 + %s3745_s20]]  }
  0x11   :  { %6148 = sst [smem:[#allocation67_spill]] %s3857_s3 }
  0x12   :  { %s3882_s30 = sld [smem:[%s6088_s0 + %s3746_s26]]  }
  0x13   :  { %6149 = sst [smem:[#allocation68_spill]] %s3862_s8 }
  0x14   :  { %s3887_s6 = sld [smem:[%s6088_s0 + %s3747_s1]]  }
  0x15   :  { %6150 = sst [smem:[#allocation69_spill]] %s3872_s19 }
  0x16   :  { %s3892_s12 = sld [smem:[%s6088_s0 + %s3748_s7]]   ;;  %s3752_s7 = smov 18  }
  0x17   :  { %s3897_s20 = sld [smem:[%s6088_s0 + %s3749_s15]]   ;;  %s3753_s15 = smov 19  }
  0x18   :  { %6151 = sst [smem:[#allocation70_spill]] %s3882_s30 }
  0x19   :  { %s3902_s27 = sld [smem:[%s6088_s0 + %s3750_s22]]   ;;  %s3754_s22 = smov 20  }
  0x1a   :  { %s3907_s4 = sld [smem:[%s6088_s0 + %s3751_s28]]   ;;  %s3755_s28 = smov 21  }
  0x1b   :  { %s3917_s5 = sld [smem:[%s6088_s0 + %s3753_s15]]   ;;  %s3757_s15 = smov 23  }
  0x1c   :  { %6152 = sst [smem:[#allocation71_spill]] %s3892_s12 }
  0x1d   :  { %6153 = sst [smem:[#allocation72_spill]] %s3897_s20 }
  0x1e   :  { %s3912_s12 = sld [smem:[%s6088_s0 + %s3752_s7]]   ;;  %s3756_s7 = smov 22  }
  0x1f   :  { %s3922_s13 = sld [smem:[%s6088_s0 + %s3754_s22]]   ;;  %s3758_s22 = smov 24  }
  0x20   :  { %6154 = sst [smem:[#allocation73_spill]] %s3907_s4 }
  0x21   :  { %6155 = sst [smem:[#allocation74_spill]] %s3917_s5 }
  0x22   :  { %s3927_s8 = sld [smem:[%s6088_s0 + %s3755_s28]]   ;;  %s3759_s28 = smov 25  }
  0x23   :  { %s3932_s9 = sld [smem:[%s6088_s0 + %s3756_s7]]   ;;  %s3760_s7 = smov 26  }
  0x24   :  { %s3937_s5 = sld [smem:[%s6088_s0 + %s3757_s15]]   ;;  %s3761_s15 = smov 27  }
  0x25   :  { %s3942_s4 = sld [smem:[%s6088_s0 + %s3758_s22]]   ;;  %s3762_s22 = smov 28  }
  0x26   :  { %s3952_s20 = sld [smem:[%s6088_s0 + %s3760_s7]]   ;;  %s3764_s7 = smov 30  }
  0x27   :  { %s3962_s30 = sld [smem:[%s6088_s0 + %s3762_s22]]   ;;  %s3766_s22 = smov 32  }
  0x28   :  { %6156 = sst [smem:[#allocation75_spill]] %s3927_s8 }
  0x29   :  { %s3947_s8 = sld [smem:[%s6088_s0 + %s3759_s28]]   ;;  %s3763_s28 = smov 29  }
  0x2a   :  { %6157 = sst [smem:[#allocation76_spill]] %s3937_s5 }
  0x2b   :  { %s3957_s5 = sld [smem:[%s6088_s0 + %s3761_s15]]   ;;  %s3765_s15 = smov 31  }
  0x2c   :  { %6159 = sst [smem:[#allocation78_spill]] %s3952_s20 }
  0x2d   :  { %6160 = sst [smem:[#allocation79_spill]] %s3962_s30 }
  0x2e   :  { %s3972_s20 = sld [smem:[%s6088_s0 + %s3764_s7]]   ;;  %s3768_s7 = smov 34  }
  0x2f   :  { %6158 = sst [smem:[#allocation77_spill]] %s3947_s8 }
  0x30   :  { %s3967_s8 = sld [smem:[%s6088_s0 + %s3763_s28]]   ;;  %s3767_s28 = smov 33  }
  0x31   :  { %s3977_s19 = sld [smem:[%s6088_s0 + %s3765_s15]]   ;;  %s3769_s15 = smov 35  }
  0x32   :  { %s3982_s30 = sld [smem:[%s6088_s0 + %s3766_s22]]   ;;  %s3770_s22 = smov 36  }
  0x33   :  { %s3987_s3 = sld [smem:[%s6088_s0 + %s3767_s28]]   ;;  %s3771_s28 = smov 37  }
  0x34   :  { %6161 = sst [smem:[#allocation80_spill]] %s3972_s20 }
  0x35   :  { %s3992_s20 = sld [smem:[%s6088_s0 + %s3768_s7]]   ;;  %s3772_s7 = smov 38  }
  0x36   :  { %s3997_s25 = sld [smem:[%s6088_s0 + %s3769_s15]]   ;;  %s3773_s15 = smov 39  }
  0x38   :  { %6162 = sst [smem:[#allocation81_spill]] %s3982_s30 }
  0x39   :  { %6163 = sst [smem:[#allocation82_spill]] %s3987_s3 }
  0x3a   :  { %s4002_s30 = sld [smem:[%s6088_s0 + %s3770_s22]]   ;;  %s3774_s22 = smov 40  }
  0x3b   :  { %6164 = sst [smem:[#allocation83_spill]] %s3992_s20 }
  0x3c   :  { %6165 = sst [smem:[#allocation84_spill]] %s3997_s25 }
  0x3d   :  { %s4007_s3 = sld [smem:[%s6088_s0 + %s3771_s28]]   ;;  %s3775_s28 = smov 41  }
  0x3e   :  { %s4012_s20 = sld [smem:[%s6088_s0 + %s3772_s7]]   ;;  %s3776_s7 = smov 42  }
  0x3f   :  { %s4017_s25 = sld [smem:[%s6088_s0 + %s3773_s15]]   ;;  %s3777_s15 = smov 43  }
  0x40   :  { %6166 = sst [smem:[#allocation85_spill]] %s4002_s30 }
  0x41   :  { %s4022_s30 = sld [smem:[%s6088_s0 + %s3774_s22]]   ;;  %s3778_s22 = smov 44  }
  0x43   :  { %6167 = sst [smem:[#allocation86_spill]] %s4007_s3 }
  0x44   :  { %6168 = sst [smem:[#allocation87_spill]] %s4012_s20 }
  0x45   :  { %6169 = sst [smem:[#allocation88_spill]] %s4017_s25 }
  0x46   :  { %s4027_s3 = sld [smem:[%s6088_s0 + %s3775_s28]]   ;;  %s3779_s28 = smov 45  }
  0x47   :  { %6170 = sst [smem:[#allocation89_spill]] %s4022_s30 }
  0x48   :  { %s4032_s20 = sld [smem:[%s6088_s0 + %s3776_s7]]   ;;  %s3780_s7 = smov 46  }
  0x49   :  { %s4037_s25 = sld [smem:[%s6088_s0 + %s3777_s15]]   ;;  %s3781_s15 = smov 47  }
  0x4a   :  { %s4042_s30 = sld [smem:[%s6088_s0 + %s3778_s22]]   ;;  %s3782_s22 = smov 48  }
  0x4c   :  { %6171 = sst [smem:[#allocation90_spill]] %s4027_s3 }
  0x4d   :  { %s4047_s3 = sld [smem:[%s6088_s0 + %s3779_s28]]  }
  0x4e   :  { %6172 = sst [smem:[#allocation91_spill]] %s4032_s20 }
  0x4f   :  { %6173 = sst [smem:[#allocation92_spill]] %s4037_s25 }
  0x50   :  { %6174 = sst [smem:[#allocation93_spill]] %s4042_s30 }
  0x51   :  { %s4052_s20 = sld [smem:[%s6088_s0 + %s3780_s7]]  }
  0x52   :  { %s4057_s25 = sld [smem:[%s6088_s0 + %s3781_s15]]  }
  0x53   :  { %s4062_s30 = sld [smem:[%s6088_s0 + %s3782_s22]]  }
  0x54   :  { %103 = vsyncpa [#allocation3], 0 }
  0x55   :  { %104 = vsyncpa [#allocation6], 0 }
  0x56   :  { %105 = vsyncpa [#allocation9], 0 }
  0x57   :  { %106 = vsyncpa [#allocation12], 0 }
  0x58   :  { %107 = vsyncpa [#allocation15], 0 }
  0x59   :  { %108 = vsyncpa [#allocation18], 0 }
  0x5a   :  { %109 = vsyncpa [#allocation21], 0 }
  0x5b   :  { %110 = vsyncpa [#allocation24], 0 }
  0x5c   :  { %111 = vsyncpa [#allocation27], 0 }
  0x5d   :  { %112 = vsyncpa [#allocation30], 0 }
  0x5e   :  { %113 = vsyncpa [#allocation33], 0 }
  0x5f   :  { %114 = vsyncpa [#allocation36], 0 }
  0x60   :  { %115 = vsyncpa [#allocation39], 0 }
  0x61   :  { %116 = vsyncpa [#allocation42], 0 }
  0x62   :  { %117 = vsyncpa [#allocation45], 0 }
  0x63   :  { %118 = vsyncpa [#allocation4], 0  ;;  %s3783_s0 = smov [#allocation5]   ;;  %s3784_s1 = smov [#allocation8]  }
  0x64   :  { %s141_s28 = sshll.u32 %s3783_s0, 4  ;;  %s160_s2 = sshll.u32 %s3784_s1, 4  ;;  %s142_s28 = int_to_ptr.vmem [resolvable:$true] %s141_s28  ;;  %s4064_s2 = int_to_ptr.vmem [resolvable:$true] %s160_s2 }
  0x65   :  { %s3077_s7 = scalar_lea.hbm %s3842_s21, 16 }
  0x66   :  { %p3078_p0 = scmp.ne.s32.totalorder %s3842_s21, %s3077_s7  ;;  %p3081_p1 = scmp.lt.u32.totalorder %s3077_s7, %s3842_s21 }
  0x68   :  { %p3083_p2 = pnand %p3081_p1, %p3078_p0 }
  0x6a   :  { %3086 = shalt.err (!%p3083_p2)
}
  0x6b   :  { %s3087_s10 = scalar_lea.vmem %s142_s28, 16  ;;  %s3091_s11 = scalar_lea.vmem %s142_s28, 32 }
  0x6c   :  { %p3088_p3 = scmp.ne.s32.totalorder %s142_s28, %s3087_s10  ;;  %p3092_p4 = scmp.lt.s32.totalorder %s142_s28, %s142_s28 }
  0x6d   :  { %p3093_p5 = scmp.lt.s32.totalorder %s3091_s11, %s3087_s10 }
  0x6f   :  { %p3094_p6 = por %p3093_p5, %p3092_p4 }
  0x71   :  { %p3095_p7 = pnand %p3094_p6, %p3088_p3 }
  0x73   :  { %3098 = shalt.err (!%p3095_p7)
}
  0x74   :  { %144 = dma.hbm_to_vmem [thread:$0]  %s3842_s21, 16, %s142_s28, [#allocation6]  }
  0x75   :  { %s3099_s15 = scalar_lea.hbm %s3852_s29, 512 }
  0x76   :  { %p3100_p8 = scmp.ne.s32.totalorder %s3852_s29, %s3099_s15  ;;  %p3103_p9 = scmp.lt.u32.totalorder %s3099_s15, %s3852_s29 }
  0x78   :  { %p3105_p10 = pnand %p3103_p9, %p3100_p8 }
  0x7a   :  { %3108 = shalt.err (!%p3105_p10)
}
  0x7b   :  { %s3109_s16 = scalar_lea.vmem %s4064_s2, 512  ;;  %p3114_p12 = scmp.lt.s32.totalorder %s4064_s2, %s4064_s2 }
  0x7c   :  { %p3110_p11 = scmp.ne.s32.totalorder %s4064_s2, %s3109_s16  ;;  %p3115_p13 = scmp.lt.s32.totalorder %s3109_s16, %s3109_s16 }
  0x7e   :  { %p3116_p0 = por %p3115_p13, %p3114_p12 }
  0x80   :  { %p3117_p1 = pnand %p3116_p0, %p3110_p11 }
  0x82   :  { %3120 = shalt.err (!%p3117_p1)
}
  0x83   :  { %s3785_s18 = smov 128   ;;  %s3786_s21 = smov 8  }
  0x84   :  { %166 = dma.hbm_to_vmem [thread:$0]  %s3852_s29, 512, %s4064_s2, [#allocation9], %s3785_s18, %s3785_s18, %s3786_s21  }
  0x85   :  { %s3787_s22 = smov [#allocation11]   ;;  %s3788_s26 = smov [#allocation14]  }
  0x86   :  { %s187_s23 = sshll.u32 %s3787_s22, 4  ;;  %s207_s0 = sshll.u32 %s3788_s26, 4  ;;  %s188_s23 = int_to_ptr.vmem [resolvable:$true] %s187_s23  ;;  %s208_s0 = int_to_ptr.vmem [resolvable:$true] %s207_s0 }
  0x87   :  { %s3121_s28 = scalar_lea.hbm %s3867_s14, 16 }
  0x88   :  { %p3122_p2 = scmp.ne.s32.totalorder %s3867_s14, %s3121_s28  ;;  %p3125_p3 = scmp.lt.u32.totalorder %s3121_s28, %s3867_s14 }
  0x8a   :  { %p3127_p4 = pnand %p3125_p3, %p3122_p2 }
  0x8c   :  { %3130 = shalt.err (!%p3127_p4)
}
  0x8d   :  { %s3131_s1 = scalar_lea.vmem %s188_s23, 16  ;;  %s3135_s7 = scalar_lea.vmem %s188_s23, 32 }
  0x8e   :  { %p3132_p5 = scmp.ne.s32.totalorder %s188_s23, %s3131_s1  ;;  %p3136_p6 = scmp.lt.s32.totalorder %s188_s23, %s188_s23 }
  0x8f   :  { %p3137_p7 = scmp.lt.s32.totalorder %s3135_s7, %s3131_s1 }
  0x91   :  { %p3138_p8 = por %p3137_p7, %p3136_p6 }
  0x93   :  { %p3139_p9 = pnand %p3138_p8, %p3132_p5 }
  0x95   :  { %3142 = shalt.err (!%p3139_p9)
}
  0x96   :  { %190 = dma.hbm_to_vmem [thread:$0]  %s3867_s14, 16, %s188_s23, [#allocation12]  }
  0x97   :  { %s3143_s29 = scalar_lea.hbm %s3877_s24, 16 }
  0x98   :  { %p3144_p10 = scmp.ne.s32.totalorder %s3877_s24, %s3143_s29  ;;  %p3147_p11 = scmp.lt.u32.totalorder %s3143_s29, %s3877_s24 }
  0x9a   :  { %p3149_p12 = pnand %p3147_p11, %p3144_p10 }
  0x9c   :  { %3152 = shalt.err (!%p3149_p12)
}
  0x9d   :  { %s3153_s2 = scalar_lea.vmem %s208_s0, 16  ;;  %s3157_s10 = scalar_lea.vmem %s208_s0, 32 }
  0x9e   :  { %p3154_p13 = scmp.ne.s32.totalorder %s208_s0, %s3153_s2  ;;  %p3158_p0 = scmp.lt.s32.totalorder %s208_s0, %s208_s0 }
  0x9f   :  { %p3159_p1 = scmp.lt.s32.totalorder %s3157_s10, %s3153_s2 }
  0xa1   :  { %p3160_p2 = por %p3159_p1, %p3158_p0 }
  0xa3   :  { %p3161_p3 = pnand %p3160_p2, %p3154_p13 }
  0xa5   :  { %3164 = shalt.err (!%p3161_p3)
}
  0xa6   :  { %210 = dma.hbm_to_vmem [thread:$0]  %s3877_s24, 16, %s208_s0, [#allocation15]  }
  0xa7   :  { %s3789_s11 = smov [#allocation17]   ;;  %s3790_s15 = smov [#allocation20]  }
  0xa8   :  { %s228_s14 = sshll.u32 %s3789_s11, 4  ;;  %s253_s16 = sshll.u32 %s3790_s15, 4  ;;  %s229_s14 = int_to_ptr.vmem [resolvable:$true] %s228_s14  ;;  %s254_s16 = int_to_ptr.vmem [resolvable:$true] %s253_s16 }
  0xa9   :  { %s3165_s22 = scalar_lea.hbm %s3887_s6, 512 }
  0xaa   :  { %p3166_p4 = scmp.ne.s32.totalorder %s3887_s6, %s3165_s22  ;;  %p3169_p5 = scmp.lt.u32.totalorder %s3165_s22, %s3887_s6 }
  0xac   :  { %p3171_p6 = pnand %p3169_p5, %p3166_p4 }
  0xae   :  { %3174 = shalt.err (!%p3171_p6)
}
  0xaf   :  { %s3175_s23 = scalar_lea.vmem %s229_s14, 512  ;;  %p3180_p8 = scmp.lt.s32.totalorder %s229_s14, %s229_s14 }
  0xb0   :  { %p3176_p7 = scmp.ne.s32.totalorder %s229_s14, %s3175_s23  ;;  %p3181_p9 = scmp.lt.s32.totalorder %s3175_s23, %s3175_s23 }
  0xb2   :  { %p3182_p10 = por %p3181_p9, %p3180_p8 }
  0xb4   :  { %p3183_p11 = pnand %p3182_p10, %p3176_p7 }
  0xb6   :  { %3186 = shalt.err (!%p3183_p11)
}
  0xb7   :  { %234 = dma.hbm_to_vmem [thread:$0]  %s3887_s6, 512, %s229_s14, [#allocation18], %s3785_s18, %s3785_s18, %s3786_s21  }
  0xb8   :  { %s3187_s24 = scalar_lea.hbm %s3902_s27, 16 }
  0xb9   :  { %p3188_p12 = scmp.ne.s32.totalorder %s3902_s27, %s3187_s24  ;;  %p3191_p13 = scmp.lt.u32.totalorder %s3187_s24, %s3902_s27 }
  0xbb   :  { %p3193_p0 = pnand %p3191_p13, %p3188_p12 }
  0xbd   :  { %3196 = shalt.err (!%p3193_p0)
}
  0xbe   :  { %s3197_s26 = scalar_lea.vmem %s254_s16, 16  ;;  %s3201_s0 = scalar_lea.vmem %s254_s16, 32 }
  0xbf   :  { %p3198_p1 = scmp.ne.s32.totalorder %s254_s16, %s3197_s26  ;;  %p3202_p2 = scmp.lt.s32.totalorder %s254_s16, %s254_s16 }
  0xc0   :  { %p3203_p3 = scmp.lt.s32.totalorder %s3201_s0, %s3197_s26 }
  0xc2   :  { %p3204_p4 = por %p3203_p3, %p3202_p2 }
  0xc4   :  { %p3205_p5 = pnand %p3204_p4, %p3198_p1 }
  0xc6   :  { %3208 = shalt.err (!%p3205_p5)
}
  0xc7   :  { %256 = dma.hbm_to_vmem [thread:$0]  %s3902_s27, 16, %s254_s16, [#allocation21]  }
  0xc8   :  { %s3791_s28 = smov [#allocation23]   ;;  %s3792_s1 = smov [#allocation26]  }
  0xc9   :  { %s272_s6 = sshll.u32 %s3791_s28, 4  ;;  %s296_s7 = sshll.u32 %s3792_s1, 4  ;;  %s273_s6 = int_to_ptr.vmem [resolvable:$true] %s272_s6  ;;  %s4101_s7 = int_to_ptr.vmem [resolvable:$true] %s296_s7 }
  0xca   :  { %s3209_s29 = scalar_lea.hbm %s3912_s12, 512 }
  0xcb   :  { %p3210_p6 = scmp.ne.s32.totalorder %s3912_s12, %s3209_s29  ;;  %p3213_p7 = scmp.lt.u32.totalorder %s3209_s29, %s3912_s12 }
  0xcd   :  { %p3215_p8 = pnand %p3213_p7, %p3210_p6 }
  0xcf   :  { %3218 = shalt.err (!%p3215_p8)
}
  0xd0   :  { %s3219_s2 = scalar_lea.vmem %s273_s6, 512  ;;  %p3224_p10 = scmp.lt.s32.totalorder %s273_s6, %s273_s6 }
  0xd1   :  { %p3220_p9 = scmp.ne.s32.totalorder %s273_s6, %s3219_s2  ;;  %p3225_p11 = scmp.lt.s32.totalorder %s3219_s2, %s3219_s2 }
  0xd3   :  { %p3226_p12 = por %p3225_p11, %p3224_p10 }
  0xd5   :  { %p3227_p13 = pnand %p3226_p12, %p3220_p9 }
  0xd7   :  { %3230 = shalt.err (!%p3227_p13)
}
  0xd8   :  { %278 = dma.hbm_to_vmem [thread:$0]  %s3912_s12, 512, %s273_s6, [#allocation24], %s3785_s18, %s3785_s18, %s3786_s21  }
  0xd9   :  { %s3231_s27 = scalar_lea.hbm %s3922_s13, 512 }
  0xda   :  { %p3232_p0 = scmp.ne.s32.totalorder %s3922_s13, %s3231_s27  ;;  %p3235_p1 = scmp.lt.u32.totalorder %s3231_s27, %s3922_s13 }
  0xdc   :  { %p3237_p2 = pnand %p3235_p1, %p3232_p0 }
  0xde   :  { %3240 = shalt.err (!%p3237_p2)
}
  0xdf   :  { %s3241_s10 = scalar_lea.vmem %s4101_s7, 512  ;;  %p3246_p4 = scmp.lt.s32.totalorder %s4101_s7, %s4101_s7 }
  0xe0   :  { %p3242_p3 = scmp.ne.s32.totalorder %s4101_s7, %s3241_s10  ;;  %p3247_p5 = scmp.lt.s32.totalorder %s3241_s10, %s3241_s10 }
  0xe2   :  { %p3248_p6 = por %p3247_p5, %p3246_p4 }
  0xe4   :  { %p3249_p7 = pnand %p3248_p6, %p3242_p3 }
  0xe6   :  { %3252 = shalt.err (!%p3249_p7)
}
  0xe7   :  { %302 = dma.hbm_to_vmem [thread:$0]  %s3922_s13, 512, %s4101_s7, [#allocation27], %s3785_s18, %s3785_s18, %s3786_s21  }
  0xe8   :  { %s3793_s12 = smov [#allocation29]   ;;  %s3794_s14 = smov [#allocation32]  }
  0xe9   :  { %s319_s11 = sshll.u32 %s3793_s12, 4  ;;  %s338_s15 = sshll.u32 %s3794_s14, 4  ;;  %s320_s11 = int_to_ptr.vmem [resolvable:$true] %s319_s11  ;;  %s4122_s15 = int_to_ptr.vmem [resolvable:$true] %s338_s15 }
  0xea   :  { %s3253_s16 = scalar_lea.hbm %s3932_s9, 16 }
  0xeb   :  { %p3254_p8 = scmp.ne.s32.totalorder %s3932_s9, %s3253_s16  ;;  %p3257_p9 = scmp.lt.u32.totalorder %s3253_s16, %s3932_s9 }
  0xed   :  { %p3259_p10 = pnand %p3257_p9, %p3254_p8 }
  0xef   :  { %3262 = shalt.err (!%p3259_p10)
}
  0xf0   :  { %s3263_s22 = scalar_lea.vmem %s320_s11, 16  ;;  %s3267_s23 = scalar_lea.vmem %s320_s11, 32 }
  0xf1   :  { %p3264_p11 = scmp.ne.s32.totalorder %s320_s11, %s3263_s22  ;;  %p3268_p12 = scmp.lt.s32.totalorder %s320_s11, %s320_s11 }
  0xf2   :  { %p3269_p13 = scmp.lt.s32.totalorder %s3267_s23, %s3263_s22 }
  0xf4   :  { %p3270_p0 = por %p3269_p13, %p3268_p12 }
  0xf6   :  { %p3271_p1 = pnand %p3270_p0, %p3264_p11 }
  0xf8   :  { %3274 = shalt.err (!%p3271_p1)
}
  0xf9   :  { %322 = dma.hbm_to_vmem [thread:$0]  %s3932_s9, 16, %s320_s11, [#allocation30]  }
  0xfa   :  { %s3275_s13 = scalar_lea.hbm %s3942_s4, 512 }
  0xfb   :  { %p3276_p2 = scmp.ne.s32.totalorder %s3942_s4, %s3275_s13  ;;  %p3279_p3 = scmp.lt.u32.totalorder %s3275_s13, %s3942_s4 }
  0xfd   :  { %p3281_p4 = pnand %p3279_p3, %p3276_p2 }
  0xff   :  { %3284 = shalt.err (!%p3281_p4)
}
 0x100   :  { %s3285_s24 = scalar_lea.vmem %s4122_s15, 512  ;;  %p3290_p6 = scmp.lt.s32.totalorder %s4122_s15, %s4122_s15 }
 0x101   :  { %p3286_p5 = scmp.ne.s32.totalorder %s4122_s15, %s3285_s24  ;;  %p3291_p7 = scmp.lt.s32.totalorder %s3285_s24, %s3285_s24 }
 0x103   :  { %p3292_p8 = por %p3291_p7, %p3290_p6 }
 0x105   :  { %p3293_p9 = pnand %p3292_p8, %p3286_p5 }
 0x107   :  { %3296 = shalt.err (!%p3293_p9)
}
 0x108   :  { %344 = dma.hbm_to_vmem [thread:$0]  %s3942_s4, 512, %s4122_s15, [#allocation33], %s3785_s18, %s3785_s18, %s3786_s21  }
 0x109   :  { %s3795_s9 = smov [#allocation35]   ;;  %s3796_s0 = smov [#allocation38]  }
 0x10a   :  { %s365_s26 = sshll.u32 %s3795_s9, 4  ;;  %s385_s28 = sshll.u32 %s3796_s0, 4  ;;  %s366_s26 = int_to_ptr.vmem [resolvable:$true] %s365_s26  ;;  %s386_s28 = int_to_ptr.vmem [resolvable:$true] %s385_s28 }
 0x10b   :  { %s3297_s6 = scalar_lea.hbm %s3957_s5, 16 }
 0x10c   :  { %p3298_p10 = scmp.ne.s32.totalorder %s3957_s5, %s3297_s6  ;;  %p3301_p11 = scmp.lt.u32.totalorder %s3297_s6, %s3957_s5 }
 0x10e   :  { %p3303_p12 = pnand %p3301_p11, %p3298_p10 }
 0x110   :  { %3306 = shalt.err (!%p3303_p12)
}
 0x111   :  { %s3307_s1 = scalar_lea.vmem %s366_s26, 16  ;;  %s3311_s7 = scalar_lea.vmem %s366_s26, 32 }
 0x112   :  { %p3308_p13 = scmp.ne.s32.totalorder %s366_s26, %s3307_s1  ;;  %p3312_p0 = scmp.lt.s32.totalorder %s366_s26, %s366_s26 }
 0x113   :  { %p3313_p1 = scmp.lt.s32.totalorder %s3311_s7, %s3307_s1 }
 0x115   :  { %p3314_p2 = por %p3313_p1, %p3312_p0 }
 0x117   :  { %p3315_p3 = pnand %p3314_p2, %p3308_p13 }
 0x119   :  { %3318 = shalt.err (!%p3315_p3)
}
 0x11a   :  { %368 = dma.hbm_to_vmem [thread:$0]  %s3957_s5, 16, %s366_s26, [#allocation36]  }
 0x11b   :  { %s3319_s4 = scalar_lea.hbm %s3967_s8, 16 }
 0x11c   :  { %p3320_p4 = scmp.ne.s32.totalorder %s3967_s8, %s3319_s4  ;;  %p3323_p5 = scmp.lt.u32.totalorder %s3319_s4, %s3967_s8 }
 0x11e   :  { %p3325_p6 = pnand %p3323_p5, %p3320_p4 }
 0x120   :  { %3328 = shalt.err (!%p3325_p6)
}
 0x121   :  { %s3329_s29 = scalar_lea.vmem %s386_s28, 16  ;;  %s3333_s2 = scalar_lea.vmem %s386_s28, 32 }
 0x122   :  { %p3330_p7 = scmp.ne.s32.totalorder %s386_s28, %s3329_s29  ;;  %p3334_p8 = scmp.lt.s32.totalorder %s386_s28, %s386_s28 }
 0x123   :  { %p3335_p9 = scmp.lt.s32.totalorder %s3333_s2, %s3329_s29 }
 0x125   :  { %p3336_p10 = por %p3335_p9, %p3334_p8 }
 0x127   :  { %p3337_p11 = pnand %p3336_p10, %p3330_p7 }
 0x129   :  { %3340 = shalt.err (!%p3337_p11)
}
 0x12a   :  { %388 = dma.hbm_to_vmem [thread:$0]  %s3967_s8, 16, %s386_s28, [#allocation39]  }
 0x12b   :  { %s3797_s27 = smov [#allocation41]   ;;  %s3798_s10 = smov [#allocation2]  }
 0x12c   :  { %s405_s5 = sshll.u32 %s3797_s27, 4  ;;  %s131_s12 = sshll.u32 %s3798_s10, 4  ;;  %s406_s5 = int_to_ptr.vmem [resolvable:$true] %s405_s5  ;;  %s132_s12 = int_to_ptr.vmem [resolvable:$true] %s131_s12 }
 0x12d   :  { %s3341_s11 = scalar_lea.hbm %s3977_s19, 64 }
 0x12e   :  { %p3342_p12 = scmp.ne.s32.totalorder %s3977_s19, %s3341_s11  ;;  %p3345_p13 = scmp.lt.u32.totalorder %s3341_s11, %s3977_s19 }
 0x130   :  { %p3347_p0 = pnand %p3345_p13, %p3342_p12 }
 0x132   :  { %3350 = shalt.err (!%p3347_p0)
}
 0x133   :  { %s3351_s14 = scalar_lea.vmem %s406_s5, 64  ;;  %p3356_p2 = scmp.lt.s32.totalorder %s406_s5, %s406_s5 }
 0x134   :  { %p3352_p1 = scmp.ne.s32.totalorder %s406_s5, %s3351_s14  ;;  %p3357_p3 = scmp.lt.s32.totalorder %s3351_s14, %s3351_s14 }
 0x136   :  { %p3358_p4 = por %p3357_p3, %p3356_p2 }
 0x138   :  { %p3359_p5 = pnand %p3358_p4, %p3352_p1 }
 0x13a   :  { %3362 = shalt.err (!%p3359_p5)
}
 0x13b   :  { %408 = dma.hbm_to_vmem [thread:$0]  %s3977_s19, 64, %s406_s5, [#allocation42]  }
 0x13c   :  { %s3363_s8 = scalar_lea.hbm %s3837_s17, 16 }
 0x13d   :  { %p3364_p6 = scmp.ne.s32.totalorder %s3837_s17, %s3363_s8  ;;  %p3367_p7 = scmp.lt.u32.totalorder %s3363_s8, %s3837_s17 }
 0x13f   :  { %p3369_p8 = pnand %p3367_p7, %p3364_p6 }
 0x141   :  { %3372 = shalt.err (!%p3369_p8)
}
 0x142   :  { %s3373_s15 = scalar_lea.vmem %s132_s12, 16  ;;  %s3377_s16 = scalar_lea.vmem %s132_s12, 32 }
 0x143   :  { %p3374_p9 = scmp.ne.s32.totalorder %s132_s12, %s3373_s15  ;;  %p3378_p10 = scmp.lt.s32.totalorder %s132_s12, %s132_s12 }
 0x144   :  { %p3379_p11 = scmp.lt.s32.totalorder %s3377_s16, %s3373_s15 }
 0x146   :  { %p3380_p12 = por %p3379_p11, %p3378_p10 }
 0x148   :  { %p3381_p13 = pnand %p3380_p12, %p3374_p9 }
 0x14a   :  { %3384 = shalt.err (!%p3381_p13)
}
 0x14b   :  { %s6175_s22 = sld [smem:[#allocation66_spill]]  ;;  %s3799_s23 = smov [#allocation7]  }
 0x14c   :  { %134 = dma.hbm_to_vmem [thread:$0]  %s3837_s17, 16, %s132_s12, [#allocation3]  }
 0x14d   :  { %s151_s19 = sshll.u32 %s3799_s23, 4  ;;  %s3800_s13 = smov [#allocation10]   ;;  %s152_s19 = int_to_ptr.vmem [resolvable:$true] %s151_s19 }
 0x14e   :  { %s172_s24 = sshll.u32 %s3800_s13, 4  ;;  %s4156_s24 = int_to_ptr.vmem [resolvable:$true] %s172_s24 }
 0x151   :  { %s3385_s9 = scalar_lea.hbm %s6175_s22, 16 }
 0x152   :  { %p3386_p0 = scmp.ne.s32.totalorder %s6175_s22, %s3385_s9  ;;  %p3389_p1 = scmp.lt.u32.totalorder %s3385_s9, %s6175_s22 }
 0x154   :  { %p3391_p2 = pnand %p3389_p1, %p3386_p0 }
 0x156   :  { %3394 = shalt.err (!%p3391_p2)
}
 0x157   :  { %s3395_s26 = scalar_lea.vmem %s152_s19, 16  ;;  %s3399_s0 = scalar_lea.vmem %s152_s19, 32 }
 0x158   :  { %p3396_p3 = scmp.ne.s32.totalorder %s152_s19, %s3395_s26  ;;  %p3400_p4 = scmp.lt.s32.totalorder %s152_s19, %s152_s19 }
 0x159   :  { %p3401_p5 = scmp.lt.s32.totalorder %s3399_s0, %s3395_s26 }
 0x15b   :  { %p3402_p6 = por %p3401_p5, %p3400_p4 }
 0x15d   :  { %p3403_p7 = pnand %p3402_p6, %p3396_p3 }
 0x15f   :  { %3406 = shalt.err (!%p3403_p7)
}
 0x160   :  { %s6176_s17 = sld [smem:[#allocation67_spill]] }
 0x161   :  { %154 = dma.hbm_to_vmem [thread:$0]  %s6175_s22, 16, %s152_s19, [#allocation6]  }
 0x166   :  { %s3407_s28 = scalar_lea.hbm %s6176_s17, 512 }
 0x167   :  { %p3408_p8 = scmp.ne.s32.totalorder %s6176_s17, %s3407_s28  ;;  %p3411_p9 = scmp.lt.u32.totalorder %s3407_s28, %s6176_s17 }
 0x169   :  { %p3413_p10 = pnand %p3411_p9, %p3408_p8 }
 0x16b   :  { %3416 = shalt.err (!%p3413_p10)
}
 0x16c   :  { %s3417_s6 = scalar_lea.vmem %s4156_s24, 512  ;;  %p3422_p12 = scmp.lt.s32.totalorder %s4156_s24, %s4156_s24 }
 0x16d   :  { %p3418_p11 = scmp.ne.s32.totalorder %s4156_s24, %s3417_s6  ;;  %p3423_p13 = scmp.lt.s32.totalorder %s3417_s6, %s3417_s6 }
 0x16f   :  { %p3424_p0 = por %p3423_p13, %p3422_p12 }
 0x171   :  { %p3425_p1 = pnand %p3424_p0, %p3418_p11 }
 0x173   :  { %3428 = shalt.err (!%p3425_p1)
}
 0x174   :  { %s6177_s1 = sld [smem:[#allocation69_spill]]  ;;  %s3801_s7 = smov [#allocation13]  }
 0x175   :  { %178 = dma.hbm_to_vmem [thread:$0]  %s6176_s17, 512, %s4156_s24, [#allocation9], %s3785_s18, %s3785_s18, %s3786_s21  }
 0x176   :  { %s197_s4 = sshll.u32 %s3801_s7, 4  ;;  %s3802_s29 = smov [#allocation16]   ;;  %s198_s4 = int_to_ptr.vmem [resolvable:$true] %s197_s4 }
 0x177   :  { %s216_s2 = sshll.u32 %s3802_s29, 4  ;;  %s4174_s2 = int_to_ptr.vmem [resolvable:$true] %s216_s2 }
 0x17a   :  { %s3429_s27 = scalar_lea.hbm %s6177_s1, 16 }
 0x17b   :  { %p3430_p2 = scmp.ne.s32.totalorder %s6177_s1, %s3429_s27  ;;  %p3433_p3 = scmp.lt.u32.totalorder %s3429_s27, %s6177_s1 }
 0x17d   :  { %p3435_p4 = pnand %p3433_p3, %p3430_p2 }
 0x17f   :  { %3438 = shalt.err (!%p3435_p4)
}
 0x180   :  { %s3439_s5 = scalar_lea.vmem %s198_s4, 16  ;;  %s3443_s10 = scalar_lea.vmem %s198_s4, 32 }
 0x181   :  { %p3440_p5 = scmp.ne.s32.totalorder %s198_s4, %s3439_s5  ;;  %p3444_p6 = scmp.lt.s32.totalorder %s198_s4, %s198_s4 }
 0x182   :  { %p3445_p7 = scmp.lt.s32.totalorder %s3443_s10, %s3439_s5 }
 0x184   :  { %p3446_p8 = por %p3445_p7, %p3444_p6 }
 0x186   :  { %p3447_p9 = pnand %p3446_p8, %p3440_p5 }
 0x188   :  { %3450 = shalt.err (!%p3447_p9)
}
 0x189   :  { %s6178_s12 = sld [smem:[#allocation70_spill]] }
 0x18a   :  { %200 = dma.hbm_to_vmem [thread:$0]  %s6177_s1, 16, %s198_s4, [#allocation12]  }
 0x18f   :  { %s3451_s11 = scalar_lea.hbm %s6178_s12, 512 }
 0x190   :  { %p3452_p10 = scmp.ne.s32.totalorder %s6178_s12, %s3451_s11  ;;  %p3455_p11 = scmp.lt.u32.totalorder %s3451_s11, %s6178_s12 }
 0x192   :  { %p3457_p12 = pnand %p3455_p11, %p3452_p10 }
 0x194   :  { %3460 = shalt.err (!%p3457_p12)
}
 0x195   :  { %s3461_s14 = scalar_lea.vmem %s4174_s2, 512  ;;  %p3466_p0 = scmp.lt.s32.totalorder %s4174_s2, %s4174_s2 }
 0x196   :  { %p3462_p13 = scmp.ne.s32.totalorder %s4174_s2, %s3461_s14  ;;  %p3467_p1 = scmp.lt.s32.totalorder %s3461_s14, %s3461_s14 }
 0x198   :  { %p3468_p2 = por %p3467_p1, %p3466_p0 }
 0x19a   :  { %p3469_p3 = pnand %p3468_p2, %p3462_p13 }
 0x19c   :  { %3472 = shalt.err (!%p3469_p3)
}
 0x19d   :  { %s6179_s8 = sld [smem:[#allocation72_spill]]  ;;  %s3803_s15 = smov [#allocation19]  }
 0x19e   :  { %222 = dma.hbm_to_vmem [thread:$0]  %s6178_s12, 512, %s4174_s2, [#allocation15], %s3785_s18, %s3785_s18, %s3786_s21  }
 0x19f   :  { %s243_s16 = sshll.u32 %s3803_s15, 4  ;;  %s3804_s22 = smov [#allocation22]   ;;  %s244_s16 = int_to_ptr.vmem [resolvable:$true] %s243_s16 }
 0x1a0   :  { %s263_s23 = sshll.u32 %s3804_s22, 4  ;;  %s264_s23 = int_to_ptr.vmem [resolvable:$true] %s263_s23 }
 0x1a3   :  { %s3473_s19 = scalar_lea.hbm %s6179_s8, 16 }
 0x1a4   :  { %p3474_p4 = scmp.ne.s32.totalorder %s6179_s8, %s3473_s19  ;;  %p3477_p5 = scmp.lt.u32.totalorder %s3473_s19, %s6179_s8 }
 0x1a6   :  { %p3479_p6 = pnand %p3477_p5, %p3474_p4 }
 0x1a8   :  { %3482 = shalt.err (!%p3479_p6)
}
 0x1a9   :  { %s3483_s13 = scalar_lea.vmem %s244_s16, 16  ;;  %s3487_s24 = scalar_lea.vmem %s244_s16, 32 }
 0x1aa   :  { %p3484_p7 = scmp.ne.s32.totalorder %s244_s16, %s3483_s13  ;;  %p3488_p8 = scmp.lt.s32.totalorder %s244_s16, %s244_s16 }
 0x1ab   :  { %p3489_p9 = scmp.lt.s32.totalorder %s3487_s24, %s3483_s13 }
 0x1ad   :  { %p3490_p10 = por %p3489_p9, %p3488_p8 }
 0x1af   :  { %p3491_p11 = pnand %p3490_p10, %p3484_p7 }
 0x1b1   :  { %3494 = shalt.err (!%p3491_p11)
}
 0x1b2   :  { %s6180_s9 = sld [smem:[#allocation73_spill]] }
 0x1b3   :  { %246 = dma.hbm_to_vmem [thread:$0]  %s6179_s8, 16, %s244_s16, [#allocation18]  }
 0x1b8   :  { %s3495_s26 = scalar_lea.hbm %s6180_s9, 16 }
 0x1b9   :  { %p3496_p12 = scmp.ne.s32.totalorder %s6180_s9, %s3495_s26  ;;  %p3499_p13 = scmp.lt.u32.totalorder %s3495_s26, %s6180_s9 }
 0x1bb   :  { %p3501_p0 = pnand %p3499_p13, %p3496_p12 }
 0x1bd   :  { %3504 = shalt.err (!%p3501_p0)
}
 0x1be   :  { %s3505_s0 = scalar_lea.vmem %s264_s23, 16  ;;  %s3509_s17 = scalar_lea.vmem %s264_s23, 32 }
 0x1bf   :  { %p3506_p1 = scmp.ne.s32.totalorder %s264_s23, %s3505_s0  ;;  %p3510_p2 = scmp.lt.s32.totalorder %s264_s23, %s264_s23 }
 0x1c0   :  { %p3511_p3 = scmp.lt.s32.totalorder %s3509_s17, %s3505_s0 }
 0x1c2   :  { %p3512_p4 = por %p3511_p3, %p3510_p2 }
 0x1c4   :  { %p3513_p5 = pnand %p3512_p4, %p3506_p1 }
 0x1c6   :  { %3516 = shalt.err (!%p3513_p5)
}
 0x1c7   :  { %s6181_s28 = sld [smem:[#allocation74_spill]]  ;;  %s3805_s6 = smov [#allocation25]  }
 0x1c8   :  { %266 = dma.hbm_to_vmem [thread:$0]  %s6180_s9, 16, %s264_s23, [#allocation21]  }
 0x1c9   :  { %s284_s1 = sshll.u32 %s3805_s6, 4  ;;  %s3806_s7 = smov [#allocation28]   ;;  %s285_s1 = int_to_ptr.vmem [resolvable:$true] %s284_s1 }
 0x1ca   :  { %s309_s4 = sshll.u32 %s3806_s7, 4  ;;  %s310_s4 = int_to_ptr.vmem [resolvable:$true] %s309_s4 }
 0x1cd   :  { %s3517_s29 = scalar_lea.hbm %s6181_s28, 512 }
 0x1ce   :  { %p3518_p6 = scmp.ne.s32.totalorder %s6181_s28, %s3517_s29  ;;  %p3521_p7 = scmp.lt.u32.totalorder %s3517_s29, %s6181_s28 }
 0x1d0   :  { %p3523_p8 = pnand %p3521_p7, %p3518_p6 }
 0x1d2   :  { %3526 = shalt.err (!%p3523_p8)
}
 0x1d3   :  { %s3527_s2 = scalar_lea.vmem %s285_s1, 512  ;;  %p3532_p10 = scmp.lt.s32.totalorder %s285_s1, %s285_s1 }
 0x1d4   :  { %p3528_p9 = scmp.ne.s32.totalorder %s285_s1, %s3527_s2  ;;  %p3533_p11 = scmp.lt.s32.totalorder %s3527_s2, %s3527_s2 }
 0x1d6   :  { %p3534_p12 = por %p3533_p11, %p3532_p10 }
 0x1d8   :  { %p3535_p13 = pnand %p3534_p12, %p3528_p9 }
 0x1da   :  { %3538 = shalt.err (!%p3535_p13)
}
 0x1db   :  { %s6182_s27 = sld [smem:[#allocation75_spill]] }
 0x1dc   :  { %290 = dma.hbm_to_vmem [thread:$0]  %s6181_s28, 512, %s285_s1, [#allocation24], %s3785_s18, %s3785_s18, %s3786_s21  }
 0x1e1   :  { %s3539_s5 = scalar_lea.hbm %s6182_s27, 16 }
 0x1e2   :  { %p3540_p0 = scmp.ne.s32.totalorder %s6182_s27, %s3539_s5  ;;  %p3543_p1 = scmp.lt.u32.totalorder %s3539_s5, %s6182_s27 }
 0x1e4   :  { %p3545_p2 = pnand %p3543_p1, %p3540_p0 }
 0x1e6   :  { %3548 = shalt.err (!%p3545_p2)
}
 0x1e7   :  { %s3549_s10 = scalar_lea.vmem %s310_s4, 16  ;;  %s3553_s12 = scalar_lea.vmem %s310_s4, 32 }
 0x1e8   :  { %p3550_p3 = scmp.ne.s32.totalorder %s310_s4, %s3549_s10  ;;  %p3554_p4 = scmp.lt.s32.totalorder %s310_s4, %s310_s4 }
 0x1e9   :  { %p3555_p5 = scmp.lt.s32.totalorder %s3553_s12, %s3549_s10 }
 0x1eb   :  { %p3556_p6 = por %p3555_p5, %p3554_p4 }
 0x1ed   :  { %p3557_p7 = pnand %p3556_p6, %p3550_p3 }
 0x1ef   :  { %3560 = shalt.err (!%p3557_p7)
}
 0x1f0   :  { %s6183_s11 = sld [smem:[#allocation76_spill]]  ;;  %s3807_s14 = smov [#allocation31]  }
 0x1f1   :  { %312 = dma.hbm_to_vmem [thread:$0]  %s6182_s27, 16, %s310_s4, [#allocation27]  }
 0x1f2   :  { %s329_s8 = sshll.u32 %s3807_s14, 4  ;;  %s3808_s15 = smov [#allocation34]   ;;  %s330_s8 = int_to_ptr.vmem [resolvable:$true] %s329_s8 }
 0x1f3   :  { %s350_s16 = sshll.u32 %s3808_s15, 4  ;;  %s4211_s16 = int_to_ptr.vmem [resolvable:$true] %s350_s16 }
 0x1f6   :  { %s3561_s22 = scalar_lea.hbm %s6183_s11, 16 }
 0x1f7   :  { %p3562_p8 = scmp.ne.s32.totalorder %s6183_s11, %s3561_s22  ;;  %p3565_p9 = scmp.lt.u32.totalorder %s3561_s22, %s6183_s11 }
 0x1f9   :  { %p3567_p10 = pnand %p3565_p9, %p3562_p8 }
 0x1fb   :  { %3570 = shalt.err (!%p3567_p10)
}
 0x1fc   :  { %s3571_s23 = scalar_lea.vmem %s330_s8, 16  ;;  %s3575_s19 = scalar_lea.vmem %s330_s8, 32 }
 0x1fd   :  { %p3572_p11 = scmp.ne.s32.totalorder %s330_s8, %s3571_s23  ;;  %p3576_p12 = scmp.lt.s32.totalorder %s330_s8, %s330_s8 }
 0x1fe   :  { %p3577_p13 = scmp.lt.s32.totalorder %s3575_s19, %s3571_s23 }
 0x200   :  { %p3578_p0 = por %p3577_p13, %p3576_p12 }
 0x202   :  { %p3579_p1 = pnand %p3578_p0, %p3572_p11 }
 0x204   :  { %3582 = shalt.err (!%p3579_p1)
}
 0x205   :  { %s6184_s13 = sld [smem:[#allocation77_spill]] }
 0x206   :  { %332 = dma.hbm_to_vmem [thread:$0]  %s6183_s11, 16, %s330_s8, [#allocation30]  }
 0x20b   :  { %s3583_s24 = scalar_lea.hbm %s6184_s13, 512 }
 0x20c   :  { %p3584_p2 = scmp.ne.s32.totalorder %s6184_s13, %s3583_s24  ;;  %p3587_p3 = scmp.lt.u32.totalorder %s3583_s24, %s6184_s13 }
 0x20e   :  { %p3589_p4 = pnand %p3587_p3, %p3584_p2 }
 0x210   :  { %3592 = shalt.err (!%p3589_p4)
}
 0x211   :  { %s3593_s9 = scalar_lea.vmem %s4211_s16, 512  ;;  %p3598_p6 = scmp.lt.s32.totalorder %s4211_s16, %s4211_s16 }
 0x212   :  { %p3594_p5 = scmp.ne.s32.totalorder %s4211_s16, %s3593_s9  ;;  %p3599_p7 = scmp.lt.s32.totalorder %s3593_s9, %s3593_s9 }
 0x214   :  { %p3600_p8 = por %p3599_p7, %p3598_p6 }
 0x216   :  { %p3601_p9 = pnand %p3600_p8, %p3594_p5 }
 0x218   :  { %3604 = shalt.err (!%p3601_p9)
}
 0x219   :  { %s6185_s26 = sld [smem:[#allocation79_spill]]  ;;  %s3809_s0 = smov [#allocation37]  }
 0x21a   :  { %356 = dma.hbm_to_vmem [thread:$0]  %s6184_s13, 512, %s4211_s16, [#allocation33], %s3785_s18, %s3785_s18, %s3786_s21  }
 0x21b   :  { %s375_s17 = sshll.u32 %s3809_s0, 4  ;;  %s3810_s28 = smov [#allocation40]   ;;  %s376_s17 = int_to_ptr.vmem [resolvable:$true] %s375_s17 }
 0x21c   :  { %s395_s6 = sshll.u32 %s3810_s28, 4  ;;  %s396_s6 = int_to_ptr.vmem [resolvable:$true] %s395_s6 }
 0x21f   :  { %s3605_s1 = scalar_lea.hbm %s6185_s26, 16 }
 0x220   :  { %p3606_p10 = scmp.ne.s32.totalorder %s6185_s26, %s3605_s1  ;;  %p3609_p11 = scmp.lt.u32.totalorder %s3605_s1, %s6185_s26 }
 0x222   :  { %p3611_p12 = pnand %p3609_p11, %p3606_p10 }
 0x224   :  { %3614 = shalt.err (!%p3611_p12)
}
 0x225   :  { %s3615_s7 = scalar_lea.vmem %s376_s17, 16  ;;  %s3619_s4 = scalar_lea.vmem %s376_s17, 32 }
 0x226   :  { %p3616_p13 = scmp.ne.s32.totalorder %s376_s17, %s3615_s7  ;;  %p3620_p0 = scmp.lt.s32.totalorder %s376_s17, %s376_s17 }
 0x227   :  { %p3621_p1 = scmp.lt.s32.totalorder %s3619_s4, %s3615_s7 }
 0x229   :  { %p3622_p2 = por %p3621_p1, %p3620_p0 }
 0x22b   :  { %p3623_p3 = pnand %p3622_p2, %p3616_p13 }
 0x22d   :  { %3626 = shalt.err (!%p3623_p3)
}
 0x22e   :  { %s6186_s18 = sld [smem:[#allocation80_spill]] }
 0x22f   :  { %378 = dma.hbm_to_vmem [thread:$0]  %s6185_s26, 16, %s376_s17, [#allocation36]  }
 0x234   :  { %s3627_s21 = scalar_lea.hbm %s6186_s18, 64 }
 0x235   :  { %p3628_p4 = scmp.ne.s32.totalorder %s6186_s18, %s3627_s21  ;;  %p3631_p5 = scmp.lt.u32.totalorder %s3627_s21, %s6186_s18 }
 0x237   :  { %p3633_p6 = pnand %p3631_p5, %p3628_p4 }
 0x239   :  { %3636 = shalt.err (!%p3633_p6)
}
 0x23a   :  { %s3637_s29 = scalar_lea.vmem %s396_s6, 64  ;;  %p3642_p8 = scmp.lt.s32.totalorder %s396_s6, %s396_s6 }
 0x23b   :  { %p3638_p7 = scmp.ne.s32.totalorder %s396_s6, %s3637_s29  ;;  %p3643_p9 = scmp.lt.s32.totalorder %s3637_s29, %s3637_s29 }
 0x23d   :  { %p3644_p10 = por %p3643_p9, %p3642_p8 }
 0x23f   :  { %p3645_p11 = pnand %p3644_p10, %p3638_p7 }
 0x241   :  { %3648 = shalt.err (!%p3645_p11)
}
 0x242   :  { %s6187_s2 = sld [smem:[#allocation82_spill]]  ;;  %s3811_s27 = smov [#allocation43]  }
 0x243   :  { %398 = dma.hbm_to_vmem [thread:$0]  %s6186_s18, 64, %s396_s6, [#allocation39]  }
 0x244   :  { %s417_s5 = sshll.u32 %s3811_s27, 4  ;;  %s3812_s10 = smov [#allocation44]   ;;  %s418_s5 = int_to_ptr.vmem [resolvable:$true] %s417_s5 }
 0x245   :  { %s427_s12 = sshll.u32 %s3812_s10, 4  ;;  %s428_s12 = int_to_ptr.vmem [resolvable:$true] %s427_s12 }
 0x248   :  { %s3649_s11 = scalar_lea.hbm %s6187_s2, 16 }
 0x249   :  { %p3650_p12 = scmp.ne.s32.totalorder %s6187_s2, %s3649_s11  ;;  %p3653_p13 = scmp.lt.u32.totalorder %s3649_s11, %s6187_s2 }
 0x24b   :  { %p3655_p0 = pnand %p3653_p13, %p3650_p12 }
 0x24d   :  { %3658 = shalt.err (!%p3655_p0)
}
 0x24e   :  { %s3659_s14 = scalar_lea.vmem %s418_s5, 16  ;;  %s3663_s8 = scalar_lea.vmem %s418_s5, 32 }
 0x24f   :  { %p3660_p1 = scmp.ne.s32.totalorder %s418_s5, %s3659_s14  ;;  %p3664_p2 = scmp.lt.s32.totalorder %s418_s5, %s418_s5 }
 0x250   :  { %p3665_p3 = scmp.lt.s32.totalorder %s3663_s8, %s3659_s14 }
 0x252   :  { %p3666_p4 = por %p3665_p3, %p3664_p2 }
 0x254   :  { %p3667_p5 = pnand %p3666_p4, %p3660_p1 }
 0x256   :  { %3670 = shalt.err (!%p3667_p5)
}
 0x257   :  { %s6188_s15 = sld [smem:[#allocation83_spill]] }
 0x258   :  { %420 = dma.hbm_to_vmem [thread:$0]  %s6187_s2, 16, %s418_s5, [#allocation42]  }
 0x25d   :  { %s3671_s16 = scalar_lea.hbm %s6188_s15, 16 }
 0x25e   :  { %p3672_p6 = scmp.ne.s32.totalorder %s6188_s15, %s3671_s16  ;;  %p3675_p7 = scmp.lt.u32.totalorder %s3671_s16, %s6188_s15 }
 0x260   :  { %p3677_p8 = pnand %p3675_p7, %p3672_p6 }
 0x262   :  { %3680 = shalt.err (!%p3677_p8)
}
 0x263   :  { %s3681_s22 = scalar_lea.vmem %s428_s12, 16  ;;  %s3685_s23 = scalar_lea.vmem %s428_s12, 32 }
 0x264   :  { %p3682_p9 = scmp.ne.s32.totalorder %s428_s12, %s3681_s22  ;;  %p3686_p10 = scmp.lt.s32.totalorder %s428_s12, %s428_s12 }
 0x265   :  { %p3687_p11 = scmp.lt.s32.totalorder %s3685_s23, %s3681_s22 }
 0x267   :  { %p3688_p12 = por %p3687_p11, %p3686_p10 }
 0x269   :  { %p3689_p13 = pnand %p3688_p12, %p3682_p9 }
 0x26b   :  { %3692 = shalt.err (!%p3689_p13)
}
 0x26c   :  { %430 = dma.hbm_to_vmem [thread:$0]  %s6188_s15, 16, %s428_s12, [#allocation45]  }
 0x26d   :  { %3703 = dma.done.wait [#allocation3], 16  }
 0x26e   :  { %3704 = vsyncadd [#allocation3], 4294967280 }
 0x26f   :  { %3705 = dma.done.wait [#allocation6], 32  }
 0x270   :  { %3706 = vsyncadd [#allocation6], 4294967264 }
 0x271   :  { %3707 = dma.done.wait [#allocation9], 1024  }
 0x272   :  { %3708 = vsyncadd [#allocation9], 4294966272 }
 0x273   :  { %3709 = dma.done.wait [#allocation12], 32  }
 0x274   :  { %3710 = vsyncadd [#allocation12], 4294967264 }
 0x275   :  { %3711 = dma.done.wait [#allocation15], 528  }
 0x276   :  { %3712 = vsyncadd [#allocation15], 4294966768 }
 0x277   :  { %3713 = dma.done.wait [#allocation18], 528  }
 0x278   :  { %3714 = vsyncadd [#allocation18], 4294966768 }
 0x279   :  { %3715 = dma.done.wait [#allocation21], 32  }
 0x27a   :  { %3716 = vsyncadd [#allocation21], 4294967264 }
 0x27b   :  { %3717 = dma.done.wait [#allocation24], 1024  }
 0x27c   :  { %3718 = vsyncadd [#allocation24], 4294966272 }
 0x27d   :  { %3719 = dma.done.wait [#allocation27], 528  }
 0x27e   :  { %3720 = vsyncadd [#allocation27], 4294966768 }
 0x27f   :  { %3721 = dma.done.wait [#allocation30], 32  }
 0x280   :  { %3722 = vsyncadd [#allocation30], 4294967264 }
 0x281   :  { %3723 = dma.done.wait [#allocation33], 1024  }
 0x282   :  { %3724 = vsyncadd [#allocation33], 4294966272 }
 0x283   :  { %3725 = dma.done.wait [#allocation36], 32  }
 0x284   :  { %3726 = vsyncadd [#allocation36], 4294967264 }
 0x285   :  { %3727 = dma.done.wait [#allocation39], 80  }
 0x286   :  { %3728 = vsyncadd [#allocation39], 4294967216 }
 0x287   :  { %3729 = dma.done.wait [#allocation42], 80  }
 0x288   :  { %3730 = vsyncadd [#allocation42], 4294967216 }
 0x289   :  { %3731 = dma.done.wait [#allocation45], 16  }
 0x28a   :  { %3732 = vsyncadd [#allocation45], 4294967280  ;;  %v4245_v0 = vld [vmem:[#allocation5] sm:$0x1]  ;;  %v4248_v2 = vld [vmem:[#allocation13] sm:$0x1] }
 0x28b   :  { %v777_v1 = vand.u32 2147483647, %v4245_v0  ;;  %v1146_v4 = vand.u32 2147483647, %v4248_v2  ;;  %v4251_v5 = vld [vmem:[#allocation10] sm:$0xff]  ;;  %v4253_v6 = vld [vmem:[#allocation10 + $0x8] sm:$0xff]  ;;  %vm775_vm0 = vcmp.ne.f32.partialorder %v4245_v0, %v4245_v0  ;;  %vm1144_vm1 = vcmp.ne.f32.partialorder %v4248_v2, %v4248_v2 }
 0x28c   :  { %v4255_v8 = vld [vmem:[#allocation10 + $0x10] sm:$0xff]  ;;  %v4257_v9 = vld [vmem:[#allocation10 + $0x18] sm:$0xff]  ;;  %s6189_s19 = sld [smem:[#allocation64_spill]]  ;;  %v911_v11 = vand.u32 2147483647, %v4251_v5  ;;  %s6190_s13 = sld [smem:[#allocation68_spill]]  ;;  %vm903_vm5 = vcmp.ne.f32.partialorder %v4251_v5, %v4251_v5  ;;  %vm904_vm7 = vcmp.ne.f32.partialorder %v4253_v6, %v4253_v6 }
 0x28d   :  { %v778_v3 = vsub.f32 0.0, %v777_v1  ;;  %v1147_v10 = vsub.f32 0.0, %v1146_v4  ;;  %v912_v12 = vand.u32 2147483647, %v4253_v6  ;;  %v913_v14 = vand.u32 2147483647, %v4255_v8 }
 0x28e   :  { %v914_v15 = vand.u32 2147483647, %v4257_v9  ;;  %v915_v16 = vsub.f32 0.0, %v911_v11  ;;  %v4263_v20 = vld [vmem:[#allocation7] sm:$0x1]  ;;  %v774_v31 = vmax.f32 %v4245_v0, 0.0  ;;  %vm905_vm9 = vcmp.ne.f32.partialorder %v4255_v8, %v4255_v8 }
 0x28f   :  { %v779_v7 = vmul.f32 1.442695, %v778_v3  ;;  %v1148_v13 = vmul.f32 1.442695, %v1147_v10  ;;  %v916_v17 = vsub.f32 0.0, %v912_v12  ;;  %v917_v18 = vsub.f32 0.0, %v913_v14 }
 0x290   :  { %v918_v19 = vsub.f32 0.0, %v914_v15  ;;  %v919_v21 = vmul.f32 1.442695, %v915_v16  ;;  %v797_v26 = vmul.f32 %v4263_v20, %v4263_v20  ;;  %v4270_v27 = vld [vmem:[#allocation14] sm:$0x1]  ;;  %v1143_v39 = vmax.f32 %v4248_v2, 0.0 }
 0x291   :  { %2807 = vpow2.f32 %v779_v7  ;;  %v921_v22 = vmul.f32 1.442695, %v916_v17  ;;  %v923_v23 = vmul.f32 1.442695, %v917_v18  ;;  %v1166_v30 = vmul.f32 %v4270_v27, %v4270_v27  ;;  %s6203_s24 = sld [smem:[#allocation86_spill]]  ;;  %s6204_s9 = sld [smem:[#allocation88_spill]] }
 0x292   :  { %2809 = vpow2.f32 %v1148_v13  ;;  %v925_v24 = vmul.f32 1.442695, %v918_v19  ;;  %v4266_v25 = vld [vmem:[%s6189_s19] sm:$0xff]  ;;  %v4273_v28 = vld [vmem:[%s6189_s19 + $0x8] sm:$0xff]  ;;  %v4276_v29 = vld [vmem:[%s6189_s19 + $0x10] sm:$0xff]  ;;  %v4290_v38 = vmul.f32 0.5, %v797_v26  ;;  %vm906_vm11 = vcmp.ne.f32.partialorder %v4257_v9, %v4257_v9 }
 0x293   :  { %2811 = vpow2.f32 %v919_v21  ;;  %v541_v32 = vand.u32 2147483647, %v4266_v25  ;;  %v4283_v33 = vld [vmem:[%s6190_s13] sm:$0xff]  ;;  %v4286_v34 = vld [vmem:[%s6190_s13 + $0x8] sm:$0xff]  ;;  %v542_v35 = vand.u32 2147483647, %v4273_v28 }
 0x294   :  { %2813 = vpow2.f32 %v921_v22  ;;  %v543_v36 = vand.u32 2147483647, %v4276_v29  ;;  %v899_v40 = vmax.f32 %v4251_v5, 0.0  ;;  %v4294_v43 = vmul.f32 0.5, %v1166_v30  ;;  %v4298_v45 = vld [vmem:[%s6189_s19 + $0x18] sm:$0xff]  ;;  %v4301_v47 = vld [vmem:[%s6190_s13 + $0x10] sm:$0xff] }
 0x295   :  { %2815 = vpow2.f32 %v923_v23  ;;  %v545_v41 = vsub.f32 0.0, %v541_v32  ;;  %v900_v44 = vmax.f32 %v4253_v6, 0.0  ;;  %v546_v46 = vsub.f32 0.0, %v542_v35  ;;  %v4304_v48 = vld [vmem:[%s6190_s13 + $0x18] sm:$0xff]  ;;  %s6209_s26 = sld [smem:[#allocation65_spill]]  ;;  %s6212_s0 = sld [smem:[#allocation63_spill]] }
 0x296   :  { %2817 = vpow2.f32 %v925_v24  ;;  %v991_v49 = vmul.f32 %v4283_v33, %v4283_v33  ;;  %v992_v50 = vmul.f32 %v4286_v34, %v4286_v34  ;;  %v547_v51 = vsub.f32 0.0, %v543_v36  ;;  %s6227_s17 = sld [smem:[#allocation71_spill]]  ;;  %s6262_s28 = sld [smem:[#allocation92_spill]] }
 0x297   :  { %v549_v52 = vmul.f32 1.442695, %v545_v41  ;;  %v901_v54 = vmax.f32 %v4255_v8, 0.0  ;;  %v902_v55 = vmax.f32 %v4257_v9, 0.0  ;;  %v551_v56 = vmul.f32 1.442695, %v546_v46 }
 0x298   :  { %v544_v59 = vand.u32 2147483647, %v4298_v45  ;;  %v4315_v60 = vmul.f32 %v4301_v47, %v4301_v47  ;;  %v4319_v61 = vmul.f32 %v4304_v48, %v4304_v48  ;;  %v553_v62 = vmul.f32 1.442695, %v547_v51  ;;  %s6268_s6 = sld [smem:[#allocation78_spill]]  ;;  %s6287_s1 = sld [smem:[#allocation81_spill]] }
 0x299   :  { %v4321_v3 = vmul.f32 0.5, %v991_v49  ;;  %v4323_v4 = vmul.f32 0.5, %v992_v50  ;;  %vm800_vm6 = vcmask 253952   ;;  %vm633_vm15 = vcmask 261120   ;;  %s6290_s7 = sld [smem:[#allocation90_spill]]  ;;  %s6382_s4 = sld [smem:[#allocation89_spill]] }
 0x29a   :  { %v548_v17 = vsub.f32 0.0, %v544_v59  ;;  %s6384_s18 = sld [smem:[#allocation93_spill]]  ;;  %s6392_s8 = sld [smem:[#allocation87_spill]] }
 0x29b   :  { %v2808_v37 = vpop.eup %2807 }
 0x29c   :  { %v781_v42 = vadd.f32 1.0, %v2808_v37  ;;  %v2810_v53 = vpop.eup %2809  ;;  %v784_v57 = vmul.f32 -0.5, %v2808_v37  ;;  %v787_v10 = vand.u32 2147483647, %v2808_v37  ;;  %v555_v46 = vmul.f32 1.442695, %v548_v17 }
 0x29d   :  { %v1150_v58 = vadd.f32 1.0, %v2810_v53  ;;  %v2812_v63 = vpop.eup %2811  ;;  %v1153_v1 = vmul.f32 -0.5, %v2810_v53  ;;  %v1156_v19 = vand.u32 2147483647, %v2810_v53 }
 0x29e   :  { %2819 = vlog2.f32 %v781_v42  ;;  %v2814_v7 = vpop.eup %2813  ;;  %v927_v11 = vadd.f32 1.0, %v2812_v63  ;;  %v930_v12 = vmul.f32 -0.5, %v2812_v63  ;;  %v785_v14 = vadd.f32 1.0, %v784_v57 }
 0x29f   :  { %2821 = vpow2.f32 %v549_v52  ;;  %v2816_v13 = vpop.eup %2815  ;;  %v936_v15 = vadd.f32 1.0, %v2814_v7  ;;  %v939_v16 = vmul.f32 -0.5, %v2814_v7  ;;  %v933_v21 = vand.u32 2147483647, %v2812_v63 }
 0x2a0   :  { %2823 = vpow2.f32 %v551_v56  ;;  %v4327_v18 = vpop.eup %2817  ;;  %v945_v22 = vadd.f32 1.0, %v2816_v13  ;;  %v1154_v23 = vadd.f32 1.0, %v1153_v1  ;;  %v942_v24 = vand.u32 2147483647, %v2814_v7 }
 0x2a1   :  { %2825 = vlog2.f32 %v1150_v58  ;;  %v948_v26 = vmul.f32 -0.5, %v2816_v13  ;;  %v931_v30 = vadd.f32 1.0, %v930_v12  ;;  %v940_v32 = vadd.f32 1.0, %v939_v16 }
 0x2a2   :  { %2827 = vpow2.f32 %v553_v62  ;;  %v954_v35 = vadd.f32 1.0, %v4327_v18  ;;  %v786_v36 = vmul.f32 %v2808_v37, %v785_v14  ;;  %vm4332_vm2 = vcmp.lt.f32.partialorder %v787_v10, 0.0004427343 }
 0x2a3   :  { %2829 = vlog2.f32 %v927_v11  ;;  %v951_v42 = vand.u32 2147483647, %v2816_v13  ;;  %vm4336_vm3 = vcmp.lt.f32.partialorder %v1156_v19, 0.0004427343  ;;  %vm4340_vm4 = vcmp.lt.f32.partialorder %v933_v21, 0.0004427343 }
 0x2a4   :  { %2831 = vlog2.f32 %v936_v15  ;;  %v957_v52 = vmul.f32 -0.5, %v4327_v18  ;;  %v1155_v57 = vmul.f32 %v2810_v53, %v1154_v23  ;;  %v949_v58 = vadd.f32 1.0, %v948_v26  ;;  %v771_v26 = vld [vmem:[#allocation2] sm:$0x1] }
 0x2a5   :  { %2833 = vlog2.f32 %v945_v22  ;;  %v960_v59 = vand.u32 2147483647, %v4327_v18  ;;  %v932_v1 = vmul.f32 %v2812_v63, %v931_v30  ;;  %v941_v10 = vmul.f32 %v2814_v7, %v940_v32 }
 0x2a6   :  { %2835 = vlog2.f32 %v954_v35  ;;  %vm4354_vm8 = vcmp.lt.f32.partialorder %v942_v24, 0.0004427343  ;;  %vm4363_vm10 = vcmp.lt.f32.partialorder %v951_v42, 0.0004427343  ;;  %v958_v19 = vadd.f32 1.0, %v957_v52 }
 0x2a7   :  { %2837 = vpow2.f32 %v555_v46  ;;  %v950_v21 = vmul.f32 %v2816_v13, %v949_v58  ;;  %vm4374_vm12 = vcmp.lt.f32.partialorder %v960_v59, 0.0004427343 }
 0x2a8   :  { %v2820_v49 = vpop.eup %2819 }
 0x2a9   :  { %v4345_v56 = vpop.eup %2821  ;;  %v783_v37 = vmul.f32 0.6931472, %v2820_v49 }
 0x2aa   :  { %v4350_v62 = vpop.eup %2823  ;;  %v557_v53 = vadd.f32 1.0, %v4345_v56  ;;  %v560_v23 = vmul.f32 -0.5, %v4345_v56  ;;  %v563_v32 = vand.u32 2147483647, %v4345_v56 }
 0x2ab   :  { %v2826_v12 = vpop.eup %2825  ;;  %v789_v14 = vsel %vm4332_vm2, %v786_v36, %v783_v37  ;;  %v566_v63 = vadd.f32 1.0, %v4350_v62  ;;  %v569_v50 = vmul.f32 -0.5, %v4350_v62  ;;  %v1140_v37 = vld [vmem:[#allocation11] sm:$0x1]  ;;  %vm534_vm2 = vcmp.ne.f32.partialorder %v4273_v28, %v4273_v28 }
 0x2ac   :  { %v4368_v7 = vpop.eup %2827  ;;  %v790_v16 = vadd.f32 %v789_v14, %v774_v31  ;;  %v1152_v17 = vmul.f32 0.6931472, %v2826_v12  ;;  %2839 = vlog2.f32 %v557_v53  ;;  %v561_v12 = vadd.f32 1.0, %v560_v23 }
 0x2ad   :  { %2841 = vlog2.f32 %v566_v63  ;;  %v2830_v24 = vpop.eup %2829  ;;  %v575_v13 = vadd.f32 1.0, %v4368_v7  ;;  %v570_v11 = vadd.f32 1.0, %v569_v50  ;;  %vm4447_vm13 = vcmp.lt.f32.partialorder %v563_v32, 0.0004427343 }
 0x2ae   :  { %v791_v31 = vsel %vm775_vm0, %v4245_v0, %v790_v16  ;;  %v1158_v30 = vsel %vm4336_vm3, %v1155_v57, %v1152_v17  ;;  %v2832_v35 = vpop.eup %2831  ;;  %v929_v42 = vmul.f32 0.6931472, %v2830_v24  ;;  %v959_v0 = vmul.f32 %v4327_v18, %v958_v19 }
 0x2af   :  { %2843 = vlog2.f32 %v791_v31  ;;  %v792_v36 = vmul.f32 %v791_v31, %v4263_v20  ;;  %v1159_v41 = vadd.f32 %v1158_v30, %v1143_v39  ;;  %v2834_v46 = vpop.eup %2833  ;;  %v938_v49 = vmul.f32 0.6931472, %v2832_v35 }
 0x2b0   :  { %2845 = vlog2.f32 %v575_v13  ;;  %v935_v39 = vsel %vm4340_vm4, %v932_v1, %v929_v42  ;;  %v947_v57 = vmul.f32 0.6931472, %v2834_v46  ;;  %v2836_v58 = vpop.eup %2835  ;;  %v562_v22 = vmul.f32 %v4345_v56, %v561_v12 }
 0x2b1   :  { %v4392_v52 = vadd.f32 %v792_v36, %v771_v26  ;;  %v1160_v20 = vsel %vm1144_vm1, %v4248_v2, %v1159_v41  ;;  %v944_v18 = vsel %vm4354_vm8, %v941_v10, %v938_v49  ;;  %v963_v53 = vadd.f32 %v935_v39, %v899_v40  ;;  %v4420_v14 = vpop.eup %2837 }
 0x2b2   :  { %v1161_v59 = vmul.f32 %v1160_v20, %v4270_v27  ;;  %2847 = vlog2.f32 %v1160_v20  ;;  %v953_v2 = vsel %vm4363_vm10, %v950_v21, %v947_v57  ;;  %v956_v51 = vmul.f32 0.6931472, %v2836_v58 }
 0x2b3   :  { %886 = vst.msk [vmem:[%s6203_s24] sm:$0x1] %vm800_vm6, %v4392_v52  ;;  %v964_v1 = vadd.f32 %v944_v18, %v900_v44  ;;  %v965_v10 = vadd.f32 %v953_v2, %v901_v54  ;;  %v967_v40 = vsel %vm903_vm5, %v4251_v5, %v963_v53  ;;  %v571_v31 = vmul.f32 %v4350_v62, %v570_v11 }
 0x2b4   :  { %v4412_v27 = vadd.f32 %v1161_v59, %v1140_v37  ;;  %v962_v15 = vsel %vm4374_vm12, %v959_v0, %v956_v51  ;;  %v4429_v63 = vmul.f32 %v967_v40, %v4283_v33  ;;  %2849 = vlog2.f32 %v967_v40 }
 0x2b5   :  { %v968_v44 = vsel %vm904_vm7, %v4253_v6, %v964_v1  ;;  %v966_v5 = vadd.f32 %v962_v15, %v902_v55  ;;  %v969_v16 = vsel %vm905_vm9, %v4255_v8, %v965_v10  ;;  %v572_v6 = vand.u32 2147483647, %v4350_v62 }
 0x2b6   :  { %v2840_v54 = vpop.eup %2839  ;;  %1254 = vst.msk [vmem:[%s6204_s9] sm:$0x1] %vm800_vm6, %v4412_v27  ;;  %v4441_v17 = vmul.f32 %v968_v44, %v4286_v34  ;;  %v4445_v19 = vmul.f32 %v969_v16, %v4301_v47  ;;  %2851 = vlog2.f32 %v968_v44  ;;  %v578_v55 = vmul.f32 -0.5, %v4368_v7 }
 0x2b7   :  { %v2842_v33 = vpop.eup %2841  ;;  %v970_v8 = vsel %vm906_vm11, %v4257_v9, %v966_v5  ;;  %2853 = vlog2.f32 %v969_v16  ;;  %v559_v34 = vmul.f32 0.6931472, %v2840_v54  ;;  %v997_v32 = vmul.f32 0.5, %v4315_v60 }
 0x2b8   :  { %v4458_v47 = vmul.f32 %v970_v8, %v4304_v48  ;;  %2855 = vlog2.f32 %v970_v8  ;;  %v568_v24 = vmul.f32 0.6931472, %v2842_v33  ;;  %v998_v13 = vmul.f32 0.5, %v4319_v61 }
 0x2b9   :  { %v2844_v23 = vpop.eup %2843  ;;  %vm4463_vm14 = vcmp.lt.f32.partialorder %v572_v6, 0.0004427343  ;;  %v529_v56 = vmax.f32 %v4266_v25, 0.0  ;;  %v530_v48 = vmax.f32 %v4273_v28, 0.0  ;;  %v579_v36 = vadd.f32 1.0, %v578_v55 }
 0x2ba   :  { %v2846_v26 = vpop.eup %2845  ;;  %v795_v30 = vmul.f32 0.6931472, %v2844_v23  ;;  %v565_v62 = vsel %vm4447_vm13, %v562_v22, %v559_v34  ;;  %v581_v60 = vand.u32 2147483647, %v4368_v7  ;;  %v584_v61 = vadd.f32 1.0, %v4420_v14 }
 0x2bb   :  { %v577_v35 = vmul.f32 0.6931472, %v2846_v26  ;;  %v531_v49 = vmax.f32 %v4276_v29, 0.0  ;;  %v574_v0 = vsel %vm4463_vm14, %v571_v31, %v568_v24  ;;  %v580_v50 = vmul.f32 %v4368_v7, %v579_v36  ;;  %v525_v26 = vld [vmem:[%s6209_s26] sm:$0xff] }
 0x2bc   :  { %v2848_v41 = vpop.eup %2847  ;;  %v796_v42 = vsub.f32 -0.9189385, %v795_v30  ;;  %vm533_vm0 = vcmp.ne.f32.partialorder %v4266_v25, %v4266_v25  ;;  %vm582_vm1 = vcmp.lt.f32.partialorder %v581_v60, 0.0004427343  ;;  %2857 = vlog2.f32 %v584_v61  ;;  %v527_v60 = vld [vmem:[%s6209_s26 + $0x10] sm:$0xff] }
 0x2bd   :  { %v1164_v46 = vmul.f32 0.6931472, %v2848_v41  ;;  %v583_v57 = vsel %vm582_vm1, %v580_v50, %v577_v35  ;;  %v587_v58 = vmul.f32 -0.5, %v4420_v14  ;;  %v593_v59 = vadd.f32 %v565_v62, %v529_v56 }
 0x2be   :  { %v799_v37 = vsub.f32 %v796_v42, %v4290_v38  ;;  %v2850_v20 = vpop.eup %2849  ;;  %v594_v7 = vadd.f32 %v574_v0, %v530_v48  ;;  %vm535_vm3 = vcmp.ne.f32.partialorder %v4276_v29, %v4276_v29  ;;  %v595_v51 = vadd.f32 %v583_v57, %v531_v49  ;;  %v526_v42 = vld [vmem:[%s6209_s26 + $0x8] sm:$0xff] }
 0x2bf   :  { %v1165_v39 = vsub.f32 -0.9189385, %v1164_v46  ;;  %v980_v53 = vmul.f32 0.6931472, %v2850_v20  ;;  %v4491_v1 = vsel %vm533_vm0, %v4266_v25, %v593_v59  ;;  %v811_v10 = vmul.f32 %v4392_v52, %v4392_v52 }
 0x2c0   :  { %v801_v18 = vsel %vm800_vm6, %v799_v37, 0.0  ;;  %v2852_v2 = vpop.eup %2851  ;;  %2859 = vlog2.f32 %v4491_v1  ;;  %v588_v54 = vadd.f32 1.0, %v587_v58  ;;  %v590_v5 = vand.u32 2147483647, %v4420_v14 }
 0x2c1   :  { %802 = vadd.xlane.f32.xlu1 %v801_v18  ;;  %v1168_v38 = vsub.f32 %v1165_v39, %v4294_v43  ;;  %v2854_v12 = vpop.eup %2853  ;;  %v982_v40 = vmul.f32 0.6931472, %v2852_v2  ;;  %v987_v11 = vsub.f32 -0.9189385, %v980_v53  ;;  %v598_v52 = vsel %vm534_vm2, %v4273_v28, %v594_v7  ;;  %v528_v18 = vld [vmem:[%s6209_s26 + $0x18] sm:$0xff]  ;;  %v4535_v7 = vld [vmem:[#allocation17] sm:$0xff] }
 0x2c2   :  { %v2856_v15 = vpop.eup %2855  ;;  %v984_v44 = vmul.f32 0.6931472, %v2854_v12  ;;  %v599_v21 = vsel %vm535_vm3, %v4276_v29, %v595_v51  ;;  %2861 = vlog2.f32 %v598_v52  ;;  %v532_v22 = vmax.f32 %v4298_v45, 0.0 }
 0x2c3   :  { %v1169_v43 = vsel %vm800_vm6, %v1168_v38, 0.0  ;;  %v986_v16 = vmul.f32 0.6931472, %v2856_v15  ;;  %v988_v6 = vsub.f32 -0.9189385, %v982_v40  ;;  %v999_v25 = vsub.f32 %v987_v11, %v4321_v3  ;;  %v4538_v40 = vld [vmem:[#allocation17 + $0x8] sm:$0xff] }
 0x2c4   :  { %v989_v33 = vsub.f32 -0.9189385, %v984_v44  ;;  %2863 = vlog2.f32 %v599_v21  ;;  %v589_v28 = vmul.f32 %v4420_v14, %v588_v54  ;;  %vm4511_vm4 = vcmp.lt.f32.partialorder %v590_v5, 0.0004427343  ;;  %v4540_v44 = vld [vmem:[#allocation17 + $0x10] sm:$0xff]  ;;  %v4542_v54 = vld [vmem:[#allocation17 + $0x18] sm:$0xff] }
 0x2c5   :  { %1170 = vadd.xlane.f32.xlu1 %v1169_v43  ;;  %v990_v55 = vsub.f32 -0.9189385, %v986_v16  ;;  %v1000_v8 = vsub.f32 %v988_v6, %v4323_v4  ;;  %v1003_v34 = vsel %vm633_vm15, %v999_v25, 0.0  ;;  %v812_v4 = vmul.f32 0.5, %v811_v10 }
 0x2c6   :  { %v1001_v3 = vsub.f32 %v989_v33, %v997_v32  ;;  %v2858_v24 = vpop.eup %2857  ;;  %v814_v30 = vmul.f32 80000.0, %v811_v10  ;;  %v621_v48 = vmul.f32 %v525_v26, %v525_v26  ;;  %vm536_vm5 = vcmp.ne.f32.partialorder %v4298_v45, %v4298_v45 }
 0x2c7   :  { %v1002_v31 = vsub.f32 %v990_v55, %v998_v13  ;;  %v1004_v29 = vsel %vm633_vm15, %v1000_v8, 0.0  ;;  %v586_v56 = vmul.f32 0.6931472, %v2858_v24  ;;  %v813_v35 = vsub.f32 -0.9189385, %v812_v4  ;;  %v517_v24 = vld [vmem:[%s6212_s0] sm:$0xff] }
 0x2c8   :  { %v1005_v9 = vadd.f32 %v1004_v29, %v1003_v34  ;;  %v1006_v32 = vsel %vm633_vm15, %v1001_v3, 0.0  ;;  %v815_v36 = vsub.f32 5.072526, %v814_v30  ;;  %v622_v46 = vmul.f32 %v526_v42, %v526_v42 }
 0x2c9   :  { %v1008_v14 = vsel %vm633_vm15, %v1002_v31, 0.0  ;;  %v592_v13 = vsel %vm4511_vm4, %v589_v28, %v586_v56  ;;  %v4525_v49 = vadd.f32 -0.6931472, %v813_v35  ;;  %v623_v20 = vmul.f32 %v527_v60, %v527_v60  ;;  %v518_v31 = vld [vmem:[%s6212_s0 + $0x8] sm:$0xff] }
 0x2ca   :  { %v1007_v41 = vadd.f32 %v1006_v32, %v1005_v9  ;;  %v2860_v62 = vpop.eup %2859  ;;  %v596_v61 = vadd.f32 %v592_v13, %v532_v22  ;;  %v4527_v0 = vadd.f32 -0.6931472, %v815_v36  ;;  %v625_v39 = vmul.f32 0.5, %v621_v48  ;;  %v519_v9 = vld [vmem:[%s6212_s0 + $0x10] sm:$0xff]  ;;  %v520_v32 = vld [vmem:[%s6212_s0 + $0x18] sm:$0xff] }
 0x2cb   :  { %v610_v37 = vmul.f32 0.6931472, %v2860_v62  ;;  %v624_v51 = vmul.f32 %v528_v18, %v528_v18  ;;  %v626_v12 = vmul.f32 0.5, %v622_v46  ;;  %v627_v15 = vmul.f32 0.5, %v623_v20 }
 0x2cc   :  { %v1009_v50 = vadd.f32 %v1008_v14, %v1007_v41  ;;  %v600_v57 = vsel %vm536_vm5, %v4298_v45, %v596_v61  ;;  %v4532_v58 = vsub.f32 %v4525_v49, %v4527_v0  ;;  %v2862_v59 = vpop.eup %2861  ;;  %v602_v45 = vmul.f32 %v598_v52, %v526_v42 }
 0x2cd   :  { %2865 = vlog2.f32 %v600_v57  ;;  %v617_v53 = vsub.f32 -0.9189385, %v610_v37  ;;  %v612_v38 = vmul.f32 0.6931472, %v2862_v59  ;;  %v603_v5 = vmul.f32 %v599_v21, %v527_v60 }
 0x2ce   :  { %1010 = vadd.xlane.f32.xlu1 %v1009_v50  ;;  %v2864_v2 = vpop.eup %2863  ;;  %v822_v10 = vand.u32 2147483647, %v4532_v58  ;;  %v1279_v25 = vand.u32 2147483647, %v4535_v7  ;;  %v604_v33 = vmul.f32 %v600_v57, %v528_v18  ;;  %v601_v52 = vmul.f32 %v4491_v1, %v525_v26 }
 0x2cf   :  { %v614_v11 = vmul.f32 0.6931472, %v2864_v2  ;;  %v629_v43 = vsub.f32 %v617_v53, %v625_v39  ;;  %v618_v16 = vsub.f32 -0.9189385, %v612_v38  ;;  %v1280_v8 = vand.u32 2147483647, %v4538_v40 }
 0x2d0   :  { %v823_v6 = vsub.f32 0.0, %v822_v10  ;;  %v1281_v22 = vand.u32 2147483647, %v4540_v44  ;;  %v1282_v28 = vand.u32 2147483647, %v4542_v54  ;;  %v1283_v29 = vsub.f32 0.0, %v1279_v25 }
 0x2d1   :  { %v619_v55 = vsub.f32 -0.9189385, %v614_v11  ;;  %v630_v34 = vsub.f32 %v618_v16, %v626_v12  ;;  %v634_v21 = vsel %vm633_vm15, %v629_v43, 0.0  ;;  %v1284_v4 = vsub.f32 0.0, %v1280_v8 }
 0x2d2   :  { %v824_v3 = vmul.f32 1.442695, %v823_v6  ;;  %v1285_v1 = vsub.f32 0.0, %v1281_v22  ;;  %v1286_v26 = vsub.f32 0.0, %v1282_v28  ;;  %v1179_v56 = vmul.f32 %v4412_v27, %v4412_v27 }
 0x2d3   :  { %v631_v23 = vsub.f32 %v619_v55, %v627_v15  ;;  %v635_v30 = vsel %vm633_vm15, %v630_v34, 0.0  ;;  %v1287_v48 = vmul.f32 1.442695, %v1283_v29  ;;  %v1289_v14 = vmul.f32 1.442695, %v1284_v4 }
 0x2d4   :  { %2867 = vpow2.f32 %v824_v3  ;;  %v4557_v35 = vadd.f32 %v601_v52, %v517_v24  ;;  %v4559_v36 = vadd.f32 %v602_v45, %v518_v31  ;;  %v1291_v41 = vmul.f32 1.442695, %v1285_v1 }
 0x2d5   :  { %v1293_v42 = vmul.f32 1.442695, %v1286_v26  ;;  %v636_v62 = vadd.f32 %v635_v30, %v634_v21  ;;  %v4561_v60 = vadd.f32 %v603_v5, %v519_v9  ;;  %v4563_v61 = vadd.f32 %v604_v33, %v520_v32 }
 0x2d6   :  { %6213 = vst [vmem:[#allocation94_spill] sm:$0xff] %v4557_v35  ;;  %6214 = vst [vmem:[#allocation95_spill] sm:$0xff] %v4559_v36  ;;  %2869 = vpow2.f32 %v1287_v48  ;;  %v628_v50 = vmul.f32 0.5, %v624_v51  ;;  %v637_v37 = vsel %vm633_vm15, %v631_v23, 0.0  ;;  %v1180_v27 = vmul.f32 0.5, %v1179_v56 }
 0x2d7   :  { %v2866_v13 = vpop.eup %2865  ;;  %6215 = vst [vmem:[#allocation96_spill] sm:$0xff] %v4561_v60  ;;  %6216 = vst [vmem:[#allocation97_spill] sm:$0xff] %v4563_v61  ;;  %2871 = vpow2.f32 %v1289_v14  ;;  %v1182_v20 = vmul.f32 80000.0, %v1179_v56  ;;  %v650_v57 = vmul.f32 %v4557_v35, %v4557_v35  ;;  %v651_v59 = vmul.f32 %v4559_v36, %v4559_v36 }
 0x2d8   :  { %v616_v46 = vmul.f32 0.6931472, %v2866_v13  ;;  %2873 = vpow2.f32 %v1291_v41  ;;  %v638_v18 = vadd.f32 %v637_v37, %v636_v62  ;;  %v652_v53 = vmul.f32 %v4561_v60, %v4561_v60 }
 0x2d9   :  { %2875 = vpow2.f32 %v1293_v42  ;;  %v653_v2 = vmul.f32 %v4563_v61, %v4563_v61  ;;  %v1181_v51 = vsub.f32 -0.9189385, %v1180_v27  ;;  %v1183_v12 = vsub.f32 5.072526, %v1182_v20 }
 0x2da   :  { %v620_v39 = vsub.f32 -0.9189385, %v616_v46  ;;  %v1267_v11 = vmax.f32 %v4535_v7, 0.0  ;;  %v4576_v15 = vmul.f32 0.5, %v650_v57  ;;  %v4578_v43 = vmul.f32 0.5, %v651_v59 }
 0x2db   :  { %v4580_v6 = vmul.f32 0.5, %v652_v53  ;;  %v4582_v25 = vmul.f32 0.5, %v653_v2  ;;  %v1268_v33 = vmax.f32 %v4538_v40, 0.0  ;;  %v1269_v55 = vmax.f32 %v4540_v44, 0.0 }
 0x2dc   :  { %v632_v38 = vsub.f32 %v620_v39, %v628_v50  ;;  %v4586_v52 = vadd.f32 -0.6931472, %v1181_v51  ;;  %v4588_v8 = vadd.f32 -0.6931472, %v1183_v12  ;;  %v818_v3 = vmax.f32 %v4525_v49, %v4527_v0 }
 0x2dd   :  { %v4594_v22 = vadd.f32 %v4527_v0, %v4525_v49  ;;  %v1270_v28 = vmax.f32 %v4542_v54, 0.0  ;;  %v658_v31 = vsub.f32 -0.9189385, %v4576_v15  ;;  %v659_v29 = vsub.f32 -0.9189385, %v4578_v43 }
 0x2de   :  { %v2868_v10 = vpop.eup %2867  ;;  %v639_v45 = vsel %vm633_vm15, %v632_v38, 0.0  ;;  %v660_v9 = vsub.f32 -0.9189385, %v4580_v6  ;;  %v661_v32 = vsub.f32 -0.9189385, %v4582_v25  ;;  %v662_v1 = vmul.f32 80000.0, %v650_v57 }
 0x2df   :  { %v640_v5 = vadd.f32 %v639_v45, %v638_v18  ;;  %v826_v16 = vadd.f32 1.0, %v2868_v10  ;;  %v829_v21 = vmul.f32 -0.5, %v2868_v10  ;;  %v4603_v14 = vsub.f32 %v4586_v52, %v4588_v8 }
 0x2e0   :  { %v2870_v34 = vpop.eup %2869  ;;  %v663_v13 = vmul.f32 80000.0, %v651_v59  ;;  %vm820_vm7 = vcmp.ne.f32.partialorder %v4532_v58, %v4532_v58  ;;  %v832_v46 = vand.u32 2147483647, %v2868_v10  ;;  %v664_v20 = vmul.f32 80000.0, %v652_v53 }
 0x2e1   :  { %641 = vadd.xlane.f32.xlu0 %v640_v5  ;;  %2877 = vlog2.f32 %v826_v16  ;;  %v2872_v23 = vpop.eup %2871  ;;  %v1295_v24 = vadd.f32 1.0, %v2870_v34  ;;  %v1298_v56 = vmul.f32 -0.5, %v2870_v34  ;;  %v830_v62 = vadd.f32 1.0, %v829_v21  ;;  %v1266_v16 = vld [vmem:[%s6227_s17 + $0x18] sm:$0xff] }
 0x2e2   :  { %v2874_v4 = vpop.eup %2873  ;;  %v1304_v30 = vadd.f32 1.0, %v2872_v23  ;;  %v1307_v41 = vmul.f32 -0.5, %v2872_v23  ;;  %v1301_v37 = vand.u32 2147483647, %v2870_v34  ;;  %v1310_v27 = vand.u32 2147483647, %v2872_v23 }
 0x2e3   :  { %v2876_v26 = vpop.eup %2875  ;;  %2879 = vlog2.f32 %v1295_v24  ;;  %v1313_v48 = vadd.f32 1.0, %v2874_v4  ;;  %v1316_v42 = vmul.f32 -0.5, %v2874_v4  ;;  %v4607_v39 = vmul.f32 80000.0, %v653_v2 }
 0x2e4   :  { %2881 = vlog2.f32 %v1304_v30  ;;  %v1322_v50 = vadd.f32 1.0, %v2876_v26  ;;  %v1299_v57 = vadd.f32 1.0, %v1298_v56  ;;  %v1325_v18 = vmul.f32 -0.5, %v2876_v26 }
 0x2e5   :  { %2883 = vlog2.f32 %v1313_v48  ;;  %v1190_v38 = vand.u32 2147483647, %v4603_v14  ;;  %vm1271_vm8 = vcmp.ne.f32.partialorder %v4535_v7, %v4535_v7  ;;  %v1308_v59 = vadd.f32 1.0, %v1307_v41 }
 0x2e6   :  { %2885 = vlog2.f32 %v1322_v50  ;;  %v1317_v51 = vadd.f32 1.0, %v1316_v42  ;;  %v1319_v12 = vand.u32 2147483647, %v2874_v4  ;;  %v666_v45 = vsub.f32 5.072526, %v662_v1 }
 0x2e7   :  { %v831_v15 = vmul.f32 %v2868_v10, %v830_v62  ;;  %vm4612_vm9 = vcmp.lt.f32.partialorder %v832_v46, 0.0004427343  ;;  %vm1272_vm10 = vcmp.ne.f32.partialorder %v4538_v40, %v4538_v40  ;;  %v1328_v53 = vand.u32 2147483647, %v2876_v26 }
 0x2e8   :  { %v1191_v2 = vsub.f32 0.0, %v1190_v38  ;;  %vm1273_vm11 = vcmp.ne.f32.partialorder %v4540_v44, %v4540_v44  ;;  %vm4620_vm12 = vcmp.lt.f32.partialorder %v1301_v37, 0.0004427343  ;;  %vm4624_vm13 = vcmp.lt.f32.partialorder %v1310_v27, 0.0004427343 }
 0x2e9   :  { %v667_v10 = vsub.f32 5.072526, %v663_v13  ;;  %v1300_v24 = vmul.f32 %v2870_v34, %v1299_v57  ;;  %v1326_v30 = vadd.f32 1.0, %v1325_v18  ;;  %vm1274_vm14 = vcmp.ne.f32.partialorder %v4542_v54, %v4542_v54 }
 0x2ea   :  { %v1192_v1 = vmul.f32 1.442695, %v1191_v2  ;;  %v1309_v56 = vmul.f32 %v2872_v23, %v1308_v59  ;;  %v1318_v48 = vmul.f32 %v2874_v4, %v1317_v51  ;;  %vm4630_vm0 = vcmp.lt.f32.partialorder %v1319_v12, 0.0004427343  ;;  %v1264_v51 = vld [vmem:[%s6227_s17 + $0x8] sm:$0xff] }
 0x2eb   :  { %v2878_v5 = vpop.eup %2877  ;;  %v668_v42 = vsub.f32 5.072526, %v664_v20  ;;  %vm4636_vm1 = vcmp.lt.f32.partialorder %v1328_v53, 0.0004427343  ;;  %v669_v34 = vsub.f32 5.072526, %v4607_v39  ;;  %v1327_v18 = vmul.f32 %v2876_v26, %v1326_v30 }
 0x2ec   :  { %v828_v21 = vmul.f32 0.6931472, %v2878_v5  ;;  %2887 = vpow2.f32 %v1192_v1  ;;  %v4644_v37 = vadd.f32 -0.6931472, %v658_v31  ;;  %v4646_v27 = vadd.f32 -0.6931472, %v659_v29 }
 0x2ed   :  { %v2880_v62 = vpop.eup %2879  ;;  %v4648_v38 = vadd.f32 -0.6931472, %v660_v9  ;;  %v4650_v59 = vadd.f32 -0.6931472, %v666_v45  ;;  %v4660_v31 = vadd.f32 -0.6931472, %v661_v32  ;;  %vm1188_vm3 = vcmp.ne.f32.partialorder %v4603_v14, %v4603_v14 }
 0x2ee   :  { %v834_v46 = vsel %vm4612_vm9, %v831_v15, %v828_v21  ;;  %v2882_v50 = vpop.eup %2881  ;;  %v1297_v4 = vmul.f32 0.6931472, %v2880_v62  ;;  %v1263_v26 = vld [vmem:[%s6227_s17] sm:$0xff]  ;;  %v4675_v45 = vadd.f32 -0.6931472, %v668_v42  ;;  %v1265_v15 = vld [vmem:[%s6227_s17 + $0x10] sm:$0xff]  ;;  %v1362_v62 = vmul.f32 %v1266_v16, %v1266_v16 }
 0x2ef   :  { %v835_v23 = vadd.f32 %v834_v46, %v818_v3  ;;  %v2884_v20 = vpop.eup %2883  ;;  %v1306_v57 = vmul.f32 0.6931472, %v2882_v50  ;;  %v4684_v53 = vadd.f32 -0.6931472, %v669_v34  ;;  %v4688_v2 = vsub.f32 %v4644_v37, %v4650_v59 }
 0x2f0   :  { %v1303_v0 = vsel %vm4620_vm12, %v1300_v24, %v1297_v4  ;;  %v1315_v3 = vmul.f32 0.6931472, %v2884_v20  ;;  %v2886_v29 = vpop.eup %2885  ;;  %v4715_v24 = vsub.f32 %v4648_v38, %v4675_v45  ;;  %v1359_v30 = vmul.f32 %v1263_v26, %v1263_v26 }
 0x2f1   :  { %v836_v49 = vsel %vm820_vm7, %v4594_v22, %v835_v23  ;;  %v1312_v39 = vsel %vm4624_vm13, %v1309_v56, %v1306_v57  ;;  %v1331_v58 = vadd.f32 %v1303_v0, %v1267_v11  ;;  %v4668_v22 = vadd.f32 -0.6931472, %v667_v10  ;;  %v4731_v0 = vld [vmem:[#allocation25] sm:$0xff] }
 0x2f2   :  { %v837_v9 = vsel %vm800_vm6, %v836_v49, 0.0  ;;  %v1321_v25 = vsel %vm4630_vm0, %v1318_v48, %v1315_v3  ;;  %v1324_v32 = vmul.f32 0.6931472, %v2886_v29  ;;  %v1332_v12 = vadd.f32 %v1312_v39, %v1268_v33  ;;  %v4733_v39 = vld [vmem:[#allocation25 + $0x8] sm:$0xff] }
 0x2f3   :  { %838 = vadd.xlane.f32.xlu1 %v837_v9  ;;  %v1333_v43 = vadd.f32 %v1321_v25, %v1269_v55  ;;  %v1335_v11 = vsel %vm1271_vm8, %v4535_v7, %v1331_v58  ;;  %v4723_v1 = vsub.f32 %v4660_v31, %v4684_v53  ;;  %v1360_v48 = vmul.f32 %v1264_v51, %v1264_v51  ;;  %v4735_v58 = vld [vmem:[#allocation25 + $0x10] sm:$0xff] }
 0x2f4   :  { %v1330_v33 = vsel %vm4636_vm1, %v1327_v18, %v1324_v32  ;;  %v1336_v5 = vsel %vm1272_vm10, %v4538_v40, %v1332_v12  ;;  %v4696_v55 = vmul.f32 %v1335_v11, %v1263_v26  ;;  %2889 = vlog2.f32 %v1335_v11 }
 0x2f5   :  { %v1334_v7 = vadd.f32 %v1330_v33, %v1270_v28  ;;  %v1337_v6 = vsel %vm1273_vm11, %v4540_v44, %v1333_v43  ;;  %v4705_v10 = vmul.f32 %v1336_v5, %v1264_v51  ;;  %2891 = vlog2.f32 %v1336_v5 }
 0x2f6   :  { %v4707_v21 = vmul.f32 %v1337_v6, %v1265_v15  ;;  %2893 = vlog2.f32 %v1337_v6  ;;  %v4711_v40 = vsub.f32 %v4646_v27, %v4668_v22  ;;  %v2888_v28 = vpop.eup %2887  ;;  %v694_v41 = vand.u32 2147483647, %v4688_v2 }
 0x2f7   :  { %v1338_v44 = vsel %vm1274_vm14, %v4542_v54, %v1334_v7  ;;  %v1361_v42 = vmul.f32 %v1265_v15, %v1265_v15  ;;  %v1194_v46 = vadd.f32 1.0, %v2888_v28  ;;  %v1197_v13 = vmul.f32 -0.5, %v2888_v28 }
 0x2f8   :  { %v4725_v56 = vmul.f32 %v1338_v44, %v1266_v16  ;;  %2895 = vlog2.f32 %v1338_v44  ;;  %v695_v34 = vand.u32 2147483647, %v4711_v40  ;;  %v696_v50 = vand.u32 2147483647, %v4715_v24  ;;  %v4743_v16 = vld [vmem:[#allocation25 + $0x18] sm:$0xff] }
 0x2f9   :  { %v1363_v54 = vmul.f32 0.5, %v1359_v30  ;;  %2897 = vlog2.f32 %v1194_v46  ;;  %v1200_v23 = vand.u32 2147483647, %v2888_v28  ;;  %v697_v4 = vand.u32 2147483647, %v4723_v1 }
 0x2fa   :  { %v1364_v20 = vmul.f32 0.5, %v1360_v48  ;;  %v698_v57 = vsub.f32 0.0, %v694_v41  ;;  %v699_v18 = vsub.f32 0.0, %v695_v34  ;;  %v700_v49 = vsub.f32 0.0, %v696_v50 }
 0x2fb   :  { %v1365_v3 = vmul.f32 0.5, %v1361_v42  ;;  %v1366_v29 = vmul.f32 0.5, %v1362_v62  ;;  %v1198_v9 = vadd.f32 1.0, %v1197_v13  ;;  %v701_v26 = vsub.f32 0.0, %v697_v4 }
 0x2fc   :  { %v702_v25 = vmul.f32 1.442695, %v698_v57  ;;  %v704_v32 = vmul.f32 1.442695, %v699_v18  ;;  %v706_v12 = vmul.f32 1.442695, %v700_v49  ;;  %v1186_v11 = vmax.f32 %v4586_v52, %v4588_v8 }
 0x2fd   :  { %vm4739_vm2 = vcmp.lt.f32.partialorder %v1200_v23, 0.0004427343  ;;  %v708_v5 = vmul.f32 1.442695, %v701_v26  ;;  %v1647_v44 = vand.u32 2147483647, %v4731_v0  ;;  %v1199_v13 = vmul.f32 %v2888_v28, %v1198_v9 }
 0x2fe   :  { %v2890_v51 = vpop.eup %2889  ;;  %2899 = vpow2.f32 %v702_v25  ;;  %v1648_v30 = vand.u32 2147483647, %v4733_v39  ;;  %v1649_v42 = vand.u32 2147483647, %v4735_v58  ;;  %v1650_v18 = vand.u32 2147483647, %v4743_v16 }
 0x2ff   :  { %v2892_v15 = vpop.eup %2891  ;;  %v1348_v43 = vmul.f32 0.6931472, %v2890_v51  ;;  %2901 = vpow2.f32 %v704_v32  ;;  %v1651_v34 = vsub.f32 0.0, %v1647_v44  ;;  %v1189_v28 = vadd.f32 %v4588_v8, %v4586_v52 }
 0x300   :  { %v2894_v7 = vpop.eup %2893  ;;  %v1350_v6 = vmul.f32 0.6931472, %v2892_v15  ;;  %2903 = vpow2.f32 %v706_v12  ;;  %v1652_v49 = vsub.f32 0.0, %v1648_v30  ;;  %v1653_v26 = vsub.f32 0.0, %v1649_v42 }
 0x301   :  { %v1352_v48 = vmul.f32 0.6931472, %v2894_v7  ;;  %v1355_v41 = vsub.f32 -0.9189385, %v1348_v43  ;;  %2905 = vpow2.f32 %v708_v5  ;;  %v1655_v43 = vmul.f32 1.442695, %v1651_v34 }
 0x302   :  { %v2896_v62 = vpop.eup %2895  ;;  %v1356_v46 = vsub.f32 -0.9189385, %v1350_v6  ;;  %v1657_v12 = vmul.f32 1.442695, %v1652_v49  ;;  %v1659_v6 = vmul.f32 1.442695, %v1653_v26  ;;  %v4776_v26 = vadd.f32 %v4650_v59, %v4644_v37 }
 0x303   :  { %v1354_v50 = vmul.f32 0.6931472, %v2896_v62  ;;  %v1357_v23 = vsub.f32 -0.9189385, %v1352_v48  ;;  %v1367_v4 = vsub.f32 %v1355_v41, %v1363_v54  ;;  %v2898_v51 = vpop.eup %2897  ;;  %2907 = vpow2.f32 %v1655_v43  ;;  %v4815_v41 = vld [vmem:[#allocation29] sm:$0x1] }
 0x304   :  { %v1368_v57 = vsub.f32 %v1356_v46, %v1364_v20  ;;  %v1196_v9 = vmul.f32 0.6931472, %v2898_v51  ;;  %2909 = vpow2.f32 %v1657_v12  ;;  %v1654_v52 = vsub.f32 0.0, %v1650_v18 }
 0x305   :  { %v1358_v25 = vsub.f32 -0.9189385, %v1354_v50  ;;  %v1369_v15 = vsub.f32 %v1357_v23, %v1365_v3  ;;  %v1371_v32 = vsel %vm633_vm15, %v1367_v4, 0.0  ;;  %2911 = vpow2.f32 %v1659_v6 }
 0x306   :  { %v1372_v7 = vsel %vm633_vm15, %v1368_v57, 0.0  ;;  %v1202_v3 = vsel %vm4739_vm2, %v1199_v13, %v1196_v9  ;;  %v1661_v49 = vmul.f32 1.442695, %v1654_v52  ;;  %vm686_vm4 = vcmp.ne.f32.partialorder %v4688_v2, %v4688_v2 }
 0x307   :  { %v1370_v54 = vsub.f32 %v1358_v25, %v1366_v29  ;;  %v1373_v5 = vadd.f32 %v1372_v7, %v1371_v32  ;;  %v1374_v20 = vsel %vm633_vm15, %v1369_v15, 0.0  ;;  %v1203_v48 = vadd.f32 %v1202_v3, %v1186_v11 }
 0x308   :  { %v2900_v8 = vpop.eup %2899  ;;  %v678_v29 = vmax.f32 %v4644_v37, %v4650_v59  ;;  %v4780_v15 = vadd.f32 %v4668_v22, %v4646_v27  ;;  %v4784_v32 = vadd.f32 %v4675_v45, %v4648_v38  ;;  %v4789_v7 = vadd.f32 %v4684_v53, %v4660_v31 }
 0x309   :  { %v1375_v44 = vadd.f32 %v1374_v20, %v1373_v5  ;;  %v1376_v30 = vsel %vm633_vm15, %v1370_v54, 0.0  ;;  %v2902_v42 = vpop.eup %2901  ;;  %v1204_v14 = vsel %vm1188_vm3, %v1189_v28, %v1203_v48  ;;  %v710_v46 = vadd.f32 1.0, %v2900_v8 }
 0x30a   :  { %v4764_v13 = vpop.eup %2903  ;;  %v1205_v34 = vsel %vm800_vm6, %v1204_v14, 0.0  ;;  %v719_v23 = vadd.f32 1.0, %v2902_v42  ;;  %v713_v57 = vmul.f32 -0.5, %v2900_v8  ;;  %v716_v51 = vand.u32 2147483647, %v2900_v8 }
 0x30b   :  { %v1377_v62 = vadd.f32 %v1376_v30, %v1375_v44  ;;  %v4771_v4 = vpop.eup %2905  ;;  %1206 = vadd.xlane.f32.xlu1 %v1205_v34  ;;  %2913 = vlog2.f32 %v710_v46  ;;  %v728_v18 = vadd.f32 1.0, %v4764_v13  ;;  %v722_v25 = vmul.f32 -0.5, %v2902_v42 }
 0x30c   :  { %2915 = vlog2.f32 %v719_v23  ;;  %v731_v43 = vmul.f32 -0.5, %v4764_v13  ;;  %v737_v28 = vadd.f32 1.0, %v4771_v4  ;;  %v714_v5 = vadd.f32 1.0, %v713_v57 }
 0x30d   :  { %1378 = vadd.xlane.f32.xlu0 %v1377_v62  ;;  %2917 = vlog2.f32 %v728_v18  ;;  %v2908_v54 = vpop.eup %2907  ;;  %v725_v20 = vand.u32 2147483647, %v2902_v42  ;;  %v740_v3 = vmul.f32 -0.5, %v4771_v4  ;;  %vm4797_vm5 = vcmp.lt.f32.partialorder %v716_v51, 0.0004427343 }
 0x30e   :  { %2919 = vpow2.f32 %v1661_v49  ;;  %v2910_v6 = vpop.eup %2909  ;;  %v723_v30 = vadd.f32 1.0, %v722_v25  ;;  %v1663_v48 = vadd.f32 1.0, %v2908_v54  ;;  %vm687_vm7 = vcmp.ne.f32.partialorder %v4711_v40, %v4711_v40 }
 0x30f   :  { %2921 = vlog2.f32 %v737_v28  ;;  %v732_v52 = vadd.f32 1.0, %v731_v43  ;;  %v734_v62 = vand.u32 2147483647, %v4764_v13  ;;  %v1666_v14 = vmul.f32 -0.5, %v2908_v54  ;;  %v4804_v34 = vpop.eup %2911 }
 0x310   :  { %v1672_v46 = vadd.f32 1.0, %v2910_v6  ;;  %vm688_vm8 = vcmp.ne.f32.partialorder %v4715_v24, %v4715_v24  ;;  %v743_v23 = vand.u32 2147483647, %v4771_v4  ;;  %2923 = vlog2.f32 %v1663_v48 }
 0x311   :  { %v1669_v57 = vand.u32 2147483647, %v2908_v54  ;;  %v1675_v18 = vmul.f32 -0.5, %v2910_v6  ;;  %v741_v49 = vadd.f32 1.0, %v740_v3  ;;  %v1678_v51 = vand.u32 2147483647, %v2910_v6 }
 0x312   :  { %2925 = vlog2.f32 %v1672_v46  ;;  %v1681_v25 = vadd.f32 1.0, %v4804_v34  ;;  %v715_v43 = vmul.f32 %v2900_v8, %v714_v5  ;;  %v724_v28 = vmul.f32 %v2902_v42, %v723_v30  ;;  %v1631_v30 = vld [vmem:[#allocation26] sm:$0xff] }
 0x313   :  { %vm4810_vm9 = vcmp.lt.f32.partialorder %v725_v20, 0.0004427343  ;;  %v1684_v9 = vmul.f32 -0.5, %v4804_v34  ;;  %vm689_vm10 = vcmp.ne.f32.partialorder %v4723_v1, %v4723_v1  ;;  %vm4819_vm11 = vcmp.lt.f32.partialorder %v734_v62, 0.0004427343 }
 0x314   :  { %v1667_v48 = vadd.f32 1.0, %v1666_v14  ;;  %v1676_v46 = vadd.f32 1.0, %v1675_v18  ;;  %2927 = vlog2.f32 %v1681_v25  ;;  %v733_v5 = vmul.f32 %v4764_v13, %v732_v52  ;;  %v1633_v14 = vld [vmem:[#allocation26 + $0x10] sm:$0xff] }
 0x315   :  { %v2914_v50 = vpop.eup %2913  ;;  %vm4824_vm12 = vcmp.lt.f32.partialorder %v743_v23, 0.0004427343  ;;  %vm4828_vm13 = vcmp.lt.f32.partialorder %v1669_v57, 0.0004427343  ;;  %v742_v33 = vmul.f32 %v4771_v4, %v741_v49  ;;  %vm4833_vm14 = vcmp.lt.f32.partialorder %v1678_v51, 0.0004427343 }
 0x316   :  { %v2916_v8 = vpop.eup %2915  ;;  %v712_v42 = vmul.f32 0.6931472, %v2914_v50  ;;  %v1882_v50 = vand.u32 2147483647, %v4815_v41  ;;  %vm1639_vm0 = vcmp.ne.f32.partialorder %v4731_v0, %v4731_v0  ;;  %vm1640_vm1 = vcmp.ne.f32.partialorder %v4733_v39, %v4733_v39 }
 0x317   :  { %v2918_v11 = vpop.eup %2917  ;;  %v721_v62 = vmul.f32 0.6931472, %v2916_v8  ;;  %v1685_v23 = vadd.f32 1.0, %v1684_v9  ;;  %v1687_v57 = vand.u32 2147483647, %v4804_v34  ;;  %v1668_v49 = vmul.f32 %v2908_v54, %v1667_v48 }
 0x318   :  { %v718_v13 = vsel %vm4797_vm5, %v715_v43, %v712_v42  ;;  %v730_v52 = vmul.f32 0.6931472, %v2918_v11  ;;  %v4845_v4 = vpop.eup %2919  ;;  %v1677_v11 = vmul.f32 %v2910_v6, %v1676_v46  ;;  %v6242_v9 = vmax.f32 %v4646_v27, %v4668_v22 }
 0x319   :  { %v727_v18 = vsel %vm4810_vm9, %v724_v28, %v721_v62  ;;  %v746_v44 = vadd.f32 %v718_v13, %v678_v29  ;;  %v2922_v51 = vpop.eup %2921  ;;  %v1690_v8 = vadd.f32 1.0, %v4845_v4  ;;  %v1883_v42 = vsub.f32 0.0, %v1882_v50  ;;  %v1632_v50 = vld [vmem:[#allocation26 + $0x8] sm:$0xff] }
 0x31a   :  { %v736_v25 = vsel %vm4819_vm11, %v733_v5, %v730_v52  ;;  %v747_v43 = vadd.f32 %v727_v18, %v6242_v9  ;;  %v739_v61 = vmul.f32 0.6931472, %v2922_v51  ;;  %v6243_v12 = vmax.f32 %v4648_v38, %v4675_v45  ;;  %v2924_v29 = vpop.eup %2923 }
 0x31b   :  { %v750_v37 = vsel %vm686_vm4, %v4776_v26, %v746_v44  ;;  %v1693_v59 = vmul.f32 -0.5, %v4845_v4  ;;  %v1686_v54 = vmul.f32 %v4804_v34, %v1685_v23  ;;  %2929 = vlog2.f32 %v1690_v8  ;;  %v4919_v8 = vld [vmem:[#allocation34] sm:$0xff] }
 0x31c   :  { %v748_v28 = vadd.f32 %v736_v25, %v6243_v12  ;;  %v751_v27 = vsel %vm687_vm7, %v4780_v15, %v747_v43  ;;  %v754_v22 = vsel %vm633_vm15, %v750_v37, 0.0  ;;  %v2926_v38 = vpop.eup %2925  ;;  %v745_v45 = vsel %vm4824_vm12, %v742_v33, %v739_v61  ;;  %v887_v25 = vld [vmem:[#allocation8] sm:$0xff] }
 0x31d   :  { %v755_v26 = vsel %vm633_vm15, %v751_v27, 0.0  ;;  %v1665_v6 = vmul.f32 0.6931472, %v2924_v29  ;;  %v6244_v40 = vmax.f32 %v4660_v31, %v4684_v53  ;;  %v1674_v48 = vmul.f32 0.6931472, %v2926_v38  ;;  %v4932_v27 = vld [vmem:[#allocation34 + $0x10] sm:$0xff] }
 0x31e   :  { %v752_v2 = vsel %vm688_vm8, %v4784_v32, %v748_v28  ;;  %v756_v3 = vadd.f32 %v755_v26, %v754_v22  ;;  %v2928_v46 = vpop.eup %2927  ;;  %vm4885_vm2 = vcmp.lt.f32.partialorder %v1687_v57, 0.0004427343  ;;  %v1694_v24 = vadd.f32 1.0, %v1693_v59  ;;  %v4934_v22 = vld [vmem:[#allocation34 + $0x18] sm:$0xff] }
 0x31f   :  { %v749_v15 = vadd.f32 %v745_v45, %v6244_v40  ;;  %v757_v34 = vsel %vm633_vm15, %v752_v2, 0.0  ;;  %v1671_v61 = vsel %vm4828_vm13, %v1668_v49, %v1665_v6  ;;  %v1884_v32 = vmul.f32 1.442695, %v1883_v42  ;;  %v888_v42 = vld [vmem:[#allocation8 + $0x8] sm:$0xff] }
 0x320   :  { %v758_v53 = vadd.f32 %v757_v34, %v756_v3  ;;  %v1680_v5 = vsel %vm4833_vm14, %v1677_v11, %v1674_v48  ;;  %v1683_v20 = vmul.f32 0.6931472, %v2928_v46  ;;  %v6247_v13 = vmax.f32 %v4731_v0, 0.0  ;;  %v1634_v3 = vld [vmem:[#allocation26 + $0x18] sm:$0xff] }
 0x321   :  { %v753_v31 = vsel %vm689_vm10, %v4789_v7, %v749_v15  ;;  %v6248_v23 = vmax.f32 %v4733_v39, 0.0  ;;  %2931 = vpow2.f32 %v1884_v32  ;;  %vm1641_vm3 = vcmp.ne.f32.partialorder %v4735_v58, %v4735_v58 }
 0x322   :  { %v759_v62 = vsel %vm633_vm15, %v753_v31, 0.0  ;;  %v1699_v52 = vadd.f32 %v1671_v61, %v6247_v13  ;;  %v1689_v1 = vsel %vm4885_vm2, %v1686_v54, %v1683_v20  ;;  %v1696_v7 = vand.u32 2147483647, %v4845_v4  ;;  %v890_v61 = vld [vmem:[#allocation8 + $0x18] sm:$0xff] }
 0x323   :  { %v1700_v57 = vadd.f32 %v1680_v5, %v6248_v23  ;;  %v760_v18 = vadd.f32 %v759_v62, %v758_v53  ;;  %v6249_v44 = vmax.f32 %v4735_v58, 0.0  ;;  %v1695_v12 = vmul.f32 %v4845_v4, %v1694_v24  ;;  %v889_v4 = vld [vmem:[#allocation8 + $0x10] sm:$0xff]  ;;  %v1255_v62 = vld [vmem:[#allocation16] sm:$0xff] }
 0x324   :  { %v1703_v11 = vsel %vm1639_vm0, %v4731_v0, %v1699_v52  ;;  %v4923_v0 = vld [vmem:[#allocation34 + $0x8] sm:$0xff]  ;;  %vm4926_vm4 = vcmp.lt.f32.partialorder %v1696_v7, 0.0004427343  ;;  %v2015_v38 = vand.u32 2147483647, %v4919_v8  ;;  %v4941_v45 = vadd.f32 %v4441_v17, %v888_v42 }
 0x325   :  { %v1701_v49 = vadd.f32 %v1689_v1, %v6249_v44  ;;  %v1704_v51 = vsel %vm1640_vm1, %v4733_v39, %v1700_v57  ;;  %761 = vadd.xlane.f32.xlu0 %v760_v18  ;;  %v4915_v9 = vmul.f32 %v1703_v11, %v1631_v30  ;;  %2933 = vlog2.f32 %v1703_v11  ;;  %v2930_v37 = vpop.eup %2929  ;;  %v1256_v1 = vld [vmem:[#allocation16 + $0x8] sm:$0xff]  ;;  %v1257_v7 = vld [vmem:[#allocation16 + $0x10] sm:$0xff] }
 0x326   :  { %v4917_v43 = vmul.f32 %v1704_v51, %v1632_v50  ;;  %2935 = vlog2.f32 %v1704_v51  ;;  %v1638_v39 = vmax.f32 %v4743_v16, 0.0  ;;  %v1692_v54 = vmul.f32 0.6931472, %v2930_v37  ;;  %6253 = vst [vmem:[#allocation99_spill] sm:$0xff] %v4941_v45  ;;  %v1258_v37 = vld [vmem:[#allocation16 + $0x18] sm:$0xff] }
 0x327   :  { %v1705_v28 = vsel %vm1641_vm3, %v4735_v58, %v1701_v49  ;;  %v4937_v58 = vadd.f32 %v4429_v63, %v887_v25  ;;  %vm1642_vm5 = vcmp.ne.f32.partialorder %v4743_v16, %v4743_v16  ;;  %v2016_v2 = vand.u32 2147483647, %v4923_v0 }
 0x328   :  { %v4930_v29 = vmul.f32 %v1705_v28, %v1633_v14  ;;  %2937 = vlog2.f32 %v1705_v28  ;;  %v1698_v26 = vsel %vm4926_vm4, %v1695_v12, %v1692_v54  ;;  %v2017_v6 = vand.u32 2147483647, %v4932_v27 }
 0x329   :  { %6252 = vst [vmem:[#allocation98_spill] sm:$0xff] %v4937_v58  ;;  %v2018_v40 = vand.u32 2147483647, %v4934_v22  ;;  %v2019_v63 = vsub.f32 0.0, %v2015_v38  ;;  %v4951_v15 = vadd.f32 %v4445_v19, %v889_v4  ;;  %v1702_v34 = vadd.f32 %v1698_v26, %v1638_v39  ;;  %v4983_v38 = vld [vmem:[#allocation37] sm:$0x1] }
 0x32a   :  { %v1727_v17 = vmul.f32 %v1631_v30, %v1631_v30  ;;  %v2020_v48 = vsub.f32 0.0, %v2016_v2  ;;  %v4957_v33 = vmul.f32 %v4937_v58, %v4937_v58  ;;  %v2021_v24 = vsub.f32 0.0, %v2017_v6 }
 0x32b   :  { %6254 = vst [vmem:[#allocation100_spill] sm:$0xff] %v4951_v15  ;;  %v4953_v46 = vpop.eup %2931  ;;  %v2022_v32 = vsub.f32 0.0, %v2018_v40  ;;  %v2023_v31 = vmul.f32 1.442695, %v2019_v63  ;;  %v1706_v19 = vsel %vm1642_vm5, %v4743_v16, %v1702_v34  ;;  %v1728_v53 = vmul.f32 %v1632_v50, %v1632_v50 }
 0x32c   :  { %v1729_v5 = vmul.f32 %v1633_v14, %v1633_v14  ;;  %v1886_v20 = vadd.f32 1.0, %v4953_v46  ;;  %v4964_v30 = vmul.f32 %v1706_v19, %v1634_v3  ;;  %2939 = vlog2.f32 %v1706_v19 }
 0x32d   :  { %v2025_v13 = vmul.f32 1.442695, %v2020_v48  ;;  %v2027_v52 = vmul.f32 1.442695, %v2021_v24  ;;  %v4967_v57 = vadd.f32 %v4458_v47, %v890_v61  ;;  %v4971_v18 = vmul.f32 %v4941_v45, %v4941_v45 }
 0x32e   :  { %v1731_v16 = vmul.f32 0.5, %v1727_v17  ;;  %2941 = vlog2.f32 %v1886_v20  ;;  %v1889_v44 = vmul.f32 -0.5, %v4953_v46  ;;  %v2029_v49 = vmul.f32 1.442695, %v2022_v32  ;;  %v1878_v17 = vld [vmem:[#allocation31] sm:$0x1] }
 0x32f   :  { %v2934_v23 = vpop.eup %2933  ;;  %6255 = vst [vmem:[#allocation101_spill] sm:$0xff] %v4967_v57  ;;  %2943 = vpow2.f32 %v2023_v31  ;;  %v4975_v51 = vadd.f32 %v4696_v55, %v1255_v62  ;;  %v1732_v25 = vmul.f32 0.5, %v1728_v53  ;;  %v1733_v28 = vmul.f32 0.5, %v1729_v5  ;;  %v5013_v62 = vld [vmem:[#allocation20] sm:$0x1] }
 0x330   :  { %v2936_v50 = vpop.eup %2935  ;;  %v1716_v14 = vmul.f32 0.6931472, %v2934_v23  ;;  %2945 = vpow2.f32 %v2025_v13  ;;  %v4978_v39 = vadd.f32 %v4705_v10, %v1256_v1  ;;  %v4981_v59 = vadd.f32 %v4707_v21, %v1257_v7 }
 0x331   :  { %6256 = vst [vmem:[#allocation102_spill] sm:$0xff] %v4975_v51  ;;  %v1718_v47 = vmul.f32 0.6931472, %v2936_v50  ;;  %2947 = vpow2.f32 %v2027_v52  ;;  %v1730_v54 = vmul.f32 %v1634_v3, %v1634_v3  ;;  %v1890_v26 = vadd.f32 1.0, %v1889_v44 }
 0x332   :  { %v2938_v11 = vpop.eup %2937  ;;  %v1723_v12 = vsub.f32 -0.9189385, %v1716_v14  ;;  %6257 = vst [vmem:[#allocation103_spill] sm:$0xff] %v4978_v39  ;;  %6258 = vst [vmem:[#allocation104_spill] sm:$0xff] %v4981_v59  ;;  %2949 = vpow2.f32 %v2029_v49  ;;  %v4987_v6 = vmul.f32 %v4951_v15, %v4951_v15  ;;  %v4991_v40 = vmul.f32 %v4967_v57, %v4967_v57 }
 0x333   :  { %v1720_v42 = vmul.f32 0.6931472, %v2938_v11  ;;  %v1724_v4 = vsub.f32 -0.9189385, %v1718_v47  ;;  %v1892_v21 = vand.u32 2147483647, %v4953_v46  ;;  %v4995_v63 = vadd.f32 %v4725_v56, %v1258_v37 }
 0x334   :  { %v1735_v2 = vsub.f32 %v1723_v12, %v1731_v16  ;;  %v2250_v48 = vand.u32 2147483647, %v4983_v38  ;;  %v5001_v61 = vmul.f32 %v4975_v51, %v4975_v51  ;;  %v5005_v24 = vmul.f32 %v4978_v39, %v4978_v39  ;;  %v5046_v16 = vld [vmem:[#allocation41] sm:$0xf] }
 0x335   :  { %v1725_v55 = vsub.f32 -0.9189385, %v1720_v42  ;;  %v1736_v10 = vsub.f32 %v1724_v4, %v1732_v25  ;;  %6259 = vst [vmem:[#allocation105_spill] sm:$0xff] %v4995_v63  ;;  %v1902_v31 = vmul.f32 %v1878_v17, %v1878_v17  ;;  %v5010_v56 = vmul.f32 %v4981_v59, %v4981_v59 }
 0x336   :  { %v1739_v34 = vsel %vm633_vm15, %v1735_v2, 0.0  ;;  %v2940_v19 = vpop.eup %2939  ;;  %v1734_v53 = vmul.f32 0.5, %v1730_v54  ;;  %v1891_v20 = vmul.f32 %v4953_v46, %v1890_v26  ;;  %v1879_v1 = vmax.f32 %v4815_v41, 0.0 }
 0x337   :  { %v1737_v3 = vsub.f32 %v1725_v55, %v1733_v28  ;;  %v1740_v32 = vsel %vm633_vm15, %v1736_v10, 0.0  ;;  %v1722_v52 = vmul.f32 0.6931472, %v2940_v19  ;;  %vm5017_vm7 = vcmp.lt.f32.partialorder %v1892_v21, 0.0004427343 }
 0x338   :  { %v1741_v5 = vadd.f32 %v1740_v32, %v1739_v34  ;;  %v2942_v13 = vpop.eup %2941  ;;  %v5023_v7 = vmul.f32 %v4995_v63, %v4995_v63  ;;  %vm1880_vm8 = vcmp.ne.f32.partialorder %v4815_v41, %v4815_v41  ;;  %v2251_v14 = vsub.f32 0.0, %v2250_v48  ;;  %v1876_v48 = vld [vmem:[#allocation28] sm:$0x1] }
 0x339   :  { %v1742_v23 = vsel %vm633_vm15, %v1737_v3, 0.0  ;;  %v2944_v50 = vpop.eup %2943  ;;  %v1888_v46 = vmul.f32 0.6931472, %v2942_v13  ;;  %v1726_v49 = vsub.f32 -0.9189385, %v1722_v52  ;;  %v5027_v11 = vmul.f32 0.5, %v1902_v31 }
 0x33a   :  { %v2946_v44 = vpop.eup %2945  ;;  %v2003_v47 = vmax.f32 %v4919_v8, 0.0  ;;  %v2031_v25 = vadd.f32 1.0, %v2944_v50  ;;  %v1743_v12 = vadd.f32 %v1742_v23, %v1741_v5  ;;  %v1514_v4 = vand.u32 2147483647, %v5013_v62 }
 0x33b   :  { %v5030_v42 = vpop.eup %2947  ;;  %v1894_v28 = vsel %vm5017_vm7, %v1891_v20, %v1888_v46  ;;  %v2040_v37 = vadd.f32 1.0, %v2946_v44  ;;  %v1738_v54 = vsub.f32 %v1726_v49, %v1734_v53  ;;  %v2034_v2 = vmul.f32 -0.5, %v2944_v50  ;;  %v1623_v53 = vld [vmem:[#allocation23] sm:$0xff] }
 0x33c   :  { %v1895_v55 = vadd.f32 %v1894_v28, %v1879_v1  ;;  %2951 = vlog2.f32 %v2031_v25  ;;  %v5035_v26 = vpop.eup %2949  ;;  %v2004_v10 = vmax.f32 %v4923_v0, 0.0  ;;  %v2005_v21 = vmax.f32 %v4932_v27, 0.0 }
 0x33d   :  { %2953 = vlog2.f32 %v2040_v37  ;;  %v2252_v3 = vmul.f32 1.442695, %v2251_v14  ;;  %v1744_v34 = vsel %vm633_vm15, %v1738_v54, 0.0  ;;  %v2043_v31 = vmul.f32 -0.5, %v2946_v44 }
 0x33e   :  { %v1896_v32 = vsel %vm1880_vm8, %v4815_v41, %v1895_v55  ;;  %v2049_v19 = vadd.f32 1.0, %v5030_v42  ;;  %v1745_v5 = vadd.f32 %v1744_v34, %v1743_v12  ;;  %v1515_v13 = vsub.f32 0.0, %v1514_v4  ;;  %v1624_v34 = vld [vmem:[#allocation23 + $0x8] sm:$0xff] }
 0x33f   :  { %v1897_v20 = vmul.f32 %v1896_v32, %v1878_v17  ;;  %2955 = vlog2.f32 %v1896_v32  ;;  %v2035_v52 = vadd.f32 1.0, %v2034_v2  ;;  %v2037_v23 = vand.u32 2147483647, %v2944_v50 }
 0x340   :  { %2957 = vlog2.f32 %v2049_v19  ;;  %v2058_v1 = vadd.f32 1.0, %v5035_v26  ;;  %1746 = vadd.xlane.f32.xlu1 %v1745_v5  ;;  %v2006_v41 = vmax.f32 %v4934_v22, 0.0  ;;  %vm2007_vm9 = vcmp.ne.f32.partialorder %v4919_v8, %v4919_v8 }
 0x341   :  { %v1898_v46 = vadd.f32 %v1897_v20, %v1876_v48  ;;  %v2052_v14 = vmul.f32 -0.5, %v5030_v42  ;;  %v2044_v17 = vadd.f32 1.0, %v2043_v31  ;;  %v2046_v49 = vand.u32 2147483647, %v2946_v44 }
 0x342   :  { %2959 = vlog2.f32 %v2058_v1  ;;  %v2061_v25 = vmul.f32 -0.5, %v5035_v26  ;;  %v5054_v12 = vadd.f32 %v4915_v9, %v1623_v53  ;;  %vm2008_vm10 = vcmp.ne.f32.partialorder %v4923_v0, %v4923_v0 }
 0x343   :  { %v1915_v28 = vmul.f32 %v1898_v46, %v1898_v46  ;;  %1990 = vst.msk [vmem:[%s6262_s28] sm:$0x1] %vm800_vm6, %v1898_v46  ;;  %v1516_v37 = vmul.f32 1.442695, %v1515_v13  ;;  %v2365_v4 = vand.u32 2147483647, %v5046_v16  ;;  %v2036_v54 = vmul.f32 %v2944_v50, %v2035_v52 }
 0x344   :  { %6263 = vst [vmem:[#allocation106_spill] sm:$0xff] %v5054_v12  ;;  %vm5061_vm11 = vcmp.lt.f32.partialorder %v2037_v23, 0.0004427343  ;;  %v2055_v2 = vand.u32 2147483647, %v5030_v42  ;;  %2961 = vpow2.f32 %v2252_v3  ;;  %v2053_v32 = vadd.f32 1.0, %v2052_v14 }
 0x345   :  { %v1916_v9 = vmul.f32 0.5, %v1915_v28  ;;  %v1918_v48 = vmul.f32 80000.0, %v1915_v28  ;;  %v2366_v31 = vsub.f32 0.0, %v2365_v4  ;;  %v2045_v53 = vmul.f32 %v2946_v44, %v2044_v17 }
 0x346   :  { %v2952_v19 = vpop.eup %2951  ;;  %vm5066_vm12 = vcmp.lt.f32.partialorder %v2046_v49, 0.0004427343  ;;  %v2062_v20 = vadd.f32 1.0, %v2061_v25  ;;  %v2064_v50 = vand.u32 2147483647, %v5035_v26  ;;  %2963 = vpow2.f32 %v1516_v37 }
 0x347   :  { %v2954_v13 = vpop.eup %2953  ;;  %v1917_v52 = vsub.f32 -0.9189385, %v1916_v9  ;;  %v1919_v23 = vsub.f32 5.072526, %v1918_v48  ;;  %v2033_v1 = vmul.f32 0.6931472, %v2952_v19  ;;  %v5072_v3 = vadd.f32 %v4917_v43, %v1624_v34 }
 0x348   :  { %v2042_v46 = vmul.f32 0.6931472, %v2954_v13  ;;  %vm5074_vm13 = vcmp.lt.f32.partialorder %v2055_v2, 0.0004427343  ;;  %v2367_v44 = vmul.f32 1.442695, %v2366_v31  ;;  %v2054_v37 = vmul.f32 %v5030_v42, %v2053_v32 }
 0x349   :  { %6269 = vst [vmem:[#allocation107_spill] sm:$0xff] %v5072_v3  ;;  %v2956_v17 = vpop.eup %2955  ;;  %v5078_v49 = vadd.f32 -0.6931472, %v1917_v52  ;;  %v5080_v25 = vadd.f32 -0.6931472, %v1919_v23  ;;  %v2039_v28 = vsel %vm5061_vm11, %v2036_v54, %v2033_v1  ;;  %v1999_v48 = vld [vmem:[%s6268_s6] sm:$0xff]  ;;  %vm2009_vm14 = vcmp.ne.f32.partialorder %v4932_v27, %v4932_v27 }
 0x34a   :  { %v2958_v4 = vpop.eup %2957  ;;  %v1900_v43 = vmul.f32 0.6931472, %v2956_v17  ;;  %v2048_v2 = vsel %vm5066_vm12, %v2045_v53, %v2042_v46  ;;  %v2067_v34 = vadd.f32 %v2039_v28, %v2003_v47  ;;  %2965 = vpow2.f32 %v2367_v44  ;;  %v2000_v31 = vld [vmem:[%s6268_s6 + $0x8] sm:$0xff]  ;;  %v2002_v17 = vld [vmem:[%s6268_s6 + $0x18] sm:$0xff] }
 0x34b   :  { %v5091_v9 = vsub.f32 %v5078_v49, %v5080_v25  ;;  %v2051_v54 = vmul.f32 0.6931472, %v2958_v4  ;;  %v2063_v42 = vmul.f32 %v5035_v26, %v2062_v20  ;;  %vm5098_vm0 = vcmp.lt.f32.partialorder %v2064_v50, 0.0004427343  ;;  %v1625_v44 = vld [vmem:[#allocation23 + $0x10] sm:$0xff] }
 0x34c   :  { %v2960_v55 = vpop.eup %2959  ;;  %v1901_v32 = vsub.f32 -0.9189385, %v1900_v43  ;;  %v2068_v47 = vadd.f32 %v2048_v2, %v2004_v10  ;;  %v2071_v53 = vsel %vm2007_vm9, %v4919_v8, %v2067_v34  ;;  %vm2010_vm1 = vcmp.ne.f32.partialorder %v4934_v22, %v4934_v22  ;;  %v2001_v10 = vld [vmem:[%s6268_s6 + $0x10] sm:$0xff] }
 0x34d   :  { %v1926_v5 = vand.u32 2147483647, %v5091_v9  ;;  %v2057_v26 = vsel %vm5074_vm13, %v2054_v37, %v2051_v54  ;;  %v2060_v20 = vmul.f32 0.6931472, %v2960_v55  ;;  %v5123_v23 = vmul.f32 %v2071_v53, %v1999_v48  ;;  %v5151_v55 = vld [vmem:[#allocation38] sm:$0x1] }
 0x34e   :  { %v5113_v50 = vpop.eup %2961  ;;  %v1904_v13 = vsub.f32 %v1901_v32, %v5027_v11  ;;  %v2069_v52 = vadd.f32 %v2057_v26, %v2005_v21  ;;  %v2072_v8 = vsel %vm2008_vm10, %v4923_v0, %v2068_v47  ;;  %2967 = vlog2.f32 %v2071_v53 }
 0x34f   :  { %6274 = vst [vmem:[#allocation108_spill] sm:$0xff] %v5123_v23  ;;  %v1927_v1 = vsub.f32 0.0, %v1926_v5  ;;  %v2066_v46 = vsel %vm5098_vm0, %v2063_v42, %v2060_v20  ;;  %v5127_v14 = vmul.f32 %v2072_v8, %v2000_v31  ;;  %v2095_v28 = vmul.f32 %v1999_v48, %v1999_v48 }
 0x350   :  { %v1905_v11 = vsel %vm800_vm6, %v1904_v13, 0.0  ;;  %v2070_v21 = vadd.f32 %v2066_v46, %v2006_v41  ;;  %v2073_v0 = vsel %vm2009_vm14, %v4932_v27, %v2069_v52  ;;  %v5137_v37 = vpop.eup %2963  ;;  %2969 = vlog2.f32 %v2072_v8 }
 0x351   :  { %6275 = vst [vmem:[#allocation109_spill] sm:$0xff] %v5127_v14  ;;  %1906 = vadd.xlane.f32.xlu1 %v1905_v11  ;;  %v1928_v4 = vmul.f32 1.442695, %v1927_v1  ;;  %v5139_v43 = vmul.f32 %v2073_v0, %v2001_v10  ;;  %v2254_v2 = vadd.f32 1.0, %v5113_v50  ;;  %2971 = vlog2.f32 %v2073_v0 }
 0x352   :  { %v2074_v41 = vsel %vm2010_vm1, %v4934_v22, %v2070_v21  ;;  %v2096_v34 = vmul.f32 %v2000_v31, %v2000_v31  ;;  %v2097_v54 = vmul.f32 %v2001_v10, %v2001_v10  ;;  %v5147_v27 = vadd.f32 %v4930_v29, %v1625_v44  ;;  %v5161_v31 = vld [vmem:[#allocation22] sm:$0x1] }
 0x353   :  { %6276 = vst [vmem:[#allocation110_spill] sm:$0xff] %v5139_v43  ;;  %2973 = vpow2.f32 %v1928_v4  ;;  %v5149_v48 = vmul.f32 %v2074_v41, %v2002_v17  ;;  %v2098_v42 = vmul.f32 %v2002_v17, %v2002_v17  ;;  %v5157_v19 = vmul.f32 %v5054_v12, %v5054_v12 }
 0x354   :  { %6277 = vst [vmem:[#allocation111_spill] sm:$0xff] %v5147_v27  ;;  %v5153_v32 = vpop.eup %2965  ;;  %2975 = vlog2.f32 %v2074_v41  ;;  %v2270_v22 = vmul.f32 %v5151_v55, %v5151_v55  ;;  %v1518_v29 = vadd.f32 1.0, %v5137_v37  ;;  %v5166_v47 = vmul.f32 %v5072_v3, %v5072_v3 }
 0x355   :  { %6278 = vst [vmem:[#allocation112_spill] sm:$0xff] %v5149_v48  ;;  %6279 = vst [vmem:[#allocation113_spill] sm:$0xff] %v5157_v19  ;;  %v2099_v53 = vmul.f32 0.5, %v2095_v28  ;;  %2977 = vlog2.f32 %v2254_v2  ;;  %v1534_v5 = vmul.f32 %v5161_v31, %v5161_v31  ;;  %v2100_v26 = vmul.f32 0.5, %v2096_v34 }
 0x356   :  { %6280 = vst [vmem:[#allocation114_spill] sm:$0xff] %v5166_v47  ;;  %v5170_v20 = vmul.f32 0.5, %v2097_v54  ;;  %v2257_v13 = vmul.f32 -0.5, %v5113_v50  ;;  %2979 = vlog2.f32 %v1518_v29  ;;  %v5173_v10 = vmul.f32 0.5, %v2098_v42 }
 0x357   :  { %v2247_v52 = vmax.f32 %v4983_v38, 0.0  ;;  %v1521_v8 = vmul.f32 -0.5, %v5137_v37  ;;  %v2369_v1 = vadd.f32 1.0, %v5153_v32  ;;  %v5178_v46 = vmul.f32 0.5, %v2270_v22 }
 0x358   :  { %v5183_v17 = vmul.f32 0.5, %v4957_v33  ;;  %v2968_v21 = vpop.eup %2967  ;;  %v2260_v0 = vand.u32 2147483647, %v5113_v50  ;;  %v5186_v28 = vmul.f32 0.5, %v1534_v5  ;;  %v2372_v4 = vmul.f32 -0.5, %v5153_v32 }
 0x359   :  { %2981 = vlog2.f32 %v2369_v1  ;;  %v2084_v2 = vmul.f32 0.6931472, %v2968_v21  ;;  %v2258_v41 = vadd.f32 1.0, %v2257_v13  ;;  %v5190_v34 = vmul.f32 0.5, %v4971_v18 }
 0x35a   :  { %v5193_v54 = vmul.f32 0.5, %v4987_v6  ;;  %v2970_v42 = vpop.eup %2969  ;;  %vm2248_vm2 = vcmp.ne.f32.partialorder %v4983_v38, %v4983_v38  ;;  %v1522_v22 = vadd.f32 1.0, %v1521_v8  ;;  %v1524_v29 = vand.u32 2147483647, %v5137_v37  ;;  %v1508_v8 = vld [vmem:[#allocation19] sm:$0x1] }
 0x35b   :  { %v5199_v5 = vmul.f32 0.5, %v4991_v40  ;;  %v5202_v1 = vmul.f32 80000.0, %v4957_v33  ;;  %v2972_v13 = vpop.eup %2971  ;;  %v2086_v21 = vmul.f32 0.6931472, %v2970_v42  ;;  %vm1512_vm3 = vcmp.ne.f32.partialorder %v5013_v62, %v5013_v62  ;;  %v2361_v33 = vld [vmem:[%s6287_s1] sm:$0xf] }
 0x35c   :  { %v2375_v11 = vand.u32 2147483647, %v5153_v32  ;;  %v5212_v12 = vadd.f32 %v5080_v25, %v5078_v49  ;;  %vm5214_vm4 = vcmp.lt.f32.partialorder %v2260_v0, 0.0004427343  ;;  %v2373_v42 = vadd.f32 1.0, %v2372_v4 }
 0x35d   :  { %v2974_v3 = vpop.eup %2973  ;;  %v2088_v45 = vmul.f32 0.6931472, %v2972_v13  ;;  %v2091_v58 = vsub.f32 -0.9189385, %v2084_v2  ;;  %v2259_v63 = vmul.f32 %v5113_v50, %v2258_v41  ;;  %v2092_v59 = vsub.f32 -0.9189385, %v2086_v21 }
 0x35e   :  { %v2976_v57 = vpop.eup %2975  ;;  %v1930_v15 = vadd.f32 1.0, %v2974_v3  ;;  %v1523_v39 = vmul.f32 %v5137_v37, %v1522_v22  ;;  %vm5220_vm5 = vcmp.lt.f32.partialorder %v1524_v29, 0.0004427343  ;;  %vm2363_vm7 = vcmp.ne.f32.partialorder %v5046_v16, %v5046_v16 }
 0x35f   :  { %v2978_v44 = vpop.eup %2977  ;;  %vm5227_vm8 = vcmp.lt.f32.partialorder %v2375_v11, 0.0004427343  ;;  %v1933_v37 = vmul.f32 -0.5, %v2974_v3  ;;  %v2090_v41 = vmul.f32 0.6931472, %v2976_v57  ;;  %v2374_v29 = vmul.f32 %v5153_v32, %v2373_v42 }
 0x360   :  { %v2980_v4 = vpop.eup %2979  ;;  %2983 = vlog2.f32 %v1930_v15  ;;  %v2256_v22 = vmul.f32 0.6931472, %v2978_v44  ;;  %v2093_v21 = vsub.f32 -0.9189385, %v2088_v45  ;;  %v2103_v51 = vsub.f32 %v2091_v58, %v2099_v53 }
 0x361   :  { %v1520_v60 = vmul.f32 0.6931472, %v2980_v4  ;;  %v5235_v0 = vmul.f32 80000.0, %v4971_v18  ;;  %v2104_v11 = vsub.f32 %v2092_v59, %v2100_v26  ;;  %v5240_v50 = vmul.f32 80000.0, %v4987_v6  ;;  %v2244_v26 = vld [vmem:[#allocation35] sm:$0x1] }
 0x362   :  { %v2262_v36 = vsel %vm5214_vm4, %v2259_v63, %v2256_v22  ;;  %v5243_v2 = vmul.f32 80000.0, %v4991_v40  ;;  %v1035_v32 = vsub.f32 5.072526, %v5202_v1  ;;  %vm1924_vm9 = vcmp.ne.f32.partialorder %v5091_v9, %v5091_v9 }
 0x363   :  { %v2982_v15 = vpop.eup %2981  ;;  %v2263_v57 = vadd.f32 %v2262_v36, %v2247_v52  ;;  %v1526_v45 = vsel %vm5220_vm5, %v1523_v39, %v1520_v60  ;;  %v1934_v18 = vadd.f32 1.0, %v1933_v37  ;;  %v1936_v59 = vand.u32 2147483647, %v2974_v3 }
 0x364   :  { %v2371_v58 = vmul.f32 0.6931472, %v2982_v15  ;;  %v2094_v63 = vsub.f32 -0.9189385, %v2090_v41  ;;  %v6288_v6 = vmax.f32 %v5013_v62, 0.0  ;;  %v2105_v40 = vsub.f32 %v2093_v21, %v5170_v20 }
 0x365   :  { %v2107_v36 = vsel %vm633_vm15, %v2103_v51, 0.0  ;;  %v2264_v60 = vsel %vm2248_vm2, %v4983_v38, %v2263_v57  ;;  %v2108_v52 = vsel %vm633_vm15, %v2104_v11, 0.0  ;;  %v6289_v38 = vmax.f32 %v5046_v16, 0.0  ;;  %v2359_v21 = vld [vmem:[#allocation40] sm:$0xf] }
 0x366   :  { %v1527_v53 = vadd.f32 %v1526_v45, %v6288_v6  ;;  %v2377_v39 = vsel %vm5227_vm8, %v2374_v29, %v2371_v58  ;;  %v2265_v44 = vmul.f32 %v2264_v60, %v5151_v55  ;;  %2985 = vlog2.f32 %v2264_v60 }
 0x367   :  { %v2378_v42 = vadd.f32 %v2377_v39, %v6289_v38  ;;  %v1036_v4 = vsub.f32 5.072526, %v5235_v0  ;;  %v1935_v13 = vmul.f32 %v2974_v3, %v1934_v18  ;;  %vm5271_vm10 = vcmp.lt.f32.partialorder %v1936_v59, 0.0004427343 }
 0x368   :  { %v1528_v51 = vsel %vm1512_vm3, %v5013_v62, %v1527_v53  ;;  %v2266_v37 = vadd.f32 %v2265_v44, %v2244_v26  ;;  %v1037_v41 = vsub.f32 5.072526, %v5240_v50  ;;  %v2109_v22 = vadd.f32 %v2108_v52, %v2107_v36 }
 0x369   :  { %v1529_v20 = vmul.f32 %v1528_v51, %v5161_v31  ;;  %2987 = vlog2.f32 %v1528_v51  ;;  %v2106_v31 = vsub.f32 %v2094_v63, %v5173_v10  ;;  %v2379_v0 = vsel %vm2363_vm7, %v5046_v16, %v2378_v42 }
 0x36a   :  { %v2984_v62 = vpop.eup %2983  ;;  %v2110_v15 = vsel %vm633_vm15, %v2105_v40, 0.0  ;;  %v2283_v11 = vmul.f32 %v2266_v37, %v2266_v37  ;;  %2358 = vst.msk [vmem:[%s4047_s3] sm:$0x1] %vm800_vm6, %v2266_v37  ;;  %v2380_v57 = vmul.f32 %v2379_v0, %v2361_v33  ;;  %2989 = vlog2.f32 %v2379_v0  ;;  %s6379_s3 = sld [smem:[#allocation84_spill]] }
 0x36b   :  { %v1530_v29 = vadd.f32 %v1529_v20, %v1508_v8  ;;  %v1932_v3 = vmul.f32 0.6931472, %v2984_v62  ;;  %v1038_v10 = vsub.f32 5.072526, %v5243_v2  ;;  %v6293_v50 = vsub.f32 -0.9189385, %v5183_v17 }
 0x36c   :  { %v2284_v18 = vmul.f32 0.5, %v2283_v11  ;;  %v2286_v59 = vmul.f32 80000.0, %v2283_v11  ;;  %v5293_v63 = vadd.f32 %v2380_v57, %v2359_v21  ;;  %v6295_v6 = vmax.f32 %v5078_v49, %v5080_v25 }
 0x36d   :  { %v1547_v45 = vmul.f32 %v1530_v29, %v1530_v29  ;;  %1622 = vst.msk [vmem:[%s6290_s7] sm:$0x1] %vm800_vm6, %v1530_v29  ;;  %v5289_v58 = vadd.f32 -0.6931472, %v6293_v50  ;;  %v1938_v16 = vsel %vm5271_vm10, %v1935_v13, %v1932_v3  ;;  %v2111_v40 = vadd.f32 %v2110_v15, %v2109_v22 }
 0x36e   :  { %6294 = vst [vmem:[#allocation115_spill] sm:$0xff] %v5293_v63  ;;  %v1939_v53 = vadd.f32 %v1938_v16, %v6295_v6  ;;  %v2112_v2 = vsel %vm633_vm15, %v2106_v31, 0.0  ;;  %v2285_v60 = vsub.f32 -0.9189385, %v2284_v18  ;;  %v2287_v17 = vsub.f32 5.072526, %v2286_v59 }
 0x36f   :  { %v1548_v36 = vmul.f32 0.5, %v1547_v45  ;;  %v1550_v26 = vmul.f32 80000.0, %v1547_v45  ;;  %v2399_v39 = vmul.f32 %v5293_v63, %v5293_v63  ;;  %v6296_v49 = vsub.f32 -0.9189385, %v5190_v34 }
 0x370   :  { %v1940_v52 = vsel %vm1924_vm9, %v5212_v12, %v1939_v53  ;;  %v2986_v51 = vpop.eup %2985  ;;  %v5310_v38 = vadd.f32 -0.6931472, %v2285_v60  ;;  %v5312_v42 = vadd.f32 -0.6931472, %v2287_v17  ;;  %v2113_v37 = vadd.f32 %v2112_v2, %v2111_v40  ;;  %v1626_v40 = vld [vmem:[#allocation23 + $0x18] sm:$0xff] }
 0x371   :  { %v1549_v44 = vsub.f32 -0.9189385, %v1548_v36  ;;  %v1551_v8 = vsub.f32 5.072526, %v1550_v26  ;;  %v5307_v25 = vadd.f32 -0.6931472, %v6296_v49  ;;  %v2385_v50 = vmul.f32 %v2361_v33, %v2361_v33 }
 0x372   :  { %v1941_v20 = vsel %vm800_vm6, %v1940_v52, 0.0  ;;  %v2400_v13 = vmul.f32 0.5, %v2399_v39  ;;  %v2268_v62 = vmul.f32 0.6931472, %v2986_v51  ;;  %v5320_v34 = vsub.f32 %v5310_v38, %v5312_v42 }
 0x373   :  { %v2988_v55 = vpop.eup %2987  ;;  %1942 = vadd.xlane.f32.xlu1 %v1941_v20  ;;  %v5314_v9 = vadd.f32 -0.6931472, %v1549_v44  ;;  %v5316_v12 = vadd.f32 -0.6931472, %v1551_v8  ;;  %v6297_v22 = vsub.f32 -0.9189385, %v5193_v54  ;;  %v5366_v17 = vmul.f32 %v5147_v27, %v5147_v27 }
 0x374   :  { %v1532_v31 = vmul.f32 0.6931472, %v2988_v55  ;;  %v5328_v21 = vadd.f32 -0.6931472, %v1035_v32  ;;  %v2269_v0 = vsub.f32 -0.9189385, %v2268_v62  ;;  %v2990_v16 = vpop.eup %2989  ;;  %v5373_v8 = vadd.f32 %v4964_v30, %v1626_v40 }
 0x375   :  { %v5324_v29 = vadd.f32 -0.6931472, %v6297_v22  ;;  %v5332_v3 = vsub.f32 %v5314_v9, %v5316_v12  ;;  %v5334_v15 = vadd.f32 -0.6931472, %v1036_v4  ;;  %v5336_v11 = vadd.f32 -0.6931472, %v1037_v41 }
 0x376   :  { %v1533_v57 = vsub.f32 -0.9189385, %v1532_v31  ;;  %v2294_v45 = vand.u32 2147483647, %v5320_v34  ;;  %v2401_v54 = vsub.f32 -0.9189385, %v2400_v13  ;;  %v2272_v1 = vsub.f32 %v2269_v0, %v5178_v46 }
 0x377   :  { %2114 = vadd.xlane.f32.xlu1 %v2113_v37  ;;  %v1558_v32 = vand.u32 2147483647, %v5332_v3  ;;  %v6298_v18 = vsub.f32 -0.9189385, %v5199_v5  ;;  %v5345_v6 = vadd.f32 -0.6931472, %v1038_v10  ;;  %v5350_v33 = vsub.f32 %v5289_v58, %v5328_v21 }
 0x378   :  { %v1536_v4 = vsub.f32 %v1533_v57, %v5186_v28  ;;  %v2295_v41 = vsub.f32 0.0, %v2294_v45  ;;  %v2402_v53 = vmul.f32 80000.0, %v2399_v39  ;;  %v2273_v36 = vsel %vm800_vm6, %v2272_v1, 0.0  ;;  %6299 = vst [vmem:[#allocation116_spill] sm:$0xff] %v5366_v17  ;;  %6300 = vst [vmem:[#allocation117_spill] sm:$0xff] %v5373_v8 }
 0x379   :  { %v5343_v59 = vadd.f32 -0.6931472, %v6298_v18  ;;  %v1559_v46 = vsub.f32 0.0, %v1558_v32  ;;  %v5353_v26 = vadd.f32 -0.6931472, %v2401_v54  ;;  %v5357_v5 = vsub.f32 %v5307_v25, %v5334_v15 }
 0x37a   :  { %v1537_v10 = vsel %vm800_vm6, %v1536_v4, 0.0  ;;  %v2296_v2 = vmul.f32 1.442695, %v2295_v41  ;;  %v2403_v28 = vsub.f32 5.072526, %v2402_v53  ;;  %v5362_v60 = vsub.f32 %v5324_v29, %v5336_v11 }
 0x37b   :  { %2274 = vadd.xlane.f32.xlu1 %v2273_v36  ;;  %1538 = vadd.xlane.f32.xlu0 %v1537_v10  ;;  %v1560_v39 = vmul.f32 1.442695, %v1559_v46  ;;  %v2383_v52 = vmul.f32 0.6931472, %v2990_v16  ;;  %v5370_v44 = vsub.f32 %v5343_v59, %v5345_v6  ;;  %v2386_v49 = vmul.f32 0.5, %v2385_v50 }
 0x37c   :  { %2991 = vpow2.f32 %v2296_v2  ;;  %v5375_v51 = vadd.f32 -0.6931472, %v2403_v28  ;;  %v1063_v13 = vand.u32 2147483647, %v5350_v33  ;;  %v1064_v55 = vand.u32 2147483647, %v5357_v5 }
 0x37d   :  { %2993 = vpow2.f32 %v1560_v39  ;;  %v1065_v31 = vand.u32 2147483647, %v5362_v60  ;;  %v2384_v22 = vsub.f32 -0.9189385, %v2383_v52  ;;  %v1066_v0 = vand.u32 2147483647, %v5370_v44 }
 0x37e   :  { %v5383_v37 = vsub.f32 %v5353_v26, %v5375_v51  ;;  %v1067_v57 = vsub.f32 0.0, %v1063_v13  ;;  %v1068_v45 = vsub.f32 0.0, %v1064_v55  ;;  %vm2388_vm11 = vcmask 257024  }
 0x37f   :  { %v1069_v1 = vsub.f32 0.0, %v1065_v31  ;;  %v5398_v32 = vadd.f32 %v5312_v42, %v5310_v38  ;;  %v1070_v18 = vsub.f32 0.0, %v1066_v0  ;;  %v1391_v46 = vmul.f32 0.5, %v5001_v61 }
 0x380   :  { %v2410_v54 = vand.u32 2147483647, %v5383_v37  ;;  %v1071_v4 = vmul.f32 1.442695, %v1067_v57  ;;  %v1073_v41 = vmul.f32 1.442695, %v1068_v45  ;;  %v5405_v10 = vadd.f32 %v5316_v12, %v5314_v9 }
 0x381   :  { %v1075_v36 = vmul.f32 1.442695, %v1069_v1  ;;  %v2387_v2 = vsub.f32 %v2384_v22, %v2386_v49  ;;  %v1077_v28 = vmul.f32 1.442695, %v1070_v18  ;;  %v5409_v52 = vadd.f32 %v5328_v21, %v5289_v58 }
 0x382   :  { %v2411_v40 = vsub.f32 0.0, %v2410_v54  ;;  %2995 = vpow2.f32 %v1071_v4  ;;  %v1392_v13 = vmul.f32 0.5, %v5005_v24  ;;  %v5414_v55 = vadd.f32 %v5334_v15, %v5307_v25 }
 0x383   :  { %2997 = vpow2.f32 %v1073_v41  ;;  %v5418_v31 = vadd.f32 %v5336_v11, %v5324_v29  ;;  %v5422_v49 = vadd.f32 %v5345_v6, %v5343_v59  ;;  %v1393_v0 = vmul.f32 0.5, %v5010_v56 }
 0x384   :  { %v2412_v39 = vmul.f32 1.442695, %v2411_v40  ;;  %2999 = vpow2.f32 %v1075_v36  ;;  %v1394_v57 = vmul.f32 0.5, %v5023_v7  ;;  %v1395_v45 = vsub.f32 -0.9189385, %v1391_v46 }
 0x385   :  { %v1399_v4 = vmul.f32 80000.0, %v5001_v61  ;;  %v1396_v16 = vsub.f32 -0.9189385, %v1392_v13  ;;  %v1400_v62 = vmul.f32 80000.0, %v5005_v24  ;;  %v1397_v20 = vsub.f32 -0.9189385, %v1393_v0 }
 0x386   :  { %v2992_v22 = vpop.eup %2991  ;;  %3001 = vpow2.f32 %v2412_v39  ;;  %v1401_v39 = vmul.f32 80000.0, %v5010_v56  ;;  %v1398_v53 = vsub.f32 -0.9189385, %v1394_v57  ;;  %v1402_v46 = vmul.f32 80000.0, %v5023_v7 }
 0x387   :  { %v2994_v54 = vpop.eup %2993  ;;  %v2298_v1 = vadd.f32 1.0, %v2992_v22  ;;  %v2301_v18 = vmul.f32 -0.5, %v2992_v22  ;;  %3003 = vpow2.f32 %v1077_v28  ;;  %v2304_v36 = vand.u32 2147483647, %v2992_v22 }
 0x388   :  { %v1562_v41 = vadd.f32 1.0, %v2994_v54  ;;  %v1565_v40 = vmul.f32 -0.5, %v2994_v54  ;;  %v1568_v30 = vand.u32 2147483647, %v2994_v54  ;;  %v5431_v28 = vsel %vm2388_vm11, %v2387_v2, 0.0 }
 0x389   :  { %3005 = vlog2.f32 %v2298_v1  ;;  %v2302_v50 = vadd.f32 1.0, %v2301_v18  ;;  %v1403_v61 = vsub.f32 5.072526, %v1399_v4  ;;  %v5433_v27 = vadd.f32 -0.6931472, %v1395_v45 }
 0x38a   :  { %3007 = vlog2.f32 %v1562_v41  ;;  %v1566_v13 = vadd.f32 1.0, %v1565_v40  ;;  %v1404_v1 = vsub.f32 5.072526, %v1400_v62  ;;  %v5437_v63 = vadd.f32 -0.6931472, %v1396_v16 }
 0x38b   :  { %6301 = vst [vmem:[#allocation118_spill] sm:$0xff] %v5433_v27  ;;  %vm5439_vm12 = vcmp.lt.f32.partialorder %v2304_v36, 0.0004427343  ;;  %vm5443_vm13 = vcmp.lt.f32.partialorder %v1568_v30, 0.0004427343  ;;  %v5449_v2 = vadd.f32 %v5375_v51, %v5353_v26  ;;  %vm2292_vm14 = vcmp.ne.f32.partialorder %v5320_v34, %v5320_v34 }
 0x38c   :  { %v2996_v56 = vpop.eup %2995  ;;  %v1405_v57 = vsub.f32 5.072526, %v1401_v39  ;;  %v1406_v18 = vsub.f32 5.072526, %v1402_v46  ;;  %v5453_v4 = vadd.f32 -0.6931472, %v1397_v20  ;;  %v2303_v30 = vmul.f32 %v2992_v22, %v2302_v50 }
 0x38d   :  { %v2998_v45 = vpop.eup %2997  ;;  %v1079_v62 = vadd.f32 1.0, %v2996_v56  ;;  %v1082_v16 = vmul.f32 -0.5, %v2996_v56  ;;  %vm1556_vm0 = vcmp.ne.f32.partialorder %v5332_v3, %v5332_v3  ;;  %v5459_v36 = vadd.f32 -0.6931472, %v1398_v53 }
 0x38e   :  { %v5455_v41 = vpop.eup %2999  ;;  %v1088_v40 = vadd.f32 1.0, %v2998_v45  ;;  %v5461_v24 = vadd.f32 -0.6931472, %v1403_v61  ;;  %v1567_v35 = vmul.f32 %v2994_v54, %v1566_v13  ;;  %v1085_v48 = vand.u32 2147483647, %v2996_v56 }
 0x38f   :  { %3009 = vlog2.f32 %v1079_v62  ;;  %v1097_v43 = vadd.f32 1.0, %v5455_v41  ;;  %v1091_v14 = vmul.f32 -0.5, %v2998_v45  ;;  %v5464_v23 = vadd.f32 -0.6931472, %v1404_v1 }
 0x390   :  { %6306 = vst [vmem:[#allocation119_spill] sm:$0xff] %v5461_v24  ;;  %v3002_v39 = vpop.eup %3001  ;;  %3011 = vlog2.f32 %v1088_v40  ;;  %v1083_v22 = vadd.f32 1.0, %v1082_v16  ;;  %v5466_v17 = vadd.f32 -0.6931472, %v1405_v57  ;;  %v1094_v61 = vand.u32 2147483647, %v2998_v45 }
 0x391   :  { %v3004_v46 = vpop.eup %3003  ;;  %v2414_v20 = vadd.f32 1.0, %v3002_v39  ;;  %v2417_v50 = vmul.f32 -0.5, %v3002_v39  ;;  %3013 = vlog2.f32 %v1097_v43  ;;  %v1100_v54 = vmul.f32 -0.5, %v5455_v41 }
 0x392   :  { %v5469_v13 = vadd.f32 -0.6931472, %v1406_v18  ;;  %vm5471_vm1 = vcmp.lt.f32.partialorder %v1085_v48, 0.0004427343  ;;  %v1106_v1 = vadd.f32 1.0, %v3004_v46  ;;  %v5477_v16 = vsub.f32 %v5433_v27, %v5461_v24 }
 0x393   :  { %v3006_v53 = vpop.eup %3005  ;;  %3015 = vlog2.f32 %v2414_v20  ;;  %v2420_v57 = vand.u32 2147483647, %v3002_v39  ;;  %vm1055_vm2 = vcmp.ne.f32.partialorder %v5350_v33, %v5350_v33  ;;  %v1092_v40 = vadd.f32 1.0, %v1091_v14 }
 0x394   :  { %v3008_v62 = vpop.eup %3007  ;;  %v2300_v47 = vmul.f32 0.6931472, %v3006_v53  ;;  %v1109_v20 = vmul.f32 -0.5, %v3004_v46  ;;  %v2418_v53 = vadd.f32 1.0, %v2417_v50  ;;  %vm1056_vm3 = vcmp.ne.f32.partialorder %v5357_v5, %v5357_v5 }
 0x395   :  { %v1564_v43 = vmul.f32 0.6931472, %v3008_v62  ;;  %v1084_v48 = vmul.f32 %v2996_v56, %v1083_v22  ;;  %3017 = vlog2.f32 %v1106_v1  ;;  %v6309_v27 = vmax.f32 %v5310_v38, %v5312_v42 }
 0x396   :  { %v2306_v18 = vsel %vm5439_vm12, %v2303_v30, %v2300_v47  ;;  %vm1057_vm4 = vcmp.ne.f32.partialorder %v5362_v60, %v5362_v60  ;;  %vm5492_vm5 = vcmp.lt.f32.partialorder %v1094_v61, 0.0004427343  ;;  %v1101_v47 = vadd.f32 1.0, %v1100_v54 }
 0x397   :  { %v2307_v24 = vadd.f32 %v2306_v18, %v6309_v27  ;;  %v1570_v62 = vsel %vm5443_vm13, %v1567_v35, %v1564_v43  ;;  %v6312_v0 = vmax.f32 %v5314_v9, %v5316_v12  ;;  %vm2408_vm7 = vcmp.ne.f32.partialorder %v5383_v37, %v5383_v37 }
 0x398   :  { %v1103_v27 = vand.u32 2147483647, %v5455_v41  ;;  %v1110_v38 = vadd.f32 1.0, %v1109_v20  ;;  %v1112_v42 = vand.u32 2147483647, %v3004_v46  ;;  %v1093_v30 = vmul.f32 %v2998_v45, %v1092_v40 }
 0x399   :  { %v1571_v56 = vadd.f32 %v1570_v62, %v6312_v0  ;;  %v2308_v35 = vsel %vm2292_vm14, %v5398_v32, %v2307_v24  ;;  %vm5506_vm8 = vcmp.lt.f32.partialorder %v2420_v57, 0.0004427343  ;;  %v5512_v9 = vsub.f32 %v5437_v63, %v5464_v23  ;;  %v3010_v12 = vpop.eup %3009  ;;  %v1994_v57 = vld [vmem:[#allocation32 + $0x18] sm:$0xff] }
 0x39a   :  { %v2309_v50 = vsel %vm800_vm6, %v2308_v35, 0.0  ;;  %v2419_v61 = vmul.f32 %v3002_v39, %v2418_v53  ;;  %v5521_v34 = vsub.f32 %v5453_v4, %v5466_v17  ;;  %v3012_v32 = vpop.eup %3011  ;;  %vm1058_vm9 = vcmp.ne.f32.partialorder %v5370_v44, %v5370_v44 }
 0x39b   :  { %v1572_v22 = vsel %vm1556_vm0, %v5405_v10, %v1571_v56  ;;  %2310 = vadd.xlane.f32.xlu1 %v2309_v50  ;;  %v1081_v45 = vmul.f32 0.6931472, %v3010_v12  ;;  %v1102_v54 = vmul.f32 %v5455_v41, %v1101_v47  ;;  %v5529_v1 = vsub.f32 %v5459_v36, %v5469_v13  ;;  %v3014_v3 = vpop.eup %3013 }
 0x39c   :  { %v1573_v24 = vsel %vm800_vm6, %v1572_v22, 0.0  ;;  %v1090_v10 = vmul.f32 0.6931472, %v3012_v32  ;;  %vm5531_vm10 = vcmp.lt.f32.partialorder %v1103_v27, 0.0004427343  ;;  %v1111_v43 = vmul.f32 %v3004_v46, %v1110_v38 }
 0x39d   :  { %1574 = vadd.xlane.f32.xlu0 %v1573_v24  ;;  %vm5535_vm12 = vcmp.lt.f32.partialorder %v1112_v42, 0.0004427343  ;;  %v3016_v40 = vpop.eup %3015  ;;  %v1087_v41 = vsel %vm5471_vm1, %v1084_v48, %v1081_v45  ;;  %v1099_v20 = vmul.f32 0.6931472, %v3014_v3  ;;  %v1431_v18 = vand.u32 2147483647, %v5477_v16 }
 0x39e   :  { %v1432_v53 = vand.u32 2147483647, %v5512_v9  ;;  %v2416_v62 = vmul.f32 0.6931472, %v3016_v40  ;;  %v1096_v47 = vsel %vm5492_vm5, %v1093_v30, %v1090_v10  ;;  %v6319_v46 = vmax.f32 %v5289_v58, %v5328_v21  ;;  %v1991_v3 = vld [vmem:[#allocation32] sm:$0xff]  ;;  %v1992_v10 = vld [vmem:[#allocation32 + $0x8] sm:$0xff] }
 0x39f   :  { %v1433_v56 = vand.u32 2147483647, %v5521_v34  ;;  %2390 = vadd.xlane.f32.xlu1 %v5431_v28  ;;  %v1105_v19 = vsel %vm5531_vm10, %v1102_v54, %v1099_v20  ;;  %v6320_v48 = vmax.f32 %v5307_v25, %v5334_v15  ;;  %v1434_v38 = vand.u32 2147483647, %v5529_v1  ;;  %v3018_v14 = vpop.eup %3017 }
 0x3a0   :  { %v1115_v0 = vadd.f32 %v1087_v41, %v6319_v46  ;;  %v1435_v42 = vsub.f32 0.0, %v1431_v18  ;;  %v2422_v35 = vsel %vm5506_vm8, %v2419_v61, %v2416_v62  ;;  %v6321_v58 = vmax.f32 %v5324_v29, %v5336_v11  ;;  %v6325_v41 = vld [vmem:[#allocation114_spill] sm:$0xff]  ;;  %v6326_v18 = vld [vmem:[#allocation116_spill] sm:$0xff] }
 0x3a1   :  { %v1116_v27 = vadd.f32 %v1096_v47, %v6320_v48  ;;  %v1436_v30 = vsub.f32 0.0, %v1432_v53  ;;  %v6322_v25 = vmax.f32 %v5353_v26, %v5375_v51  ;;  %v1108_v12 = vmul.f32 0.6931472, %v3018_v14  ;;  %v6327_v47 = vld [vmem:[#allocation108_spill] sm:$0xff] }
 0x3a2   :  { %v1117_v21 = vadd.f32 %v1105_v19, %v6321_v58  ;;  %v1119_v28 = vsel %vm1055_vm2, %v5409_v52, %v1115_v0  ;;  %v1437_v33 = vsub.f32 0.0, %v1433_v56  ;;  %v1438_v52 = vsub.f32 0.0, %v1434_v38  ;;  %v6329_v0 = vld [vmem:[#allocation109_spill] sm:$0xff] }
 0x3a3   :  { %v2423_v15 = vadd.f32 %v2422_v35, %v6322_v25  ;;  %v1120_v7 = vsel %vm1056_vm3, %v5414_v55, %v1116_v27  ;;  %v1123_v50 = vsel %vm633_vm15, %v1119_v28, 0.0  ;;  %v1114_v5 = vsel %vm5535_vm12, %v1111_v43, %v1108_v12  ;;  %v1993_v43 = vld [vmem:[#allocation32 + $0x10] sm:$0xff] }
 0x3a4   :  { %v1121_v29 = vsel %vm1057_vm4, %v5418_v31, %v1117_v21  ;;  %v1124_v11 = vsel %vm633_vm15, %v1120_v7, 0.0  ;;  %v6323_v60 = vmax.f32 %v5343_v59, %v5345_v6  ;;  %v1439_v61 = vmul.f32 1.442695, %v1435_v42  ;;  %v6324_v6 = vld [vmem:[#allocation113_spill] sm:$0xff]  ;;  %v6331_v27 = vld [vmem:[#allocation110_spill] sm:$0xff]  ;;  %v6333_v42 = vld [vmem:[#allocation112_spill] sm:$0xff] }
 0x3a5   :  { %v2424_v26 = vsel %vm2408_vm7, %v5449_v2, %v2423_v15  ;;  %v1125_v51 = vadd.f32 %v1124_v11, %v1123_v50  ;;  %v1126_v55 = vsel %vm633_vm15, %v1121_v29, 0.0  ;;  %v1441_v32 = vmul.f32 1.442695, %v1436_v30 }
 0x3a6   :  { %v2425_v22 = vsel %vm2388_vm11, %v2424_v26, 0.0  ;;  %v1118_v31 = vadd.f32 %v1114_v5, %v6323_v60  ;;  %v1758_v24 = vmul.f32 %v5373_v8, %v5373_v8  ;;  %v1443_v2 = vmul.f32 1.442695, %v1437_v33  ;;  %v6335_v33 = vld [vmem:[#allocation119_spill] sm:$0xff] }
 0x3a7   :  { %2426 = vadd.xlane.f32.xlu1 %v2425_v22  ;;  %v1127_v37 = vadd.f32 %v1126_v55, %v1125_v51  ;;  %v1445_v45 = vmul.f32 1.442695, %v1438_v52  ;;  %3019 = vpow2.f32 %v1439_v61  ;;  %v1759_v39 = vmul.f32 0.5, %v6324_v6  ;;  %v6336_v52 = vld [vmem:[#allocation118_spill] sm:$0xff] }
 0x3a8   :  { %v1122_v54 = vsel %vm1058_vm9, %v5422_v49, %v1118_v31  ;;  %3021 = vpow2.f32 %v1441_v32  ;;  %v1760_v20 = vmul.f32 0.5, %v6325_v41  ;;  %v1761_v53 = vmul.f32 0.5, %v6326_v18 }
 0x3a9   :  { %v1128_v59 = vsel %vm633_vm15, %v1122_v54, 0.0  ;;  %3023 = vpow2.f32 %v1443_v2  ;;  %v1762_v62 = vmul.f32 0.5, %v1758_v24  ;;  %v1767_v44 = vmul.f32 80000.0, %v6324_v6 }
 0x3aa   :  { %v1129_v40 = vadd.f32 %v1128_v59, %v1127_v37  ;;  %3025 = vpow2.f32 %v1445_v45  ;;  %v1768_v49 = vmul.f32 80000.0, %v6325_v41  ;;  %v5602_v46 = vadd.f32 %v6327_v47, %v1991_v3 }
 0x3ab   :  { %v5605_v56 = vadd.f32 %v6329_v0, %v1992_v10  ;;  %v1769_v19 = vmul.f32 80000.0, %v6326_v18  ;;  %v1770_v48 = vmul.f32 80000.0, %v1758_v24  ;;  %v5609_v38 = vadd.f32 %v6331_v27, %v1993_v43 }
 0x3ac   :  { %6328 = vst [vmem:[#allocation113_spill] sm:$0xff] %v5602_v46  ;;  %1130 = vadd.xlane.f32.xlu1 %v1129_v40  ;;  %v5612_v14 = vadd.f32 %v6333_v42, %v1994_v57  ;;  %v1763_v35 = vsub.f32 -0.9189385, %v1759_v39  ;;  %v1764_v58 = vsub.f32 -0.9189385, %v1760_v20  ;;  %v5616_v15 = vmul.f32 %v5602_v46, %v5602_v46 }
 0x3ad   :  { %6330 = vst [vmem:[#allocation114_spill] sm:$0xff] %v5605_v56  ;;  %6332 = vst [vmem:[#allocation116_spill] sm:$0xff] %v5609_v38  ;;  %v1765_v21 = vsub.f32 -0.9189385, %v1761_v53  ;;  %v1771_v28 = vsub.f32 5.072526, %v1767_v44  ;;  %v5620_v12 = vmul.f32 %v5605_v56, %v5605_v56  ;;  %v5624_v29 = vmul.f32 %v5609_v38, %v5609_v38 }
 0x3ae   :  { %6334 = vst [vmem:[#allocation108_spill] sm:$0xff] %v5612_v14  ;;  %v1766_v30 = vsub.f32 -0.9189385, %v1762_v62  ;;  %v1772_v25 = vsub.f32 5.072526, %v1768_v49  ;;  %v5628_v11 = vmul.f32 %v5612_v14, %v5612_v14  ;;  %v5636_v55 = vadd.f32 %v6335_v33, %v6336_v52 }
 0x3af   :  { %v1773_v7 = vsub.f32 5.072526, %v1769_v19  ;;  %v1774_v50 = vsub.f32 5.072526, %v1770_v48  ;;  %v5632_v5 = vadd.f32 -0.6931472, %v1763_v35  ;;  %v5660_v40 = vadd.f32 %v5464_v23, %v5437_v63 }
 0x3b0   :  { %v5638_v22 = vadd.f32 -0.6931472, %v1764_v58  ;;  %v5640_v60 = vadd.f32 -0.6931472, %v1765_v21  ;;  %v5642_v31 = vadd.f32 -0.6931472, %v1771_v28  ;;  %v5664_v41 = vadd.f32 %v5466_v17, %v5453_v4 }
 0x3b1   :  { %v3020_v51 = vpop.eup %3019  ;;  %v5646_v37 = vadd.f32 -0.6931472, %v1766_v30  ;;  %v5648_v2 = vadd.f32 -0.6931472, %v1772_v25  ;;  %v5652_v10 = vadd.f32 -0.6931472, %v1773_v7  ;;  %vm1423_vm6 = vcmp.ne.f32.partialorder %v5477_v16, %v5477_v16 }
 0x3b2   :  { %v3022_v61 = vpop.eup %3021  ;;  %v1447_v24 = vadd.f32 1.0, %v3020_v51  ;;  %v5654_v59 = vadd.f32 -0.6931472, %v1774_v50  ;;  %v1450_v43 = vmul.f32 -0.5, %v3020_v51  ;;  %v5668_v20 = vsub.f32 %v5632_v5, %v5642_v31 }
 0x3b3   :  { %v3024_v45 = vpop.eup %3023  ;;  %v1456_v3 = vadd.f32 1.0, %v3022_v61  ;;  %v1459_v18 = vmul.f32 -0.5, %v3022_v61  ;;  %v5672_v44 = vsub.f32 %v5638_v22, %v5648_v2  ;;  %v5676_v49 = vsub.f32 %v5640_v60, %v5652_v10 }
 0x3b4   :  { %v3026_v6 = vpop.eup %3025  ;;  %3027 = vlog2.f32 %v1447_v24  ;;  %v1465_v57 = vadd.f32 1.0, %v3024_v45  ;;  %v1468_v53 = vmul.f32 -0.5, %v3024_v45  ;;  %v5680_v47 = vsub.f32 %v5646_v37, %v5654_v59 }
 0x3b5   :  { %3029 = vlog2.f32 %v1456_v3  ;;  %v1474_v62 = vadd.f32 1.0, %v3026_v6  ;;  %v5683_v0 = vmul.f32 0.5, %v5616_v15  ;;  %v1451_v19 = vadd.f32 1.0, %v1450_v43 }
 0x3b6   :  { %3031 = vlog2.f32 %v1465_v57  ;;  %6337 = vst [vmem:[#allocation109_spill] sm:$0xff] %v5680_v47  ;;  %v1453_v48 = vand.u32 2147483647, %v3020_v51  ;;  %v5686_v27 = vmul.f32 0.5, %v5620_v12  ;;  %v1462_v42 = vand.u32 2147483647, %v3022_v61 }
 0x3b7   :  { %3033 = vlog2.f32 %v1474_v62  ;;  %v1477_v35 = vmul.f32 -0.5, %v3026_v6  ;;  %v5691_v58 = vmul.f32 0.5, %v5624_v29  ;;  %v5694_v21 = vmul.f32 0.5, %v5628_v11 }
 0x3b8   :  { %vm1424_vm11 = vcmp.ne.f32.partialorder %v5512_v9, %v5512_v9  ;;  %v1460_v28 = vadd.f32 1.0, %v1459_v18  ;;  %v1469_v30 = vadd.f32 1.0, %v1468_v53  ;;  %v1471_v25 = vand.u32 2147483647, %v3024_v45 }
 0x3b9   :  { %v1799_v7 = vand.u32 2147483647, %v5668_v20  ;;  %vm1425_vm13 = vcmp.ne.f32.partialorder %v5521_v34, %v5521_v34  ;;  %v1430_v50 = vadd.f32 %v5469_v13, %v5459_v36  ;;  %v1800_v24 = vand.u32 2147483647, %v5672_v44 }
 0x3ba   :  { %v1801_v3 = vand.u32 2147483647, %v5676_v49  ;;  %v1802_v43 = vand.u32 2147483647, %v5680_v47  ;;  %v1452_v57 = vmul.f32 %v3020_v51, %v1451_v19  ;;  %vm5706_vm14 = vcmp.lt.f32.partialorder %v1453_v48, 0.0004427343 }
 0x3bb   :  { %v1480_v18 = vand.u32 2147483647, %v3026_v6  ;;  %v1803_v53 = vsub.f32 0.0, %v1799_v7  ;;  %vm1426_vm0 = vcmp.ne.f32.partialorder %v5529_v1, %v5529_v1  ;;  %v1478_v39 = vadd.f32 1.0, %v1477_v35  ;;  %v6350_v1 = vld [vmem:[#allocation94_spill] sm:$0xff] }
 0x3bc   :  { %v1804_v54 = vsub.f32 0.0, %v1800_v24  ;;  %v1805_v32 = vsub.f32 0.0, %v1801_v3  ;;  %v1806_v26 = vsub.f32 0.0, %v1802_v43  ;;  %v1461_v14 = vmul.f32 %v3022_v61, %v1460_v28 }
 0x3bd   :  { %vm5712_vm1 = vcmp.lt.f32.partialorder %v1462_v42, 0.0004427343  ;;  %vm5716_vm2 = vcmp.lt.f32.partialorder %v1471_v25, 0.0004427343  ;;  %v1807_v19 = vmul.f32 1.442695, %v1803_v53  ;;  %v1470_v56 = vmul.f32 %v3024_v45, %v1469_v30 }
 0x3be   :  { %v3028_v8 = vpop.eup %3027  ;;  %v1809_v46 = vmul.f32 1.442695, %v1804_v54  ;;  %v1811_v47 = vmul.f32 1.442695, %v1805_v32  ;;  %vm5720_vm3 = vcmp.lt.f32.partialorder %v1480_v18, 0.0004427343  ;;  %v1479_v25 = vmul.f32 %v3026_v6, %v1478_v39 }
 0x3bf   :  { %v3030_v48 = vpop.eup %3029  ;;  %v1449_v7 = vmul.f32 0.6931472, %v3028_v8  ;;  %3035 = vpow2.f32 %v1807_v19  ;;  %v1813_v61 = vmul.f32 1.442695, %v1806_v26  ;;  %v6346_v32 = vmax.f32 %v6336_v52, %v6335_v33 }
 0x3c0   :  { %v3032_v35 = vpop.eup %3031  ;;  %v1458_v24 = vmul.f32 0.6931472, %v3030_v48  ;;  %3037 = vpow2.f32 %v1809_v46  ;;  %v2131_v54 = vsub.f32 -0.9189385, %v5683_v0  ;;  %v6348_v46 = vmax.f32 %v5453_v4, %v5466_v17 }
 0x3c1   :  { %v1455_v42 = vsel %vm5706_vm14, %v1452_v57, %v1449_v7  ;;  %v1467_v28 = vmul.f32 0.6931472, %v3032_v35  ;;  %v3034_v43 = vpop.eup %3033  ;;  %3039 = vpow2.f32 %v1811_v47  ;;  %v6347_v57 = vmax.f32 %v5437_v63, %v5464_v23 }
 0x3c2   :  { %v1464_v8 = vsel %vm5712_vm1, %v1461_v14, %v1458_v24  ;;  %v1483_v45 = vadd.f32 %v1455_v42, %v6346_v32  ;;  %v1476_v30 = vmul.f32 0.6931472, %v3034_v43  ;;  %3041 = vpow2.f32 %v1813_v61 }
 0x3c3   :  { %v1473_v26 = vsel %vm5716_vm2, %v1470_v56, %v1467_v28  ;;  %v1484_v6 = vadd.f32 %v1464_v8, %v6347_v57  ;;  %v2135_v33 = vmul.f32 80000.0, %v5616_v15  ;;  %v2136_v52 = vmul.f32 80000.0, %v5620_v12 }
 0x3c4   :  { %v1485_v38 = vadd.f32 %v1473_v26, %v6348_v46  ;;  %v1487_v14 = vsel %vm1423_vm6, %v5636_v55, %v1483_v45  ;;  %v1482_v56 = vsel %vm5720_vm3, %v1479_v25, %v1476_v30  ;;  %v2137_v17 = vmul.f32 80000.0, %v5624_v29 }
 0x3c5   :  { %v1488_v23 = vsel %vm1424_vm11, %v5660_v40, %v1484_v6  ;;  %v1491_v63 = vsel %vm633_vm15, %v1487_v14, 0.0  ;;  %v6349_v4 = vmax.f32 %v5459_v36, %v5469_v13  ;;  %v2138_v55 = vmul.f32 80000.0, %v5628_v11 }
 0x3c6   :  { %v1489_v15 = vsel %vm1425_vm13, %v5664_v41, %v1485_v38  ;;  %v1492_v12 = vsel %vm633_vm15, %v1488_v23, 0.0  ;;  %v2132_v40 = vsub.f32 -0.9189385, %v5686_v27  ;;  %v2133_v29 = vsub.f32 -0.9189385, %v5691_v58 }
 0x3c7   :  { %v1486_v16 = vadd.f32 %v1482_v56, %v6349_v4  ;;  %v1493_v39 = vadd.f32 %v1492_v12, %v1491_v63  ;;  %v1494_v9 = vsel %vm633_vm15, %v1489_v15, 0.0  ;;  %v2139_v13 = vsub.f32 5.072526, %v2135_v33  ;;  %v6352_v4 = vld [vmem:[#allocation96_spill] sm:$0xff] }
 0x3c8   :  { %v2140_v47 = vsub.f32 5.072526, %v2136_v52  ;;  %v2134_v41 = vsub.f32 -0.9189385, %v5694_v21  ;;  %v2141_v62 = vsub.f32 5.072526, %v2137_v17  ;;  %v1783_v18 = vmax.f32 %v5632_v5, %v5642_v31 }
 0x3c9   :  { %v1490_v36 = vsel %vm1426_vm0, %v1430_v50, %v1486_v16  ;;  %v1495_v0 = vadd.f32 %v1494_v9, %v1493_v39  ;;  %v3036_v11 = vpop.eup %3035  ;;  %v1784_v27 = vmax.f32 %v5638_v22, %v5648_v2  ;;  %v2142_v58 = vsub.f32 5.072526, %v2138_v55  ;;  %v5826_v39 = vld [vmem:[#allocation44] sm:$0x1] }
 0x3ca   :  { %v1496_v34 = vsel %vm633_vm15, %v1490_v36, 0.0  ;;  %v5775_v53 = vadd.f32 -0.6931472, %v2131_v54  ;;  %850 = vxpose.xlu0.b32.start [1/4] (short) (narrow) %v6350_v1, 32  ;;  %v3038_v50 = vpop.eup %3037  ;;  %v1815_v19 = vadd.f32 1.0, %v3036_v11  ;;  %v1785_v35 = vmax.f32 %v5640_v60, %v5652_v10  ;;  %v6351_v54 = vld [vmem:[#allocation95_spill] sm:$0xff] }
 0x3cb   :  { %v1497_v51 = vadd.f32 %v1496_v34, %v1495_v0  ;;  %v5778_v48 = vadd.f32 -0.6931472, %v2132_v40  ;;  %v5780_v7 = vadd.f32 -0.6931472, %v2133_v29  ;;  %v3040_v21 = vpop.eup %3039  ;;  %v1824_v24 = vadd.f32 1.0, %v3038_v50 }
 0x3cc   :  { %v5784_v3 = vadd.f32 -0.6931472, %v2139_v13  ;;  %v5786_v61 = vadd.f32 -0.6931472, %v2140_v47  ;;  %v3042_v42 = vpop.eup %3041  ;;  %3043 = vlog2.f32 %v1815_v19  ;;  %v1818_v28 = vmul.f32 -0.5, %v3036_v11 }
 0x3cd   :  { %1498 = vadd.xlane.f32.xlu1 %v1497_v51  ;;  %v1833_v25 = vadd.f32 1.0, %v3040_v21  ;;  %v5788_v43 = vadd.f32 -0.6931472, %v2141_v62  ;;  %3045 = vlog2.f32 %v1824_v24  ;;  %v1827_v8 = vmul.f32 -0.5, %v3038_v50 }
 0x3ce   :  { %v5790_v32 = vadd.f32 -0.6931472, %v2134_v41  ;;  %v5792_v45 = vadd.f32 -0.6931472, %v2142_v58  ;;  %851 = vxpose.xlu0.b32.cont [2/4] (short) (narrow) %v6351_v54, 32  ;;  %v1836_v30 = vmul.f32 -0.5, %v3040_v21  ;;  %v1786_v6 = vmax.f32 %v5646_v37, %v5654_v59 }
 0x3cf   :  { %v1821_v26 = vand.u32 2147483647, %v3036_v11  ;;  %3047 = vlog2.f32 %v1833_v25  ;;  %v1842_v57 = vadd.f32 1.0, %v3042_v42  ;;  %v1830_v46 = vand.u32 2147483647, %v3038_v50  ;;  %v6357_v41 = vld [vmem:[#allocation109_spill] sm:$0xff] }
 0x3d0   :  { %v1845_v38 = vmul.f32 -0.5, %v3042_v42  ;;  %v5799_v14 = vsub.f32 %v5775_v53, %v5784_v3  ;;  %v1819_v33 = vadd.f32 1.0, %v1818_v28  ;;  %v5803_v52 = vsub.f32 %v5778_v48, %v5786_v61 }
 0x3d1   :  { %3049 = vlog2.f32 %v1842_v57  ;;  %v5807_v56 = vsub.f32 %v5780_v7, %v5788_v43  ;;  %vm1791_vm4 = vcmp.ne.f32.partialorder %v5668_v20, %v5668_v20  ;;  %v1828_v23 = vadd.f32 1.0, %v1827_v8  ;;  %v6360_v8 = vld [vmem:[#allocation97_spill] sm:$0xff] }
 0x3d2   :  { %v1839_v63 = vand.u32 2147483647, %v3040_v21  ;;  %v5813_v17 = vsub.f32 %v5790_v32, %v5792_v45  ;;  %852 = vxpose.xlu0.b32.cont [3/4] (short) (narrow) %v6352_v4, 32  ;;  %vm1792_vm5 = vcmp.ne.f32.partialorder %v5672_v44, %v5672_v44  ;;  %v1795_v16 = vadd.f32 %v5642_v31, %v5632_v5 }
 0x3d3   :  { %v1796_v15 = vadd.f32 %v5648_v2, %v5638_v22  ;;  %vm5822_vm7 = vcmp.lt.f32.partialorder %v1821_v26, 0.0004427343  ;;  %v1837_v55 = vadd.f32 1.0, %v1836_v30  ;;  %vm1793_vm8 = vcmp.ne.f32.partialorder %v5676_v49, %v5676_v49 }
 0x3d4   :  { %v1797_v9 = vadd.f32 %v5652_v10, %v5640_v60  ;;  %vm5832_vm9 = vcmp.lt.f32.partialorder %v1830_v46, 0.0004427343  ;;  %v1846_v29 = vadd.f32 1.0, %v1845_v38  ;;  %v1848_v36 = vand.u32 2147483647, %v3042_v42 }
 0x3d5   :  { %v1820_v13 = vmul.f32 %v3036_v11, %v1819_v33  ;;  %v2167_v47 = vand.u32 2147483647, %v5799_v14  ;;  %v2168_v0 = vand.u32 2147483647, %v5803_v52  ;;  %v2169_v34 = vand.u32 2147483647, %v5807_v56 }
 0x3d6   :  { %vm1794_vm10 = vcmp.ne.f32.partialorder %v6357_v41, %v6357_v41  ;;  %v1829_v62 = vmul.f32 %v3038_v50, %v1828_v23  ;;  %vm5841_vm12 = vcmp.lt.f32.partialorder %v1839_v63, 0.0004427343  ;;  %v2170_v1 = vand.u32 2147483647, %v5813_v17  ;;  %v3044_v19 = vpop.eup %3043  ;;  %853 = vxpose.xlu0.b32.end [4/4] (short) (narrow) %v6360_v8, 32 }
 0x3d7   :  { %v2442_v51 = vand.u32 2147483647, %v5826_v39  ;;  %v1838_v11 = vmul.f32 %v3040_v21, %v1837_v55  ;;  %v2171_v24 = vsub.f32 0.0, %v2167_v47  ;;  %v2172_v28 = vsub.f32 0.0, %v2168_v0  ;;  %v3046_v54 = vpop.eup %3045 }
 0x3d8   :  { %v2173_v25 = vsub.f32 0.0, %v2169_v34  ;;  %v1817_v26 = vmul.f32 0.6931472, %v3044_v19  ;;  %vm5848_vm6 = vcmp.lt.f32.partialorder %v1848_v36, 0.0004427343  ;;  %v2174_v50 = vsub.f32 0.0, %v2170_v1 }
 0x3d9   :  { %v2443_v57 = vsub.f32 0.0, %v2442_v51  ;;  %v3048_v46 = vpop.eup %3047  ;;  %v1826_v38 = vmul.f32 0.6931472, %v3046_v54  ;;  %v1847_v33 = vmul.f32 %v3042_v42, %v1846_v29  ;;  %v2175_v23 = vmul.f32 1.442695, %v2171_v24  ;;  %v6363_v51 = vld [vmem:[#allocation102_spill] sm:$0xff] }
 0x3da   :  { %v2177_v63 = vmul.f32 1.442695, %v2172_v28  ;;  %v1823_v21 = vsel %vm5822_vm7, %v1820_v13, %v1817_v26  ;;  %v1835_v4 = vmul.f32 0.6931472, %v3048_v46  ;;  %v2179_v55 = vmul.f32 1.442695, %v2173_v25 }
 0x3db   :  { %v2181_v47 = vmul.f32 1.442695, %v2174_v50  ;;  %v3050_v0 = vpop.eup %3049  ;;  %v1832_v36 = vsel %vm5832_vm9, %v1829_v62, %v1826_v38  ;;  %v1851_v34 = vadd.f32 %v1823_v21, %v1783_v18  ;;  %3051 = vpow2.f32 %v2175_v23  ;;  %1586 = vxpose.xlu0.b32.start [1/4] (short) (narrow) %v6363_v51, 32  ;;  %v6366_v19 = vld [vmem:[#allocation105_spill] sm:$0xff] }
 0x3dc   :  { %v2444_v1 = vmul.f32 1.442695, %v2443_v57  ;;  %v1841_v42 = vsel %vm5841_vm12, %v1838_v11, %v1835_v4  ;;  %v1844_v12 = vmul.f32 0.6931472, %v3050_v0  ;;  %v1852_v29 = vadd.f32 %v1832_v36, %v1784_v27  ;;  %v6364_v27 = vld [vmem:[#allocation103_spill] sm:$0xff]  ;;  %v6367_v26 = vld [vmem:[#allocation113_spill] sm:$0xff] }
 0x3dd   :  { %3053 = vpow2.f32 %v2177_v63  ;;  %v1798_v40 = vadd.f32 %v5654_v59, %v5646_v37  ;;  %v1853_v5 = vadd.f32 %v1841_v42, %v1785_v35  ;;  %v1855_v31 = vsel %vm1791_vm4, %v1795_v16, %v1851_v34  ;;  %v6365_v59 = vld [vmem:[#allocation104_spill] sm:$0xff] }
 0x3de   :  { %3055 = vpow2.f32 %v2179_v55  ;;  %v1850_v18 = vsel %vm5848_vm6, %v1847_v33, %v1844_v12  ;;  %v1856_v22 = vsel %vm1792_vm5, %v1796_v15, %v1852_v29  ;;  %v1859_v2 = vsel %vm633_vm15, %v1855_v31, 0.0 }
 0x3df   :  { %3057 = vpow2.f32 %v2181_v47  ;;  %v1854_v60 = vadd.f32 %v1850_v18, %v1786_v6  ;;  %v1857_v10 = vsel %vm1793_vm8, %v1797_v9, %v1853_v5  ;;  %v1860_v20 = vsel %vm633_vm15, %v1856_v22, 0.0  ;;  %1587 = vxpose.xlu0.b32.cont [2/4] (short) (narrow) %v6364_v27, 32  ;;  %v6368_v47 = vld [vmem:[#allocation114_spill] sm:$0xff] }
 0x3e0   :  { %3059 = vpow2.f32 %v2444_v1  ;;  %v1861_v35 = vadd.f32 %v1860_v20, %v1859_v2  ;;  %v1862_v44 = vsel %vm633_vm15, %v1857_v10, 0.0  ;;  %v2439_v46 = vmax.f32 %v5826_v39, 0.0  ;;  %v5911_v1 = vpop.xlane.xlu1 %802  ;;  %v6373_v20 = vld [vmem:[#allocation116_spill] sm:$0xff] }
 0x3e1   :  { %v1858_v16 = vsel %vm1794_vm10, %v1798_v40, %v1854_v60  ;;  %v2151_v38 = vmax.f32 %v5775_v53, %v5784_v3  ;;  %v2152_v63 = vmax.f32 %v5778_v48, %v5786_v61  ;;  %v2153_v0 = vmax.f32 %v5780_v7, %v5788_v43 }
 0x3e2   :  { %v1863_v15 = vadd.f32 %v1862_v44, %v1861_v35  ;;  %v1864_v37 = vsel %vm633_vm15, %v1858_v16, 0.0  ;;  %v2154_v36 = vmax.f32 %v5790_v32, %v5792_v45  ;;  %vm2159_vm11 = vcmp.ne.f32.partialorder %v5799_v14, %v5799_v14 }
 0x3e3   :  { %1588 = vxpose.xlu0.b32.cont [3/4] (short) (narrow) %v6365_v59, 32  ;;  %vm2160_vm13 = vcmp.ne.f32.partialorder %v5803_v52, %v5803_v52  ;;  %vm2161_vm14 = vcmp.ne.f32.partialorder %v5807_v56, %v5807_v56  ;;  %v2163_v29 = vadd.f32 %v5784_v3, %v5775_v53  ;;  %vm2162_vm2 = vcmp.ne.f32.partialorder %v5813_v17, %v5813_v17 }
 0x3e4   :  { %v1865_v6 = vadd.f32 %v1864_v37, %v1863_v15  ;;  %v2164_v44 = vadd.f32 %v5786_v61, %v5778_v48  ;;  %vm2440_vm7 = vcmp.ne.f32.partialorder %v5826_v39, %v5826_v39  ;;  %vm2465_vm8 = vcmask 24576  }
 0x3e5   :  { %v3052_v49 = vpop.eup %3051  ;;  %vm2547_vm12 = vcmask 31744  }
 0x3e6   :  { %1866 = vadd.xlane.f32.xlu1 %v1865_v6  ;;  %v2183_v13 = vadd.f32 1.0, %v3052_v49  ;;  %v2186_v41 = vmul.f32 -0.5, %v3052_v49  ;;  %v2189_v33 = vand.u32 2147483647, %v3052_v49  ;;  %v2165_v6 = vadd.f32 %v5788_v43, %v5780_v7 }
 0x3e7   :  { %v3054_v9 = vpop.eup %3053  ;;  %1589 = vxpose.xlu0.b32.end [4/4] (short) (narrow) %v6366_v19, 32  ;;  %v2166_v43 = vadd.f32 %v5792_v45, %v5790_v32 }
 0x3e8   :  { %v3056_v62 = vpop.eup %3055  ;;  %v2192_v58 = vadd.f32 1.0, %v3054_v9  ;;  %3061 = vlog2.f32 %v2183_v13  ;;  %v2195_v25 = vmul.f32 -0.5, %v3054_v9  ;;  %v2187_v50 = vadd.f32 1.0, %v2186_v41 }
 0x3e9   :  { %v3058_v11 = vpop.eup %3057  ;;  %v2201_v24 = vadd.f32 1.0, %v3056_v62  ;;  %v2204_v54 = vmul.f32 -0.5, %v3056_v62  ;;  %v2198_v21 = vand.u32 2147483647, %v3054_v9  ;;  %v2207_v34 = vand.u32 2147483647, %v3056_v62 }
 0x3ea   :  { %v5894_v28 = vpop.eup %3059  ;;  %3063 = vlog2.f32 %v2192_v58  ;;  %v2210_v8 = vadd.f32 1.0, %v3058_v11  ;;  %v2213_v57 = vmul.f32 -0.5, %v3058_v11  ;;  %v2196_v23 = vadd.f32 1.0, %v2195_v25 }
 0x3eb   :  { %3065 = vlog2.f32 %v2201_v24  ;;  %2322 = vxpose.xlu0.b32.start [1/4] (short) (narrow) %v6367_v26, 32  ;;  %v2446_v30 = vadd.f32 1.0, %v5894_v28  ;;  %v2205_v4 = vadd.f32 1.0, %v2204_v54  ;;  %v2449_v55 = vmul.f32 -0.5, %v5894_v28 }
 0x3ec   :  { %3067 = vlog2.f32 %v2210_v8  ;;  %v2188_v51 = vmul.f32 %v3052_v49, %v2187_v50  ;;  %v2214_v42 = vadd.f32 1.0, %v2213_v57  ;;  %vm5919_vm0 = vcmp.lt.f32.partialorder %v2189_v33, 0.0004427343  ;;  %v6380_v57 = vld [vmem:[#allocation115_spill] sm:$0xff] }
 0x3ed   :  { %3069 = vlog2.f32 %v2446_v30  ;;  %v2197_v5 = vmul.f32 %v3054_v9, %v2196_v23  ;;  %v2216_v31 = vand.u32 2147483647, %v3058_v11  ;;  %vm5923_vm1 = vcmp.lt.f32.partialorder %v2198_v21, 0.0004427343 }
 0x3ee   :  { %v2206_v60 = vmul.f32 %v3056_v62, %v2205_v4  ;;  %v2450_v10 = vadd.f32 1.0, %v2449_v55  ;;  %vm5930_vm3 = vcmp.lt.f32.partialorder %v2207_v34, 0.0004427343  ;;  %v2452_v35 = vand.u32 2147483647, %v5894_v28  ;;  %v5947_v62 = vpop.xlane.xlu1 %1170  ;;  %v642_v4 = vpop.xlane.xlu0 %641 }
 0x3ef   :  { %2323 = vxpose.xlu0.b32.cont [2/4] (short) (narrow) %v6368_v47, 32  ;;  %v2215_v37 = vmul.f32 %v3058_v11, %v2214_v42  ;;  %vm5943_vm4 = vcmp.lt.f32.partialorder %v2216_v31, 0.0004427343  ;;  %v6378_v11 = vld [vmem:[#allocation108_spill] sm:$0xff]  ;;  %v804_v21 = vrot.slane %v5911_v1, 4 }
 0x3f0   :  { %v2451_v19 = vmul.f32 %v5894_v28, %v2450_v10  ;;  %vm2453_vm5 = vcmp.lt.f32.partialorder %v2452_v35, 0.0004427343  ;;  %v2436_v55 = vld [vmem:[#allocation43] sm:$0x1] }
 0x3f2   :  { %v3062_v12 = vpop.eup %3061  ;;  %v1011_v33 = vpop.xlane.xlu1 %1010 }
 0x3f3   :  { %v2185_v22 = vmul.f32 0.6931472, %v3062_v12  ;;  %2324 = vxpose.xlu0.b32.cont [3/4] (short) (narrow) %v6373_v20, 32  ;;  %v1012_v17 = vrot.slane %v1011_v33, 4 }
 0x3f4   :  { %v3064_v18 = vpop.eup %3063 }
 0x3f5   :  { %v3066_v27 = vpop.eup %3065  ;;  %v2194_v53 = vmul.f32 0.6931472, %v3064_v18  ;;  %v2191_v16 = vsel %vm5919_vm0, %v2188_v51, %v2185_v22 }
 0x3f6   :  { %v2203_v15 = vmul.f32 0.6931472, %v3066_v27  ;;  %v3068_v59 = vpop.eup %3067  ;;  %v2219_v13 = vadd.f32 %v2191_v16, %v2151_v38  ;;  %v2438_v38 = vld [vmem:[%s6379_s3] sm:$0x1]  ;;  %v839_v12 = vpop.xlane.xlu1 %838 }
 0x3f7   :  { %v2200_v49 = vsel %vm5923_vm1, %v2197_v5, %v2194_v53  ;;  %v2212_v61 = vmul.f32 0.6931472, %v3068_v59  ;;  %2325 = vxpose.xlu0.b32.end [4/4] (short) (narrow) %v6378_v11, 32  ;;  %v3070_v7 = vpop.eup %3069  ;;  %v840_v5 = vrot.slane %v839_v12, 4  ;;  %v2462_v53 = vmul.f32 %v2438_v38, %v2438_v38 }
 0x3f8   :  { %v2209_v48 = vsel %vm5930_vm3, %v2206_v60, %v2203_v15  ;;  %v2220_v58 = vadd.f32 %v2200_v49, %v2152_v63  ;;  %v2223_v41 = vsel %vm2159_vm11, %v2163_v29, %v2219_v13  ;;  %v2448_v54 = vmul.f32 0.6931472, %v3070_v7  ;;  %v5982_v29 = vpop.xlane.xlu0 %1378 }
 0x3f9   :  { %v2221_v24 = vadd.f32 %v2209_v48, %v2153_v0  ;;  %v2218_v25 = vsel %vm5943_vm4, %v2215_v37, %v2212_v61  ;;  %v2227_v8 = vsel %vm633_vm15, %v2223_v41, 0.0  ;;  %v643_v0 = vrot.slane %v642_v4, 4 }
 0x3fa   :  { %v2224_v28 = vsel %vm2160_vm13, %v2164_v44, %v2220_v58  ;;  %v2222_v26 = vadd.f32 %v2218_v25, %v2154_v36  ;;  %v2454_v50 = vsel %vm2453_vm5, %v2451_v19, %v2448_v54  ;;  %v841_v18 = vadd.f32 %v840_v5, %v839_v12  ;;  %v5986_v20 = vpop.xlane.xlu1 %1206 }
 0x3fb   :  { %v2225_v32 = vsel %vm2161_vm14, %v2165_v6, %v2221_v24  ;;  %v2228_v45 = vsel %vm633_vm15, %v2224_v28, 0.0  ;;  %2515 = vxpose.xlu0.b32.start.end [1/1] (short) (narrow) %v6380_v57, 32  ;;  %v2455_v56 = vadd.f32 %v2454_v50, %v2439_v46  ;;  %v644_v51 = vadd.f32 %v643_v0, %v642_v4 }
 0x3fc   :  { %v2229_v14 = vadd.f32 %v2228_v45, %v2227_v8  ;;  %v2230_v30 = vsel %vm633_vm15, %v2225_v32, 0.0  ;;  %v2226_v52 = vsel %vm2162_vm2, %v2166_v43, %v2222_v26  ;;  %v805_v46 = vadd.f32 %v804_v21, %v5911_v1  ;;  %v762_v27 = vpop.xlane.xlu0 %761 }
 0x3fd   :  { %v2232_v63 = vsel %vm633_vm15, %v2226_v52, 0.0  ;;  %v2456_v47 = vsel %vm2440_vm7, %v5826_v39, %v2455_v56  ;;  %v645_v40 = vrot.slane %v644_v51, 2  ;;  %v1013_v39 = vadd.f32 %v1012_v17, %v1011_v33 }
 0x3fe   :  { %v2231_v23 = vadd.f32 %v2230_v30, %v2229_v14  ;;  %v2457_v34 = vmul.f32 %v2456_v47, %v2438_v38  ;;  %3071 = vlog2.f32 %v2456_v47  ;;  %v806_v10 = vrot.slane %v805_v46, 2  ;;  %v5988_v7 = vpop.xlane.xlu1 %1746 }
 0x3ff   :  { %v646_v22 = vadd.f32 %v645_v40, %v644_v51  ;;  %v842_v1 = vrot.slane %v841_v18, 2  ;;  %v763_v3 = vrot.slane %v762_v27, 4  ;;  %v1014_v16 = vrot.slane %v1013_v39, 2 }
 0x400   :  { %v2233_v36 = vadd.f32 %v2232_v63, %v2231_v23  ;;  %v2458_v42 = vadd.f32 %v2457_v34, %v2436_v55  ;;  %v807_v13 = vadd.f32 %v806_v10, %v805_v46  ;;  %v2463_v61 = vmul.f32 0.5, %v2462_v53 }
 0x401   :  { %v647_v15 = vrot.slane %v646_v22, 1  ;;  %v764_v37 = vadd.f32 %v763_v3, %v762_v27  ;;  %v843_v19 = vadd.f32 %v842_v1, %v841_v18  ;;  %v1015_v43 = vadd.f32 %v1014_v16, %v1013_v39 }
 0x402   :  { %2234 = vadd.xlane.f32.xlu1 %v2233_v36  ;;  %v2476_v31 = vmul.f32 %v2458_v42, %v2458_v42  ;;  %2552 = vst.msk [vmem:[%s4057_s25] sm:$0x1] %vm2465_vm8, %v2458_v42  ;;  %v808_v28 = vrot.slane %v807_v13, 1  ;;  %v5991_v57 = vpop.xlane.xlu1 %1906  ;;  %v1172_v39 = vrot.slane %v5947_v62, 4  ;;  %s6381_s25 = sld [smem:[#allocation85_spill]] }
 0x403   :  { %v648_v9 = vadd.f32 %v647_v15, %v646_v22  ;;  %v765_v58 = vrot.slane %v764_v37, 2  ;;  %v844_v26 = vrot.slane %v843_v19, 1  ;;  %v1016_v45 = vrot.slane %v1015_v43, 1 }
 0x404   :  { %v2477_v2 = vmul.f32 0.5, %v2476_v31  ;;  %v2479_v60 = vmul.f32 80000.0, %v2476_v31  ;;  %v809_v52 = vadd.f32 %v808_v28, %v807_v13  ;;  %v1208_v22 = vrot.slane %v5986_v20, 4 }
 0x405   :  { %2679 = vpush %v648_v9  ;;  %v766_v41 = vadd.f32 %v765_v58, %v764_v37  ;;  %v845_v38 = vadd.f32 %v844_v26, %v843_v19  ;;  %v1017_v56 = vadd.f32 %v1016_v45, %v1015_v43  ;;  %v1173_v10 = vadd.f32 %v1172_v39, %v5947_v62 }
 0x406   :  { %v2478_v35 = vsub.f32 -0.9189385, %v2477_v2  ;;  %v2480_v44 = vsub.f32 5.072526, %v2479_v60  ;;  %v5993_v33 = vpop.xlane.xlu1 %1942  ;;  %v1380_v2 = vrot.slane %v5982_v29, 4  ;;  %v1209_v27 = vadd.f32 %v1208_v22, %v5986_v20 }
 0x407   :  { %v767_v54 = vrot.slane %v766_v41, 1  ;;  %v1174_v1 = vrot.slane %v1173_v10, 2 }
 0x408   :  { %v3072_v59 = vpop.eup %3071  ;;  %v2481_v6 = vadd.f32 -0.6931472, %v2478_v35  ;;  %v2482_v49 = vadd.f32 -0.6931472, %v2480_v44  ;;  %v1381_v53 = vadd.f32 %v1380_v2, %v5982_v29  ;;  %v1210_v35 = vrot.slane %v1209_v27, 2 }
 0x409   :  { %v2460_v48 = vmul.f32 0.6931472, %v3072_v59  ;;  %v768_v30 = vadd.f32 %v767_v54, %v766_v41  ;;  %v1175_v37 = vadd.f32 %v1174_v1, %v1173_v10  ;;  %v1748_v54 = vrot.slane %v5988_v7, 4 }
 0x40a   :  { %v2484_v11 = vsub.f32 %v2481_v6, %v2482_v49  ;;  %v5995_v63 = vpop.xlane.xlu1 %2114  ;;  %v2483_v51 = vmax.f32 %v2481_v6, %v2482_v49  ;;  %v2486_v46 = vadd.f32 %v2482_v49, %v2481_v6  ;;  %v1382_v16 = vrot.slane %v1381_v53, 2 }
 0x40b   :  { %v2461_v24 = vsub.f32 -0.9189385, %v2460_v48  ;;  %2681 = vpush %v768_v30  ;;  %v1211_v6 = vadd.f32 %v1210_v35, %v1209_v27  ;;  %v1176_v13 = vrot.slane %v1175_v37, 1  ;;  %v1539_v48 = vpop.xlane.xlu0 %1538  ;;  %v6385_v27 = vld [vmem:[#allocation99_spill] sm:$0xff]  ;;  %v6386_v35 = vld [vmem:[#allocation100_spill] sm:$0xff] }
 0x40c   :  { %v2487_v25 = vand.u32 2147483647, %v2484_v11  ;;  %2683 = vpush %v809_v52  ;;  %vm2485_vm10 = vcmp.ne.f32.partialorder %v2484_v11, %v2484_v11  ;;  %v1383_v49 = vadd.f32 %v1382_v16, %v1381_v53  ;;  %v1908_v53 = vrot.slane %v5991_v57, 4 }
 0x40d   :  { %v2464_v8 = vsub.f32 %v2461_v24, %v2463_v61  ;;  %2685 = vpush %v845_v38  ;;  %v1212_v61 = vrot.slane %v1211_v6, 1  ;;  %v1177_v29 = vadd.f32 %v1176_v13, %v1175_v37 }
 0x40e   :  { %v2488_v32 = vsub.f32 0.0, %v2487_v25  ;;  %2687 = vpush %v1017_v56  ;;  %v5997_v55 = vpop.xlane.xlu1 %2274  ;;  %v1384_v20 = vrot.slane %v1383_v49, 1  ;;  %v1540_v25 = vrot.slane %v1539_v48, 4  ;;  %v1909_v16 = vadd.f32 %v1908_v53, %v5991_v57 }
 0x40f   :  { %v2466_v14 = vsel %vm2465_vm8, %v2464_v8, 0.0  ;;  %v1213_v19 = vadd.f32 %v1212_v61, %v1211_v6  ;;  %v6388_v61 = vld [vmem:[#allocation106_spill] sm:$0xff] }
 0x410   :  { %2467 = vadd.xlane.f32.xlu1 %v2466_v14  ;;  %v2489_v50 = vmul.f32 1.442695, %v2488_v32  ;;  %v1385_v11 = vadd.f32 %v1384_v20, %v1383_v49  ;;  %v1541_v26 = vadd.f32 %v1540_v25, %v1539_v48  ;;  %v1749_v14 = vadd.f32 %v1748_v54, %v5988_v7 }
 0x411   :  { %v1910_v49 = vrot.slane %v1909_v16, 2 }
 0x412   :  { %3073 = vpow2.f32 %v2489_v50  ;;  %v1542_v30 = vrot.slane %v1541_v26, 2 }
 0x41c   :  { %v3074_v23 = vpop.eup %3073 }
 0x41d   :  { %v2491_v21 = vadd.f32 1.0, %v3074_v23  ;;  %v2494_v4 = vmul.f32 -0.5, %v3074_v23  ;;  %v2497_v0 = vand.u32 2147483647, %v3074_v23 }
 0x41f   :  { %3075 = vlog2.f32 %v2491_v21  ;;  %v2495_v47 = vadd.f32 1.0, %v2494_v4  ;;  %vm2498_vm9 = vcmp.lt.f32.partialorder %v2497_v0, 0.0004427343  ;;  %v1543_v4 = vadd.f32 %v1542_v30, %v1541_v26  ;;  %v6391_v30 = vld [vmem:[#allocation117_spill] sm:$0xff] }
 0x421   :  { %v2496_v36 = vmul.f32 %v3074_v23, %v2495_v47  ;;  %v1750_v23 = vrot.slane %v1749_v14, 2 }
 0x428   :  { %v5999_v34 = vpop.xlane.xlu1 %2310 }
 0x429   :  { %v3076_v17 = vpop.eup %3075 }
 0x42a   :  { %v2493_v42 = vmul.f32 0.6931472, %v3076_v17  ;;  %v1575_v43 = vpop.xlane.xlu0 %1574  ;;  %v1751_v17 = vadd.f32 %v1750_v23, %v1749_v14 }
 0x42b   :  { %v1576_v28 = vrot.slane %v1575_v43, 4 }
 0x42c   :  { %v2499_v12 = vsel %vm2498_vm9, %v2496_v36, %v2493_v42  ;;  %v6001_v40 = vpop.xlane.xlu1 %2390 }
 0x42d   :  { %v2500_v5 = vadd.f32 %v2499_v12, %v2483_v51  ;;  %v1577_v32 = vadd.f32 %v1576_v28, %v1575_v43  ;;  %v1544_v51 = vrot.slane %v1543_v4, 1 }
 0x42f   :  { %v2501_v31 = vsel %vm2485_vm10, %v2486_v46, %v2500_v5  ;;  %v1578_v52 = vrot.slane %v1577_v32, 2  ;;  %v1752_v5 = vrot.slane %v1751_v17, 1 }
 0x430   :  { %v2502_v18 = vsel %vm2465_vm8, %v2501_v31, 0.0  ;;  %v6383_v31 = vld [vmem:[#allocation98_spill] sm:$0xff] }
 0x431   :  { %2503 = vadd.xlane.f32.xlu1 %v2502_v18  ;;  %v1579_v0 = vadd.f32 %v1578_v52, %v1577_v32  ;;  %v1545_v18 = vadd.f32 %v1544_v51, %v1543_v4  ;;  %v1753_v10 = vadd.f32 %v1752_v5, %v1751_v17 }
 0x433   :  { %v1580_v46 = vrot.slane %v1579_v0, 1 }
 0x434   :  { %v6007_v60 = vpop.xlane.xlu1 %2426 }
 0x435   :  { %v1581_v22 = vadd.f32 %v1580_v46, %v1579_v0  ;;  %v2428_v4 = vrot.slane %v6007_v60, 4 }
 0x437   :  { %v2429_v17 = vadd.f32 %v2428_v4, %v6007_v60 }
 0x439   :  { %v1131_v3 = vpop.xlane.xlu1 %1130  ;;  %v2430_v5 = vrot.slane %v2429_v17, 2 }
 0x43a   :  { %v1132_v44 = vrot.slane %v1131_v3, 4 }
 0x43c   :  { %v1133_v15 = vadd.f32 %v1132_v44, %v1131_v3  ;;  %v1944_v3 = vrot.slane %v5993_v33, 4  ;;  %v2116_v44 = vrot.slane %v5995_v63, 4 }
 0x43e   :  { %v1134_v59 = vrot.slane %v1133_v15, 2  ;;  %v1945_v37 = vadd.f32 %v1944_v3, %v5993_v33  ;;  %v2117_v6 = vadd.f32 %v2116_v44, %v5995_v63  ;;  %v1911_v33 = vadd.f32 %v1910_v49, %v1909_v16 }
 0x440   :  { %v1135_v9 = vadd.f32 %v1134_v59, %v1133_v15  ;;  %v6387_v59 = vld [vmem:[#allocation101_spill] sm:$0xff]  ;;  %v1946_v48 = vrot.slane %v1945_v37, 2  ;;  %v2118_v57 = vrot.slane %v2117_v6, 2 }
 0x442   :  { %v1136_v62 = vrot.slane %v1135_v9, 1  ;;  %v2119_v63 = vadd.f32 %v2118_v57, %v2117_v6 }
 0x444   :  { %v1137_v58 = vadd.f32 %v1136_v62, %v1135_v9  ;;  %v2120_v54 = vrot.slane %v2119_v63, 1 }
 0x446   :  { %2689 = vpush %v1137_v58 }
 0x447   :  { %2691 = vpush %v1177_v29 }
 0x448   :  { %2693 = vpush %v1213_v19  ;;  %v1947_v19 = vadd.f32 %v1946_v48, %v1945_v37 }
 0x449   :  { %2695 = vpush %v1385_v11  ;;  %v6389_v11 = vld [vmem:[#allocation107_spill] sm:$0xff] }
 0x44a   :  { %v866_v24 = vpop.trf.xlu0  ;;  %v1948_v28 = vrot.slane %v1947_v19, 1 }
 0x44b   :  { %882 = vst.msk [vmem:[%s6381_s25] sm:$0xff] %vm633_vm15, %v866_v24  ;;  %v1912_v24 = vrot.slane %v1911_v33, 1 }
 0x44c   :  { %v1949_v14 = vadd.f32 %v1948_v28, %v1947_v19 }
 0x44d   :  { %v1913_v32 = vadd.f32 %v1912_v24, %v1911_v33 }
 0x44e   :  { %v867_v41 = vpop.trf.xlu0 }
 0x44f   :  { %883 = vst.msk [vmem:[%s6381_s25 + $0x8] sm:$0xff] %vm633_vm15, %v867_v41 }
 0x452   :  { %v868_v8 = vpop.trf.xlu0 }
 0x453   :  { %884 = vst.msk [vmem:[%s6381_s25 + $0x10] sm:$0xff] %vm633_vm15, %v868_v8  ;;  %v6390_v8 = vld [vmem:[#allocation111_spill] sm:$0xff] }
 0x456   :  { %v869_v45 = vpop.trf.xlu0 }
 0x457   :  { %885 = vst.msk [vmem:[%s6381_s25 + $0x18] sm:$0xff] %vm633_vm15, %v869_v45 }
 0x45a   :  { %v1499_v50 = vpop.xlane.xlu1 %1498 }
 0x45b   :  { %v1500_v38 = vrot.slane %v1499_v50, 4  ;;  %v1602_v56 = vpop.trf.xlu0 }
 0x45c   :  { %1618 = vst.msk [vmem:[%s6382_s4] sm:$0xff] %vm633_vm15, %v1602_v56  ;;  %v2312_v56 = vrot.slane %v5999_v34, 4 }
 0x45d   :  { %v1501_v21 = vadd.f32 %v1500_v38, %v1499_v50  ;;  %v2121_v50 = vadd.f32 %v2120_v54, %v2119_v63  ;;  %v2276_v38 = vrot.slane %v5997_v55, 4 }
 0x45e   :  { %v2313_v0 = vadd.f32 %v2312_v56, %v5999_v34 }
 0x45f   :  { %v1502_v47 = vrot.slane %v1501_v21, 2  ;;  %v1603_v36 = vpop.trf.xlu0 }
 0x460   :  { %1619 = vst.msk [vmem:[%s6382_s4 + $0x8] sm:$0xff] %vm633_vm15, %v1603_v36 }
 0x461   :  { %v1503_v7 = vadd.f32 %v1502_v47, %v1501_v21  ;;  %v2392_v21 = vrot.slane %v6001_v40, 4  ;;  %v2277_v47 = vadd.f32 %v2276_v38, %v5997_v55 }
 0x463   :  { %v1504_v42 = vrot.slane %v1503_v7, 1  ;;  %v1604_v12 = vpop.trf.xlu0  ;;  %v2393_v36 = vadd.f32 %v2392_v21, %v6001_v40 }
 0x464   :  { %1620 = vst.msk [vmem:[%s6382_s4 + $0x10] sm:$0xff] %vm633_vm15, %v1604_v12  ;;  %1218 = vxpose.xlu1.b32.start [1/4] (short) (narrow) %v6383_v31, 32 }
 0x465   :  { %v1505_v39 = vadd.f32 %v1504_v42, %v1503_v7  ;;  %v2278_v7 = vrot.slane %v2277_v47, 2  ;;  %v2314_v42 = vrot.slane %v2313_v0, 2  ;;  %v2394_v12 = vrot.slane %v2393_v36, 2 }
 0x467   :  { %2697 = vpush %v1505_v39  ;;  %v1605_v2 = vpop.trf.xlu0  ;;  %v2279_v39 = vadd.f32 %v2278_v7, %v2277_v47 }
 0x468   :  { %2699 = vpush %v1545_v18  ;;  %1219 = vxpose.xlu1.b32.cont [2/4] (short) (narrow) %v6385_v27, 32  ;;  %v2431_v27 = vadd.f32 %v2430_v5, %v2429_v17 }
 0x469   :  { %1621 = vst.msk [vmem:[%s6382_s4 + $0x18] sm:$0xff] %vm633_vm15, %v1605_v2  ;;  %v2395_v2 = vadd.f32 %v2394_v12, %v2393_v36  ;;  %v2280_v55 = vrot.slane %v2279_v39, 1 }
 0x46a   :  { %2701 = vpush %v1581_v22  ;;  %v2315_v22 = vadd.f32 %v2314_v42, %v2313_v0  ;;  %v2432_v3 = vrot.slane %v2431_v27, 1 }
 0x46b   :  { %2703 = vpush %v1753_v10  ;;  %v2338_v1 = vpop.trf.xlu0  ;;  %v2281_v60 = vadd.f32 %v2280_v55, %v2279_v39 }
 0x46c   :  { %2354 = vst.msk [vmem:[%s6384_s18] sm:$0xff] %vm633_vm15, %v2338_v1  ;;  %1220 = vxpose.xlu1.b32.cont [3/4] (short) (narrow) %v6386_v35, 32  ;;  %v2316_v34 = vrot.slane %v2315_v22, 1  ;;  %v2396_v1 = vrot.slane %v2395_v2, 1  ;;  %v2433_v16 = vadd.f32 %v2432_v3, %v2431_v27 }
 0x46e   :  { %v2317_v35 = vadd.f32 %v2316_v34, %v2315_v22  ;;  %v2397_v44 = vadd.f32 %v2396_v1, %v2395_v2 }
 0x46f   :  { %v2339_v15 = vpop.trf.xlu0 }
 0x470   :  { %2355 = vst.msk [vmem:[%s6384_s18 + $0x8] sm:$0xff] %vm633_vm15, %v2339_v15  ;;  %1221 = vxpose.xlu1.b32.end [4/4] (short) (narrow) %v6387_v59, 32 }
 0x473   :  { %v1867_v9 = vpop.xlane.xlu1 %1866  ;;  %v2340_v13 = vpop.trf.xlu0 }
 0x474   :  { %v1868_v62 = vrot.slane %v1867_v9, 4  ;;  %2356 = vst.msk [vmem:[%s6384_s18 + $0x10] sm:$0xff] %vm633_vm15, %v2340_v13  ;;  %1954 = vxpose.xlu1.b32.start [1/4] (short) (narrow) %v6388_v61, 32 }
 0x476   :  { %v1869_v20 = vadd.f32 %v1868_v62, %v1867_v9 }
 0x477   :  { %v2341_v58 = vpop.trf.xlu0 }
 0x478   :  { %v1870_v29 = vrot.slane %v1869_v20, 2  ;;  %2357 = vst.msk [vmem:[%s6384_s18 + $0x18] sm:$0xff] %vm633_vm15, %v2341_v58  ;;  %1955 = vxpose.xlu1.b32.cont [2/4] (short) (narrow) %v6389_v11, 32  ;;  %s6393_s18 = sld [smem:[#allocation91_spill]] }
 0x47a   :  { %v1871_v43 = vadd.f32 %v1870_v29, %v1869_v20 }
 0x47b   :  { %v2531_v41 = vpop.trf.xlu0 }
 0x47c   :  { %v1872_v25 = vrot.slane %v1871_v43, 1  ;;  %2548 = vst.msk [vmem:[%s4052_s20] sm:$0xff] %vm2547_vm12, %v2531_v41  ;;  %1956 = vxpose.xlu1.b32.cont [3/4] (short) (narrow) %v6390_v8, 32 }
 0x47e   :  { %v1873_v26 = vadd.f32 %v1872_v25, %v1871_v43 }
 0x47f   :  { %v2532_v45 = vpop.trf.xlu0 }
 0x480   :  { %2705 = vpush %v1873_v26  ;;  %1957 = vxpose.xlu1.b32.end [4/4] (short) (narrow) %v6391_v30, 32 }
 0x481   :  { %2549 = vst.msk [vmem:[%s4052_s20 + $0x8] sm:$0xff] %vm2547_vm12, %v2532_v45 }
 0x482   :  { %2707 = vpush %v1913_v32 }
 0x483   :  { %2709 = vpush %v1949_v14  ;;  %v2533_v52 = vpop.trf.xlu0 }
 0x484   :  { %2711 = vpush %v2121_v50 }
 0x485   :  { %2550 = vst.msk [vmem:[%s4052_s20 + $0x10] sm:$0xff] %vm2547_vm12, %v2533_v52 }
 0x487   :  { %v2534_v23 = vpop.trf.xlu0 }
 0x488   :  { %2551 = vst.msk [vmem:[%s4052_s20 + $0x18] sm:$0xff] %vm2547_vm12, %v2534_v23  ;;  %s2680_s20 = spop %2679 }
 0x489   :  { %s2682_s21 = spop %2681 }
 0x48a   :  { %s2684_s29 = spop %2683  ;;  %s770_s5 = ssub.f32 %s2680_s20, %s2682_s21 }
 0x48b   :  { %s2686_s2 = spop %2685 }
 0x48c   :  { %s2688_s27 = spop %2687  ;;  %s847_s12 = ssub.f32 %s2684_s29, %s2686_s2 }
 0x48d   :  { %s2690_s10 = spop %2689 }
 0x48e   :  { %s1139_s11 = ssub.f32 %s2688_s27, %s2690_s10  ;;  %s2692_s14 = spop %2691 }
 0x48f   :  { %v2235_v51 = vpop.xlane.xlu1 %2234  ;;  %s849_s15 = sadd.f32 %s847_s12, %s770_s5  ;;  %s2694_s16 = spop %2693 }
 0x490   :  { %v2236_v46 = vrot.slane %v2235_v51, 4  ;;  %s2696_s23 = spop %2695  ;;  %s1215_s19 = ssub.f32 %s2692_s14, %s2694_s16 }
 0x491   :  { %s1216_s22 = sadd.f32 %s1139_s11, %s849_s15 }
 0x492   :  { %v2237_v31 = vadd.f32 %v2236_v46, %v2235_v51 }
 0x493   :  { %s1217_s24 = sadd.f32 %s1216_s22, %s1215_s19 }
 0x494   :  { %v2238_v18 = vrot.slane %v2237_v31, 2 }
 0x496   :  { %v2239_v10 = vadd.f32 %v2238_v18, %v2237_v31 }
 0x498   :  { %v2240_v53 = vrot.slane %v2239_v10, 1  ;;  %s2698_s13 = spop %2697 }
 0x499   :  { %s1507_s9 = ssub.f32 %s2696_s23, %s2698_s13  ;;  %s2700_s26 = spop %2699 }
 0x49a   :  { %v2241_v40 = vadd.f32 %v2240_v53, %v2239_v10 }
 0x49b   :  { %s2702_s0 = spop %2701  ;;  %s1584_s17 = sadd.f32 %s1507_s9, %s1217_s24 }
 0x49c   :  { %2713 = vpush %v2241_v40  ;;  %s2704_s28 = spop %2703  ;;  %s1583_s6 = ssub.f32 %s2700_s26, %s2702_s0 }
 0x49d   :  { %2715 = vpush %v2281_v60  ;;  %v2468_v15 = vpop.xlane.xlu1 %2467  ;;  %s3693_s26 = scalar_lea.hbm %s4062_s30, 16 }
 0x49e   :  { %2717 = vpush %v2317_v35  ;;  %v2469_v37 = vrot.slane %v2468_v15, 4  ;;  %s1585_s7 = sadd.f32 %s1584_s17, %s1583_s6  ;;  %p3694_p0 = scmp.ne.s32.totalorder %s4062_s30, %s3693_s26 }
 0x49f   :  { %2719 = vpush %v2397_v44  ;;  %p3697_p1 = scmp.lt.u32.totalorder %s3693_s26, %s4062_s30 }
 0x4a0   :  { %2721 = vpush %v2433_v16  ;;  %v2470_v59 = vadd.f32 %v2469_v37, %v2468_v15 }
 0x4a1   :  { %p3699_p2 = pnand %p3697_p1, %p3694_p0 }
 0x4a2   :  { %v2471_v6 = vrot.slane %v2470_v59, 2 }
 0x4a4   :  { %v2472_v49 = vadd.f32 %v2471_v6, %v2470_v59 }
 0x4a6   :  { %v2473_v9 = vrot.slane %v2472_v49, 1 }
 0x4a8   :  { %v2474_v13 = vadd.f32 %v2473_v9, %v2472_v49 }
 0x4aa   :  { %2723 = vpush %v2474_v13 }
 0x4b1   :  { %s2706_s1 = spop %2705 }
 0x4b2   :  { %s1875_s3 = ssub.f32 %s2704_s28, %s2706_s1 }
 0x4b3   :  { %s2708_s25 = spop %2707 }
 0x4b4   :  { %s2710_s4 = spop %2709  ;;  %s1952_s20 = sadd.f32 %s1875_s3, %s1585_s7 }
 0x4b5   :  { %s2712_s21 = spop %2711  ;;  %s1951_s29 = ssub.f32 %s2708_s25, %s2710_s4 }
 0x4b7   :  { %s1953_s27 = sadd.f32 %s1952_s20, %s1951_s29 }
 0x4be   :  { %v2504_v48 = vpop.xlane.xlu1 %2503 }
 0x4bf   :  { %v2505_v62 = vrot.slane %v2504_v48, 4 }
 0x4c1   :  { %v2506_v61 = vadd.f32 %v2505_v62, %v2504_v48 }
 0x4c3   :  { %v2507_v57 = vrot.slane %v2506_v61, 2 }
 0x4c5   :  { %v2508_v20 = vadd.f32 %v2507_v57, %v2506_v61 }
 0x4c7   :  { %v2509_v33 = vrot.slane %v2508_v20, 1 }
 0x4c9   :  { %v2510_v58 = vadd.f32 %v2509_v33, %v2508_v20 }
 0x4cb   :  { %2725 = vpush %v2510_v58 }
 0x4cd   :  { %s2714_s2 = spop %2713 }
 0x4ce   :  { %s2243_s5 = ssub.f32 %s2712_s21, %s2714_s2  ;;  %s2716_s10 = spop %2715 }
 0x4cf   :  { %s2718_s12 = spop %2717 }
 0x4d0   :  { %s2320_s11 = sadd.f32 %s2243_s5, %s1953_s27  ;;  %s2720_s14 = spop %2719 }
 0x4d1   :  { %s2319_s15 = ssub.f32 %s2716_s10, %s2718_s12  ;;  %s2722_s16 = spop %2721 }
 0x4d2   :  { %s2435_s23 = ssub.f32 %s2720_s14, %s2722_s16 }
 0x4d3   :  { %s2321_s22 = sadd.f32 %s2320_s11, %s2319_s15 }
 0x4d5   :  { %s2513_s19 = sadd.f32 %s2435_s23, %s2321_s22 }
 0x4e4   :  { %v1234_v29 = vpop.trf.xlu1 }
 0x4e5   :  { %1250 = vst.msk [vmem:[%s6392_s8] sm:$0xff] %vm633_vm15, %v1234_v29 }
 0x4e8   :  { %v1235_v19 = vpop.trf.xlu1 }
 0x4e9   :  { %1251 = vst.msk [vmem:[%s6392_s8 + $0x8] sm:$0xff] %vm633_vm15, %v1235_v19 }
 0x4ec   :  { %v1236_v11 = vpop.trf.xlu1 }
 0x4ed   :  { %1252 = vst.msk [vmem:[%s6392_s8 + $0x10] sm:$0xff] %vm633_vm15, %v1236_v11 }
 0x4f0   :  { %v1237_v63 = vpop.trf.xlu1 }
 0x4f1   :  { %1253 = vst.msk [vmem:[%s6392_s8 + $0x18] sm:$0xff] %vm633_vm15, %v1237_v63  ;;  %s2724_s8 = spop %2723 }
 0x4f4   :  { %v1970_v43 = vpop.trf.xlu1 }
 0x4f5   :  { %1986 = vst.msk [vmem:[%s6393_s18] sm:$0xff] %vm633_vm15, %v1970_v43 }
 0x4f8   :  { %v1971_v24 = vpop.trf.xlu1 }
 0x4f9   :  { %1987 = vst.msk [vmem:[%s6393_s18 + $0x8] sm:$0xff] %vm633_vm15, %v1971_v24 }
 0x4fc   :  { %s2726_s13 = spop %2725  ;;  %v1972_v41 = vpop.trf.xlu1 }
 0x4fd   :  { %s2512_s24 = ssub.f32 %s2724_s8, %s2726_s13  ;;  %1988 = vst.msk [vmem:[%s6393_s18 + $0x10] sm:$0xff] %vm633_vm15, %v1972_v41 }
 0x4ff   :  { %s2514_s9 = sadd.f32 %s2513_s19, %s2512_s24 }
 0x500   :  { %v1973_v25 = vpop.trf.xlu1 }
 0x501   :  { %1989 = vst.msk [vmem:[%s6393_s18 + $0x18] sm:$0xff] %vm633_vm15, %v1973_v25  ;;  %2554 = sst [smem:[#allocation46]] %s2514_s9 }
 0x502   :  { %3702 = shalt.err (!%p3699_p2)
}
 0x503   :  { %s3813_s0 = smov [#allocation46]  }
 0x504   :  { %2586 = dma.smem_to_hbm %s3813_s0, 16, %s4062_s30, [#allocation4]  }
 0x505   :  { %3733 = dma.done.wait [#allocation4], 16  }
 0x506   :  { %3734 = vsyncadd [#allocation4], 4294967280 }
 0x507   :  { %2614 = sfence }
 0x508   :  { %2615 = vsyncpa [#allocation3], 1 }
 0x509   :  { %2616 = vsyncpa [#allocation6], 1 }
 0x50a   :  { %2617 = vsyncpa [#allocation9], 1 }
 0x50b   :  { %2618 = vsyncpa [#allocation12], 1 }
 0x50c   :  { %2619 = vsyncpa [#allocation15], 1 }
 0x50d   :  { %2620 = vsyncpa [#allocation18], 1 }
 0x50e   :  { %2621 = vsyncpa [#allocation21], 1 }
 0x50f   :  { %2622 = vsyncpa [#allocation24], 1 }
 0x510   :  { %2623 = vsyncpa [#allocation27], 1 }
 0x511   :  { %2624 = vsyncpa [#allocation30], 1 }
 0x512   :  { %2625 = vsyncpa [#allocation33], 1 }
 0x513   :  { %2626 = vsyncpa [#allocation36], 1 }
 0x514   :  { %2627 = vsyncpa [#allocation39], 1 }
 0x515   :  { %2628 = vsyncpa [#allocation42], 1 }
 0x516   :  { %2629 = vsyncpa [#allocation45], 1 }
 0x517   :  { %2630 = vsyncpa [#allocation4], 1 }

</bundles_post_ra>
